<compile_context>
chip_gen: v7x
topology: tpu7x:2x2x1
jax: 0.10.0
libtpu: 0.0.40
codegen_flags: <defaults>
</compile_context>

<pallas_src>
import functools

import numpy as np
import jax
import jax.numpy as jnp
from jax.experimental import pallas as pl
from jax.experimental.pallas import tpu as pltpu


# ----------------------------------------------------------------------------
# The single fused kernel: unrolled chain of   act(sum_t R_t @ A @ D_t + b)
# ----------------------------------------------------------------------------
def _fused_autoencoder_kernel(*refs, meta):
    x_ref = refs[0]
    out_ref = refs[-1]
    wrefs = refs[1:-1]

    a = x_ref[...]                       # (bn*28, 28) f32, stays on-chip
    idx = 0
    for n_terms, act in meta:
        r_ref, d_ref, b_ref = wrefs[idx], wrefs[idx + 1], wrefs[idx + 2]
        idx += 3
        acc = b_ref[...]                 # (bn*H_out, W_out*C_out) f32
        for t in range(n_terms):         # static unroll (<= 3 terms)
            rows = jnp.dot(r_ref[t], a, preferred_element_type=jnp.float32)
            acc = acc + jnp.dot(rows, d_ref[t],
                                preferred_element_type=jnp.float32)
        if act == "relu":
            acc = jnp.maximum(acc, 0.0)
        elif act == "sigmoid":
            acc = jax.nn.sigmoid(acc)
        a = acc
    out_ref[...] = a.astype(out_ref.dtype)


# ----------------------------------------------------------------------------
# Wrapper-side (one-time) construction of the R_t / D_t / bias operands
# ----------------------------------------------------------------------------
def _conv_terms(weight, bias, h_in, w_in, stride, padding, bn):
    """Conv2d, PyTorch weight (O, C, kh, kw)."""
    o_ch, c_ch, kk, _ = weight.shape
    h_out = (h_in + 2 * padding - kk) // stride + 1
    w_out = (w_in + 2 * padding - kk) // stride + 1
    ho = np.arange(h_out)[:, None]
    hi = np.arange(h_in)[None, :]
    wi = np.arange(w_in)[:, None]
    wo = np.arange(w_out)[None, :]
    eye = np.eye(bn, dtype=np.float32)
    r_list, d_list = [], []
    for ki in range(kk):
        # rows:  h == stride*ho + ki - padding   (zero padding -> no match)
        r = (hi == stride * ho + ki - padding).astype(np.float32)
        r_list.append(np.kron(eye, r))
        # cols + weights:  kj = w - stride*wo + padding
        kj = wi - stride * wo + padding                      # (w_in, w_out)
        valid = (kj >= 0) & (kj < kk)
        kj_c = np.clip(kj, 0, kk - 1)
        wk = weight[:, :, ki, :]                             # (O, C, K)
        d4 = wk[:, :, kj_c]                                  # (O, C, w_in, w_out)
        d4 = jnp.where(jnp.asarray(valid)[None, None], d4, 0.0)
        d_list.append(jnp.transpose(d4, (2, 1, 3, 0))
                      .reshape(w_in * c_ch, w_out * o_ch))   # (w*C+c, wo*O+o)
    r_st = jnp.asarray(np.stack(r_list), dtype=jnp.float32)
    d_st = jnp.stack(d_list).astype(jnp.float32)
    b_row = jnp.tile(bias.astype(jnp.float32), (w_out,))     # [wo*O + o] = b[o]
    b_full = jnp.tile(b_row[None, :], (bn * h_out, 1))
    return (r_st, d_st, b_full), (h_out, w_out, o_ch)


def _convt_terms(weight, bias, h_in, w_in, stride, padding, out_pad, bn):
    """ConvTranspose2d, PyTorch weight (C_in, O, kh, kw)."""
    c_ch, o_ch, kk, _ = weight.shape
    h_out = (h_in - 1) * stride - 2 * padding + kk + out_pad
    w_out = (w_in - 1) * stride - 2 * padding + kk + out_pad
    ho = np.arange(h_out)[:, None]
    hi = np.arange(h_in)[None, :]
    wi = np.arange(w_in)[:, None]
    wo = np.arange(w_out)[None, :]
    eye = np.eye(bn, dtype=np.float32)
    r_list, d_list = [], []
    for ki in range(kk):
        # rows:  ho == stride*h + ki - padding
        r = (ho == stride * hi + ki - padding).astype(np.float32)
        r_list.append(np.kron(eye, r))
        # cols + weights:  kj = wo - stride*w + padding
        kj = wo - stride * wi + padding                      # (w_in, w_out)
        valid = (kj >= 0) & (kj < kk)
        kj_c = np.clip(kj, 0, kk - 1)
        wk = weight[:, :, ki, :]                             # (C, O, K)
        d4 = wk[:, :, kj_c]                                  # (C, O, w_in, w_out)
        d4 = jnp.where(jnp.asarray(valid)[None, None], d4, 0.0)
        d_list.append(jnp.transpose(d4, (2, 0, 3, 1))
                      .reshape(w_in * c_ch, w_out * o_ch))   # (w*C+c, wo*O+o)
    r_st = jnp.asarray(np.stack(r_list), dtype=jnp.float32)
    d_st = jnp.stack(d_list).astype(jnp.float32)
    b_row = jnp.tile(bias.astype(jnp.float32), (w_out,))
    b_full = jnp.tile(b_row[None, :], (bn * h_out, 1))
    return (r_st, d_st, b_full), (h_out, w_out, o_ch)


def _flatten_linear_terms(weight, bias, h_in, w_in, c_in, bn):
    """Linear applied to a PyTorch (C,H,W)-flattened conv activation."""
    n_out = weight.shape[0]
    w4 = weight.reshape(n_out, c_in, h_in, w_in)             # (j, c, h, w)
    eye = np.eye(bn, dtype=np.float32)
    r_list, d_list = [], []
    for h in range(h_in):
        e = np.zeros((1, h_in), dtype=np.float32)
        e[0, h] = 1.0
        r_list.append(np.kron(eye, e))                       # (bn, bn*h_in)
        d = jnp.transpose(w4[:, :, h, :], (2, 1, 0)).reshape(w_in * c_in, n_out)
        d_list.append(d)                                     # [w*C+c, j]
    r_st = jnp.asarray(np.stack(r_list), dtype=jnp.float32)
    d_st = jnp.stack(d_list).astype(jnp.float32)
    b_full = jnp.tile(bias.astype(jnp.float32)[None, :], (bn, 1))
    return (r_st, d_st, b_full)


def _linear_terms(weight, bias, bn):
    """Plain Linear on a (bn, K) activation."""
    r_st = jnp.asarray(np.eye(bn, dtype=np.float32))[None]   # (1, bn, bn)
    d_st = weight.T.astype(jnp.float32)[None]                # (1, K_in, K_out)
    b_full = jnp.tile(bias.astype(jnp.float32)[None, :], (bn, 1))
    return (r_st, d_st, b_full)


def _linear_unflatten_terms(weight, bias, h_out, w_out, c_out, bn):
    """Linear whose output is viewed as PyTorch (C,H,W) and re-laid-out to (H, W*C)."""
    k_in = weight.shape[1]
    w4 = weight.reshape(c_out, h_out, w_out, k_in)           # (c, h, w, k)
    b3 = bias.reshape(c_out, h_out, w_out)
    eye = np.eye(bn, dtype=np.float32)
    r_list, d_list = [], []
    for h in range(h_out):
        e = np.zeros((h_out, 1), dtype=np.float32)
        e[h, 0] = 1.0
        r_list.append(np.kron(eye, e))                       # (bn*h_out, bn)
        d = jnp.transpose(w4[:, h, :, :], (2, 1, 0)).reshape(k_in, w_out * c_out)
        d_list.append(d)                                     # [k, w*C+c]
    r_st = jnp.asarray(np.stack(r_list), dtype=jnp.float32)
    d_st = jnp.stack(d_list).astype(jnp.float32)
    b2 = jnp.transpose(b3, (1, 2, 0)).reshape(h_out, w_out * c_out)
    b_full = jnp.tile(b2.astype(jnp.float32), (bn, 1))
    return (r_st, d_st, b_full)


def prepare_params(params, bn):
    """Convert PyTorch-layout weights into the fused-kernel operands (once)."""
    layers, meta = [], []
    # encoder CNN
    terms, (h, w, c) = _conv_terms(params["c1_w"], params["c1_b"], 28, 28, 2, 1, bn)
    layers.append(terms); meta.append((3, "relu"))            # (N,8,14,14)
    terms, (h, w, c) = _conv_terms(params["c2_w"], params["c2_b"], h, w, 2, 1, bn)
    layers.append(terms); meta.append((3, "relu"))            # (N,16,7,7)
    terms, (h, w, c) = _conv_terms(params["c3_w"], params["c3_b"], h, w, 2, 0, bn)
    layers.append(terms); meta.append((3, "relu"))            # (N,32,3,3)
    # encoder linear
    layers.append(_flatten_linear_terms(params["l1_w"], params["l1_b"], h, w, c, bn))
    meta.append((3, "relu"))                                  # (N,64)
    layers.append(_linear_terms(params["l2_w"], params["l2_b"], bn))
    meta.append((1, "none"))                                  # (N,8)
    # decoder linear
    layers.append(_linear_terms(params["l3_w"], params["l3_b"], bn))
    meta.append((1, "relu"))                                  # (N,64)
    layers.append(_linear_unflatten_terms(params["l4_w"], params["l4_b"], 3, 3, 32, bn))
    meta.append((3, "relu"))                                  # (N,32,3,3)
    # decoder conv-transpose
    terms, (h, w, c) = _convt_terms(params["t1_w"], params["t1_b"], 3, 3, 2, 0, 0, bn)
    layers.append(terms); meta.append((3, "relu"))            # (N,16,7,7)
    terms, (h, w, c) = _convt_terms(params["t2_w"], params["t2_b"], h, w, 2, 1, 1, bn)
    layers.append(terms); meta.append((3, "relu"))            # (N,8,14,14)
    terms, (h, w, c) = _convt_terms(params["t3_w"], params["t3_b"], h, w, 2, 1, 1, bn)
    layers.append(terms); meta.append((3, "sigmoid"))         # (N,1,28,28)
    return tuple(meta), tuple(layers)


# ----------------------------------------------------------------------------
# Fused forward: ONE pallas_call, grid over batch tiles only
# ----------------------------------------------------------------------------
def autoencoder_forward(x, layer_arrays, *, meta, bn):
    n, c, h, w = x.shape
    assert (c, h, w) == (1, 28, 28), x.shape
    assert bn % 2 == 0, "bn*28 must be sublane (8) aligned"
    n_pad = -(-n // bn) * bn

    x2 = x.reshape(n * 28, 28).astype(jnp.float32)
    if n_pad != n:
        x2 = jnp.pad(x2, ((0, (n_pad - n) * 28), (0, 0)))

    flat_inputs = [x2]
    in_specs = [pl.BlockSpec((bn * 28, 28), lambda i: (i, 0))]
    for r_st, d_st, b_full in layer_arrays:
        flat_inputs += [r_st, d_st, b_full]
        in_specs += [
            pl.BlockSpec(r_st.shape, lambda i: (0, 0, 0)),
            pl.BlockSpec(d_st.shape, lambda i: (0, 0, 0)),
            pl.BlockSpec(b_full.shape, lambda i: (0, 0)),
        ]

    kernel = functools.partial(_fused_autoencoder_kernel, meta=meta)
    out2 = pl.pallas_call(
        kernel,
        out_shape=jax.ShapeDtypeStruct((n_pad * 28, 28), jnp.float32),
        grid=(n_pad // bn,),
        in_specs=in_specs,
        out_specs=pl.BlockSpec((bn * 28, 28), lambda i: (i, 0)),
        compiler_params=pltpu.CompilerParams(
            dimension_semantics=("parallel",)),
    )(*flat_inputs)
    return out2.reshape(n_pad, 1, 28, 28)[:n]


# ----------------------------------------------------------------------------
# Pure-JAX (XLA) reference forward — same semantics, used only for checking
# ----------------------------------------------------------------------------
def _ref_dense(x, w, b, act):
    y = jnp.dot(x, w, precision=jax.lax.Precision.HIGHEST) + b[None, :]
    if act == "relu":
        y = jnp.maximum(y, 0.0)
    elif act == "sigmoid":
        y = jax.nn.sigmoid(y)
    return y


def _ref_conv2d(x, w, b, *, stride, padding, act):
    n, c, h, wd = x.shape
    o, _, kh, kw = w.shape
    xp = jnp.pad(x, ((0, 0), (0, 0), (padding, padding), (padding, padding)))
    ho = (h + 2 * padding - kh) // stride + 1
    wo = (wd + 2 * padding - kw) // stride + 1
    patches = []
    for i in range(kh):
        for j in range(kw):
            patches.append(xp[:, :, i:i + stride * ho:stride, j:j + stride * wo:stride])
    pat = jnp.stack(patches, axis=0).reshape(kh, kw, n, c, ho, wo)
    cols = pat.transpose(2, 4, 5, 3, 0, 1).reshape(n * ho * wo, c * kh * kw)
    out = _ref_dense(cols, w.reshape(o, c * kh * kw).T, b, act)
    return out.reshape(n, ho, wo, o).transpose(0, 3, 1, 2)


def _ref_conv_transpose2d(x, w, b, *, stride, padding, output_padding, act):
    n, c, h, wd = x.shape
    _, o, kh, kw = w.shape
    hd = (h - 1) * stride + 1
    wdd = (wd - 1) * stride + 1
    xd = jnp.zeros((n, c, hd, wdd), x.dtype).at[:, :, ::stride, ::stride].set(x)
    pad_t = kh - 1 - padding
    pad_b = kh - 1 - padding + output_padding
    pad_l = kw - 1 - padding
    pad_r = kw - 1 - padding + output_padding
    xp = jnp.pad(xd, ((0, 0), (0, 0), (pad_t, pad_b), (pad_l, pad_r)))
    wc = jnp.flip(w, axis=(2, 3)).transpose(1, 0, 2, 3)
    return _ref_conv2d(xp, wc, b, stride=1, padding=0, act=act)


def reference_forward(params, x):
    x = _ref_conv2d(x, params["c1_w"], params["c1_b"], stride=2, padding=1, act="relu")
    x = _ref_conv2d(x, params["c2_w"], params["c2_b"], stride=2, padding=1, act="relu")
    x = _ref_conv2d(x, params["c3_w"], params["c3_b"], stride=2, padding=0, act="relu")
    n = x.shape[0]
    x = x.reshape(n, -1)
    x = _ref_dense(x, params["l1_w"].T, params["l1_b"], "relu")
    x = _ref_dense(x, params["l2_w"].T, params["l2_b"], "none")
    x = _ref_dense(x, params["l3_w"].T, params["l3_b"], "relu")
    x = _ref_dense(x, params["l4_w"].T, params["l4_b"], "relu")
    x = x.reshape(-1, 32, 3, 3)
    x = _ref_conv_transpose2d(x, params["t1_w"], params["t1_b"], stride=2, padding=0,
                              output_padding=0, act="relu")
    x = _ref_conv_transpose2d(x, params["t2_w"], params["t2_b"], stride=2, padding=1,
                              output_padding=1, act="relu")
    x = _ref_conv_transpose2d(x, params["t3_w"], params["t3_b"], stride=2, padding=1,
                              output_padding=1, act="sigmoid")
    return x


# ----------------------------------------------------------------------------
# Deterministic synthetic parameters (PyTorch layouts)
# ----------------------------------------------------------------------------
def init_params(key, encoded_space_dim=8):
    def nrm(k, shape, scale=0.1):
        return (scale * jax.random.normal(k, shape)).astype(jnp.float32)

    ks = jax.random.split(key, 20)
    return {
        "c1_w": nrm(ks[0], (8, 1, 3, 3)),    "c1_b": nrm(ks[1], (8,)),
        "c2_w": nrm(ks[2], (16, 8, 3, 3)),   "c2_b": nrm(ks[3], (16,)),
        "c3_w": nrm(ks[4], (32, 16, 3, 3)),  "c3_b": nrm(ks[5], (32,)),
        "l1_w": nrm(ks[6], (64, 288)),       "l1_b": nrm(ks[7], (64,)),
        "l2_w": nrm(ks[8], (encoded_space_dim, 64)),
        "l2_b": nrm(ks[9], (encoded_space_dim,)),
        "l3_w": nrm(ks[10], (64, encoded_space_dim)),
        "l3_b": nrm(ks[11], (64,)),
        "l4_w": nrm(ks[12], (288, 64)),      "l4_b": nrm(ks[13], (288,)),
        "t1_w": nrm(ks[14], (32, 16, 3, 3)), "t1_b": nrm(ks[15], (16,)),
        "t2_w": nrm(ks[16], (16, 8, 3, 3)),  "t2_b": nrm(ks[17], (8,)),
        "t3_w": nrm(ks[18], (8, 1, 3, 3)),   "t3_b": nrm(ks[19], (1,)),
    }


if __name__ == "__main__":
    key = jax.random.PRNGKey(0)
    k_param, k_input = jax.random.split(key)
    params = init_params(k_param, encoded_space_dim=8)

    # The module's linear layers fix the spatial size to 28x28 (3*3*32 = 288).
    x = jax.random.normal(k_input, (2, 1, 28, 28), dtype=jnp.float32)

    bn = 2  # batch tile per grid step (even -> bn*28 rows are sublane aligned)
    meta, layer_arrays = prepare_params(params, bn)

    fwd = jax.jit(functools.partial(autoencoder_forward, meta=meta, bn=bn))
    out = jax.block_until_ready(fwd(x, layer_arrays))

    assert out.shape == (2, 1, 28, 28), out.shape
    assert out.dtype == jnp.float32
    assert bool(jnp.all(jnp.isfinite(out)))
    assert bool(jnp.all((out >= 0.0) & (out <= 1.0)))  # sigmoid output range

    # Cross-check the fused kernel against a plain-XLA reference forward.
    ref = jax.block_until_ready(jax.jit(reference_forward)(params, x))
    max_err = float(jnp.max(jnp.abs(out - ref)))
    assert max_err < 1e-2, f"fused kernel mismatch vs reference: {max_err}"

    print("KERNEL_OK")
</pallas_src>

<mosaic_0001>
module attributes {stable_mosaic.version = 11 : i64} {
  func.func @_fused_autoencoder_kernel(%arg0: i32, %arg1: memref<56x28xf32, #tpu.memory_space<vmem>>, %arg2: memref<3x28x56xf32, #tpu.memory_space<vmem>>, %arg3: memref<3x28x112xf32, #tpu.memory_space<vmem>>, %arg4: memref<28x112xf32, #tpu.memory_space<vmem>>, %arg5: memref<3x14x28xf32, #tpu.memory_space<vmem>>, %arg6: memref<3x112x112xf32, #tpu.memory_space<vmem>>, %arg7: memref<14x112xf32, #tpu.memory_space<vmem>>, %arg8: memref<3x6x14xf32, #tpu.memory_space<vmem>>, %arg9: memref<3x112x96xf32, #tpu.memory_space<vmem>>, %arg10: memref<6x96xf32, #tpu.memory_space<vmem>>, %arg11: memref<3x2x6xf32, #tpu.memory_space<vmem>>, %arg12: memref<3x96x64xf32, #tpu.memory_space<vmem>>, %arg13: memref<2x64xf32, #tpu.memory_space<vmem>>, %arg14: memref<1x2x2xf32, #tpu.memory_space<vmem>>, %arg15: memref<1x64x8xf32, #tpu.memory_space<vmem>>, %arg16: memref<2x8xf32, #tpu.memory_space<vmem>>, %arg17: memref<1x2x2xf32, #tpu.memory_space<vmem>>, %arg18: memref<1x8x64xf32, #tpu.memory_space<vmem>>, %arg19: memref<2x64xf32, #tpu.memory_space<vmem>>, %arg20: memref<3x6x2xf32, #tpu.memory_space<vmem>>, %arg21: memref<3x64x96xf32, #tpu.memory_space<vmem>>, %arg22: memref<6x96xf32, #tpu.memory_space<vmem>>, %arg23: memref<3x14x6xf32, #tpu.memory_space<vmem>>, %arg24: memref<3x96x112xf32, #tpu.memory_space<vmem>>, %arg25: memref<14x112xf32, #tpu.memory_space<vmem>>, %arg26: memref<3x28x14xf32, #tpu.memory_space<vmem>>, %arg27: memref<3x112x112xf32, #tpu.memory_space<vmem>>, %arg28: memref<28x112xf32, #tpu.memory_space<vmem>>, %arg29: memref<3x56x28xf32, #tpu.memory_space<vmem>>, %arg30: memref<3x112x28xf32, #tpu.memory_space<vmem>>, %arg31: memref<56x28xf32, #tpu.memory_space<vmem>>, %arg32: memref<56x28xf32, #tpu.memory_space<vmem>>) attributes {dimension_semantics = [#tpu.dimension_semantics<parallel>], iteration_bounds = array<i64: 1>, scalar_prefetch = 0 : i64, scratch_operands = 0 : i64, tpu.core_type = #tpu.core_type<tc>, window_params = [{transform_indices = @transform_0, window_bounds = array<i64: 56, 28>}, {pipeline_mode = #tpu.pipeline_mode<synchronous>, transform_indices = @transform_1, window_bounds = array<i64: 3, 28, 56>}, {pipeline_mode = #tpu.pipeline_mode<synchronous>, transform_indices = @transform_2, window_bounds = array<i64: 3, 28, 112>}, {pipeline_mode = #tpu.pipeline_mode<synchronous>, transform_indices = @transform_3, window_bounds = array<i64: 28, 112>}, {pipeline_mode = #tpu.pipeline_mode<synchronous>, transform_indices = @transform_4, window_bounds = array<i64: 3, 14, 28>}, {pipeline_mode = #tpu.pipeline_mode<synchronous>, transform_indices = @transform_5, window_bounds = array<i64: 3, 112, 112>}, {pipeline_mode = #tpu.pipeline_mode<synchronous>, transform_indices = @transform_6, window_bounds = array<i64: 14, 112>}, {pipeline_mode = #tpu.pipeline_mode<synchronous>, transform_indices = @transform_7, window_bounds = array<i64: 3, 6, 14>}, {pipeline_mode = #tpu.pipeline_mode<synchronous>, transform_indices = @transform_8, window_bounds = array<i64: 3, 112, 96>}, {pipeline_mode = #tpu.pipeline_mode<synchronous>, transform_indices = @transform_9, window_bounds = array<i64: 6, 96>}, {pipeline_mode = #tpu.pipeline_mode<synchronous>, transform_indices = @transform_10, window_bounds = array<i64: 3, 2, 6>}, {pipeline_mode = #tpu.pipeline_mode<synchronous>, transform_indices = @transform_11, window_bounds = array<i64: 3, 96, 64>}, {pipeline_mode = #tpu.pipeline_mode<synchronous>, transform_indices = @transform_12, window_bounds = array<i64: 2, 64>}, {pipeline_mode = #tpu.pipeline_mode<synchronous>, transform_indices = @transform_13, window_bounds = array<i64: 1, 2, 2>}, {pipeline_mode = #tpu.pipeline_mode<synchronous>, transform_indices = @transform_14, window_bounds = array<i64: 1, 64, 8>}, {pipeline_mode = #tpu.pipeline_mode<synchronous>, transform_indices = @transform_15, window_bounds = array<i64: 2, 8>}, {pipeline_mode = #tpu.pipeline_mode<synchronous>, transform_indices = @transform_16, window_bounds = array<i64: 1, 2, 2>}, {pipeline_mode = #tpu.pipeline_mode<synchronous>, transform_indices = @transform_17, window_bounds = array<i64: 1, 8, 64>}, {pipeline_mode = #tpu.pipeline_mode<synchronous>, transform_indices = @transform_18, window_bounds = array<i64: 2, 64>}, {pipeline_mode = #tpu.pipeline_mode<synchronous>, transform_indices = @transform_19, window_bounds = array<i64: 3, 6, 2>}, {pipeline_mode = #tpu.pipeline_mode<synchronous>, transform_indices = @transform_20, window_bounds = array<i64: 3, 64, 96>}, {pipeline_mode = #tpu.pipeline_mode<synchronous>, transform_indices = @transform_21, window_bounds = array<i64: 6, 96>}, {pipeline_mode = #tpu.pipeline_mode<synchronous>, transform_indices = @transform_22, window_bounds = array<i64: 3, 14, 6>}, {pipeline_mode = #tpu.pipeline_mode<synchronous>, transform_indices = @transform_23, window_bounds = array<i64: 3, 96, 112>}, {pipeline_mode = #tpu.pipeline_mode<synchronous>, transform_indices = @transform_24, window_bounds = array<i64: 14, 112>}, {pipeline_mode = #tpu.pipeline_mode<synchronous>, transform_indices = @transform_25, window_bounds = array<i64: 3, 28, 14>}, {pipeline_mode = #tpu.pipeline_mode<synchronous>, transform_indices = @transform_26, window_bounds = array<i64: 3, 112, 112>}, {pipeline_mode = #tpu.pipeline_mode<synchronous>, transform_indices = @transform_27, window_bounds = array<i64: 28, 112>}, {pipeline_mode = #tpu.pipeline_mode<synchronous>, transform_indices = @transform_28, window_bounds = array<i64: 3, 56, 28>}, {pipeline_mode = #tpu.pipeline_mode<synchronous>, transform_indices = @transform_29, window_bounds = array<i64: 3, 112, 28>}, {pipeline_mode = #tpu.pipeline_mode<synchronous>, transform_indices = @transform_30, window_bounds = array<i64: 56, 28>}, {transform_indices = @transform_31, window_bounds = array<i64: 56, 28>}]} {
    %c0 = arith.constant 0 : index
    %c0_0 = arith.constant 0 : index
    %0 = vector.load %arg1[%c0, %c0_0] : memref<56x28xf32, #tpu.memory_space<vmem>>, vector<56x28xf32>
    %c0_1 = arith.constant 0 : index
    %c0_2 = arith.constant 0 : index
    %1 = vector.load %arg4[%c0_1, %c0_2] : memref<28x112xf32, #tpu.memory_space<vmem>>, vector<28x112xf32>
    %c0_3 = arith.constant 0 : index
    %c0_4 = arith.constant 0 : index
    %c0_5 = arith.constant 0 : index
    %2 = vector.load %arg2[%c0_3, %c0_4, %c0_5] : memref<3x28x56xf32, #tpu.memory_space<vmem>>, vector<1x28x56xf32>
    %3 = vector.shape_cast %2 : vector<1x28x56xf32> to vector<28x56xf32>
    %cst = arith.constant dense<0.000000e+00> : vector<28x28xf32>
    %4 = tpu.matmul %3, %0, %cst {dimension_numbers = #tpu.dot_dimension_numbers<[1], [0], [0], [1], [0, 0, 1, 1], [], []>} : vector<28x56xf32>, vector<56x28xf32>, vector<28x28xf32> -> vector<28x28xf32>
    %c0_6 = arith.constant 0 : index
    %c0_7 = arith.constant 0 : index
    %c0_8 = arith.constant 0 : index
    %5 = vector.load %arg3[%c0_6, %c0_7, %c0_8] : memref<3x28x112xf32, #tpu.memory_space<vmem>>, vector<1x28x112xf32>
    %6 = vector.shape_cast %5 : vector<1x28x112xf32> to vector<28x112xf32>
    %cst_9 = arith.constant dense<0.000000e+00> : vector<28x112xf32>
    %7 = tpu.matmul %4, %6, %cst_9 {dimension_numbers = #tpu.dot_dimension_numbers<[1], [0], [0], [1], [0, 0, 1, 1], [], []>} : vector<28x28xf32>, vector<28x112xf32>, vector<28x112xf32> -> vector<28x112xf32>
    %8 = arith.addf %1, %7 : vector<28x112xf32>
    %c1 = arith.constant 1 : index
    %c0_10 = arith.constant 0 : index
    %c0_11 = arith.constant 0 : index
    %9 = vector.load %arg2[%c1, %c0_10, %c0_11] : memref<3x28x56xf32, #tpu.memory_space<vmem>>, vector<1x28x56xf32>
    %10 = vector.shape_cast %9 : vector<1x28x56xf32> to vector<28x56xf32>
    %cst_12 = arith.constant dense<0.000000e+00> : vector<28x28xf32>
    %11 = tpu.matmul %10, %0, %cst_12 {dimension_numbers = #tpu.dot_dimension_numbers<[1], [0], [0], [1], [0, 0, 1, 1], [], []>} : vector<28x56xf32>, vector<56x28xf32>, vector<28x28xf32> -> vector<28x28xf32>
    %c1_13 = arith.constant 1 : index
    %c0_14 = arith.constant 0 : index
    %c0_15 = arith.constant 0 : index
    %12 = vector.load %arg3[%c1_13, %c0_14, %c0_15] : memref<3x28x112xf32, #tpu.memory_space<vmem>>, vector<1x28x112xf32>
    %13 = vector.shape_cast %12 : vector<1x28x112xf32> to vector<28x112xf32>
    %cst_16 = arith.constant dense<0.000000e+00> : vector<28x112xf32>
    %14 = tpu.matmul %11, %13, %cst_16 {dimension_numbers = #tpu.dot_dimension_numbers<[1], [0], [0], [1], [0, 0, 1, 1], [], []>} : vector<28x28xf32>, vector<28x112xf32>, vector<28x112xf32> -> vector<28x112xf32>
    %15 = arith.addf %8, %14 : vector<28x112xf32>
    %c2 = arith.constant 2 : index
    %c0_17 = arith.constant 0 : index
    %c0_18 = arith.constant 0 : index
    %16 = vector.load %arg2[%c2, %c0_17, %c0_18] : memref<3x28x56xf32, #tpu.memory_space<vmem>>, vector<1x28x56xf32>
    %17 = vector.shape_cast %16 : vector<1x28x56xf32> to vector<28x56xf32>
    %cst_19 = arith.constant dense<0.000000e+00> : vector<28x28xf32>
    %18 = tpu.matmul %17, %0, %cst_19 {dimension_numbers = #tpu.dot_dimension_numbers<[1], [0], [0], [1], [0, 0, 1, 1], [], []>} : vector<28x56xf32>, vector<56x28xf32>, vector<28x28xf32> -> vector<28x28xf32>
    %c2_20 = arith.constant 2 : index
    %c0_21 = arith.constant 0 : index
    %c0_22 = arith.constant 0 : index
    %19 = vector.load %arg3[%c2_20, %c0_21, %c0_22] : memref<3x28x112xf32, #tpu.memory_space<vmem>>, vector<1x28x112xf32>
    %20 = vector.shape_cast %19 : vector<1x28x112xf32> to vector<28x112xf32>
    %cst_23 = arith.constant dense<0.000000e+00> : vector<28x112xf32>
    %21 = tpu.matmul %18, %20, %cst_23 {dimension_numbers = #tpu.dot_dimension_numbers<[1], [0], [0], [1], [0, 0, 1, 1], [], []>} : vector<28x28xf32>, vector<28x112xf32>, vector<28x112xf32> -> vector<28x112xf32>
    %22 = arith.addf %15, %21 : vector<28x112xf32>
    %cst_24 = arith.constant 0.000000e+00 : f32
    %23 = vector.broadcast %cst_24 : f32 to vector<28x112xf32>
    %24 = arith.maximumf %22, %23 : vector<28x112xf32>
    %c0_25 = arith.constant 0 : index
    %c0_26 = arith.constant 0 : index
    %25 = vector.load %arg7[%c0_25, %c0_26] : memref<14x112xf32, #tpu.memory_space<vmem>>, vector<14x112xf32>
    %c0_27 = arith.constant 0 : index
    %c0_28 = arith.constant 0 : index
    %c0_29 = arith.constant 0 : index
    %26 = vector.load %arg5[%c0_27, %c0_28, %c0_29] : memref<3x14x28xf32, #tpu.memory_space<vmem>>, vector<1x14x28xf32>
    %27 = vector.shape_cast %26 : vector<1x14x28xf32> to vector<14x28xf32>
    %cst_30 = arith.constant dense<0.000000e+00> : vector<14x112xf32>
    %28 = tpu.matmul %27, %24, %cst_30 {dimension_numbers = #tpu.dot_dimension_numbers<[1], [0], [0], [1], [0, 0, 1, 1], [], []>} : vector<14x28xf32>, vector<28x112xf32>, vector<14x112xf32> -> vector<14x112xf32>
    %c0_31 = arith.constant 0 : index
    %c0_32 = arith.constant 0 : index
    %c0_33 = arith.constant 0 : index
    %29 = vector.load %arg6[%c0_31, %c0_32, %c0_33] : memref<3x112x112xf32, #tpu.memory_space<vmem>>, vector<1x112x112xf32>
    %30 = vector.shape_cast %29 : vector<1x112x112xf32> to vector<112x112xf32>
    %cst_34 = arith.constant dense<0.000000e+00> : vector<14x112xf32>
    %31 = tpu.matmul %28, %30, %cst_34 {dimension_numbers = #tpu.dot_dimension_numbers<[1], [0], [0], [1], [0, 0, 1, 1], [], []>} : vector<14x112xf32>, vector<112x112xf32>, vector<14x112xf32> -> vector<14x112xf32>
    %32 = arith.addf %25, %31 : vector<14x112xf32>
    %c1_35 = arith.constant 1 : index
    %c0_36 = arith.constant 0 : index
    %c0_37 = arith.constant 0 : index
    %33 = vector.load %arg5[%c1_35, %c0_36, %c0_37] : memref<3x14x28xf32, #tpu.memory_space<vmem>>, vector<1x14x28xf32>
    %34 = vector.shape_cast %33 : vector<1x14x28xf32> to vector<14x28xf32>
    %cst_38 = arith.constant dense<0.000000e+00> : vector<14x112xf32>
    %35 = tpu.matmul %34, %24, %cst_38 {dimension_numbers = #tpu.dot_dimension_numbers<[1], [0], [0], [1], [0, 0, 1, 1], [], []>} : vector<14x28xf32>, vector<28x112xf32>, vector<14x112xf32> -> vector<14x112xf32>
    %c1_39 = arith.constant 1 : index
    %c0_40 = arith.constant 0 : index
    %c0_41 = arith.constant 0 : index
    %36 = vector.load %arg6[%c1_39, %c0_40, %c0_41] : memref<3x112x112xf32, #tpu.memory_space<vmem>>, vector<1x112x112xf32>
    %37 = vector.shape_cast %36 : vector<1x112x112xf32> to vector<112x112xf32>
    %cst_42 = arith.constant dense<0.000000e+00> : vector<14x112xf32>
    %38 = tpu.matmul %35, %37, %cst_42 {dimension_numbers = #tpu.dot_dimension_numbers<[1], [0], [0], [1], [0, 0, 1, 1], [], []>} : vector<14x112xf32>, vector<112x112xf32>, vector<14x112xf32> -> vector<14x112xf32>
    %39 = arith.addf %32, %38 : vector<14x112xf32>
    %c2_43 = arith.constant 2 : index
    %c0_44 = arith.constant 0 : index
    %c0_45 = arith.constant 0 : index
    %40 = vector.load %arg5[%c2_43, %c0_44, %c0_45] : memref<3x14x28xf32, #tpu.memory_space<vmem>>, vector<1x14x28xf32>
    %41 = vector.shape_cast %40 : vector<1x14x28xf32> to vector<14x28xf32>
    %cst_46 = arith.constant dense<0.000000e+00> : vector<14x112xf32>
    %42 = tpu.matmul %41, %24, %cst_46 {dimension_numbers = #tpu.dot_dimension_numbers<[1], [0], [0], [1], [0, 0, 1, 1], [], []>} : vector<14x28xf32>, vector<28x112xf32>, vector<14x112xf32> -> vector<14x112xf32>
    %c2_47 = arith.constant 2 : index
    %c0_48 = arith.constant 0 : index
    %c0_49 = arith.constant 0 : index
    %43 = vector.load %arg6[%c2_47, %c0_48, %c0_49] : memref<3x112x112xf32, #tpu.memory_space<vmem>>, vector<1x112x112xf32>
    %44 = vector.shape_cast %43 : vector<1x112x112xf32> to vector<112x112xf32>
    %cst_50 = arith.constant dense<0.000000e+00> : vector<14x112xf32>
    %45 = tpu.matmul %42, %44, %cst_50 {dimension_numbers = #tpu.dot_dimension_numbers<[1], [0], [0], [1], [0, 0, 1, 1], [], []>} : vector<14x112xf32>, vector<112x112xf32>, vector<14x112xf32> -> vector<14x112xf32>
    %46 = arith.addf %39, %45 : vector<14x112xf32>
    %cst_51 = arith.constant 0.000000e+00 : f32
    %47 = vector.broadcast %cst_51 : f32 to vector<14x112xf32>
    %48 = arith.maximumf %46, %47 : vector<14x112xf32>
    %c0_52 = arith.constant 0 : index
    %c0_53 = arith.constant 0 : index
    %49 = vector.load %arg10[%c0_52, %c0_53] : memref<6x96xf32, #tpu.memory_space<vmem>>, vector<6x96xf32>
    %c0_54 = arith.constant 0 : index
    %c0_55 = arith.constant 0 : index
    %c0_56 = arith.constant 0 : index
    %50 = vector.load %arg8[%c0_54, %c0_55, %c0_56] : memref<3x6x14xf32, #tpu.memory_space<vmem>>, vector<1x6x14xf32>
    %51 = vector.shape_cast %50 : vector<1x6x14xf32> to vector<6x14xf32>
    %cst_57 = arith.constant dense<0.000000e+00> : vector<6x112xf32>
    %52 = tpu.matmul %51, %48, %cst_57 {dimension_numbers = #tpu.dot_dimension_numbers<[1], [0], [0], [1], [0, 0, 1, 1], [], []>} : vector<6x14xf32>, vector<14x112xf32>, vector<6x112xf32> -> vector<6x112xf32>
    %c0_58 = arith.constant 0 : index
    %c0_59 = arith.constant 0 : index
    %c0_60 = arith.constant 0 : index
    %53 = vector.load %arg9[%c0_58, %c0_59, %c0_60] : memref<3x112x96xf32, #tpu.memory_space<vmem>>, vector<1x112x96xf32>
    %54 = vector.shape_cast %53 : vector<1x112x96xf32> to vector<112x96xf32>
    %cst_61 = arith.constant dense<0.000000e+00> : vector<6x96xf32>
    %55 = tpu.matmul %52, %54, %cst_61 {dimension_numbers = #tpu.dot_dimension_numbers<[1], [0], [0], [1], [0, 0, 1, 1], [], []>} : vector<6x112xf32>, vector<112x96xf32>, vector<6x96xf32> -> vector<6x96xf32>
    %56 = arith.addf %49, %55 : vector<6x96xf32>
    %c1_62 = arith.constant 1 : index
    %c0_63 = arith.constant 0 : index
    %c0_64 = arith.constant 0 : index
    %57 = vector.load %arg8[%c1_62, %c0_63, %c0_64] : memref<3x6x14xf32, #tpu.memory_space<vmem>>, vector<1x6x14xf32>
    %58 = vector.shape_cast %57 : vector<1x6x14xf32> to vector<6x14xf32>
    %cst_65 = arith.constant dense<0.000000e+00> : vector<6x112xf32>
    %59 = tpu.matmul %58, %48, %cst_65 {dimension_numbers = #tpu.dot_dimension_numbers<[1], [0], [0], [1], [0, 0, 1, 1], [], []>} : vector<6x14xf32>, vector<14x112xf32>, vector<6x112xf32> -> vector<6x112xf32>
    %c1_66 = arith.constant 1 : index
    %c0_67 = arith.constant 0 : index
    %c0_68 = arith.constant 0 : index
    %60 = vector.load %arg9[%c1_66, %c0_67, %c0_68] : memref<3x112x96xf32, #tpu.memory_space<vmem>>, vector<1x112x96xf32>
    %61 = vector.shape_cast %60 : vector<1x112x96xf32> to vector<112x96xf32>
    %cst_69 = arith.constant dense<0.000000e+00> : vector<6x96xf32>
    %62 = tpu.matmul %59, %61, %cst_69 {dimension_numbers = #tpu.dot_dimension_numbers<[1], [0], [0], [1], [0, 0, 1, 1], [], []>} : vector<6x112xf32>, vector<112x96xf32>, vector<6x96xf32> -> vector<6x96xf32>
    %63 = arith.addf %56, %62 : vector<6x96xf32>
    %c2_70 = arith.constant 2 : index
    %c0_71 = arith.constant 0 : index
    %c0_72 = arith.constant 0 : index
    %64 = vector.load %arg8[%c2_70, %c0_71, %c0_72] : memref<3x6x14xf32, #tpu.memory_space<vmem>>, vector<1x6x14xf32>
    %65 = vector.shape_cast %64 : vector<1x6x14xf32> to vector<6x14xf32>
    %cst_73 = arith.constant dense<0.000000e+00> : vector<6x112xf32>
    %66 = tpu.matmul %65, %48, %cst_73 {dimension_numbers = #tpu.dot_dimension_numbers<[1], [0], [0], [1], [0, 0, 1, 1], [], []>} : vector<6x14xf32>, vector<14x112xf32>, vector<6x112xf32> -> vector<6x112xf32>
    %c2_74 = arith.constant 2 : index
    %c0_75 = arith.constant 0 : index
    %c0_76 = arith.constant 0 : index
    %67 = vector.load %arg9[%c2_74, %c0_75, %c0_76] : memref<3x112x96xf32, #tpu.memory_space<vmem>>, vector<1x112x96xf32>
    %68 = vector.shape_cast %67 : vector<1x112x96xf32> to vector<112x96xf32>
    %cst_77 = arith.constant dense<0.000000e+00> : vector<6x96xf32>
    %69 = tpu.matmul %66, %68, %cst_77 {dimension_numbers = #tpu.dot_dimension_numbers<[1], [0], [0], [1], [0, 0, 1, 1], [], []>} : vector<6x112xf32>, vector<112x96xf32>, vector<6x96xf32> -> vector<6x96xf32>
    %70 = arith.addf %63, %69 : vector<6x96xf32>
    %cst_78 = arith.constant 0.000000e+00 : f32
    %71 = vector.broadcast %cst_78 : f32 to vector<6x96xf32>
    %72 = arith.maximumf %70, %71 : vector<6x96xf32>
    %c0_79 = arith.constant 0 : index
    %c0_80 = arith.constant 0 : index
    %73 = vector.load %arg13[%c0_79, %c0_80] : memref<2x64xf32, #tpu.memory_space<vmem>>, vector<2x64xf32>
    %c0_81 = arith.constant 0 : index
    %c0_82 = arith.constant 0 : index
    %c0_83 = arith.constant 0 : index
    %74 = vector.load %arg11[%c0_81, %c0_82, %c0_83] : memref<3x2x6xf32, #tpu.memory_space<vmem>>, vector<1x2x6xf32>
    %75 = vector.shape_cast %74 : vector<1x2x6xf32> to vector<2x6xf32>
    %cst_84 = arith.constant dense<0.000000e+00> : vector<2x96xf32>
    %76 = tpu.matmul %75, %72, %cst_84 {dimension_numbers = #tpu.dot_dimension_numbers<[1], [0], [0], [1], [0, 0, 1, 1], [], []>} : vector<2x6xf32>, vector<6x96xf32>, vector<2x96xf32> -> vector<2x96xf32>
    %c0_85 = arith.constant 0 : index
    %c0_86 = arith.constant 0 : index
    %c0_87 = arith.constant 0 : index
    %77 = vector.load %arg12[%c0_85, %c0_86, %c0_87] : memref<3x96x64xf32, #tpu.memory_space<vmem>>, vector<1x96x64xf32>
    %78 = vector.shape_cast %77 : vector<1x96x64xf32> to vector<96x64xf32>
    %cst_88 = arith.constant dense<0.000000e+00> : vector<2x64xf32>
    %79 = tpu.matmul %76, %78, %cst_88 {dimension_numbers = #tpu.dot_dimension_numbers<[1], [0], [0], [1], [0, 0, 1, 1], [], []>} : vector<2x96xf32>, vector<96x64xf32>, vector<2x64xf32> -> vector<2x64xf32>
    %80 = arith.addf %73, %79 : vector<2x64xf32>
    %c1_89 = arith.constant 1 : index
    %c0_90 = arith.constant 0 : index
    %c0_91 = arith.constant 0 : index
    %81 = vector.load %arg11[%c1_89, %c0_90, %c0_91] : memref<3x2x6xf32, #tpu.memory_space<vmem>>, vector<1x2x6xf32>
    %82 = vector.shape_cast %81 : vector<1x2x6xf32> to vector<2x6xf32>
    %cst_92 = arith.constant dense<0.000000e+00> : vector<2x96xf32>
    %83 = tpu.matmul %82, %72, %cst_92 {dimension_numbers = #tpu.dot_dimension_numbers<[1], [0], [0], [1], [0, 0, 1, 1], [], []>} : vector<2x6xf32>, vector<6x96xf32>, vector<2x96xf32> -> vector<2x96xf32>
    %c1_93 = arith.constant 1 : index
    %c0_94 = arith.constant 0 : index
    %c0_95 = arith.constant 0 : index
    %84 = vector.load %arg12[%c1_93, %c0_94, %c0_95] : memref<3x96x64xf32, #tpu.memory_space<vmem>>, vector<1x96x64xf32>
    %85 = vector.shape_cast %84 : vector<1x96x64xf32> to vector<96x64xf32>
    %cst_96 = arith.constant dense<0.000000e+00> : vector<2x64xf32>
    %86 = tpu.matmul %83, %85, %cst_96 {dimension_numbers = #tpu.dot_dimension_numbers<[1], [0], [0], [1], [0, 0, 1, 1], [], []>} : vector<2x96xf32>, vector<96x64xf32>, vector<2x64xf32> -> vector<2x64xf32>
    %87 = arith.addf %80, %86 : vector<2x64xf32>
    %c2_97 = arith.constant 2 : index
    %c0_98 = arith.constant 0 : index
    %c0_99 = arith.constant 0 : index
    %88 = vector.load %arg11[%c2_97, %c0_98, %c0_99] : memref<3x2x6xf32, #tpu.memory_space<vmem>>, vector<1x2x6xf32>
    %89 = vector.shape_cast %88 : vector<1x2x6xf32> to vector<2x6xf32>
    %cst_100 = arith.constant dense<0.000000e+00> : vector<2x96xf32>
    %90 = tpu.matmul %89, %72, %cst_100 {dimension_numbers = #tpu.dot_dimension_numbers<[1], [0], [0], [1], [0, 0, 1, 1], [], []>} : vector<2x6xf32>, vector<6x96xf32>, vector<2x96xf32> -> vector<2x96xf32>
    %c2_101 = arith.constant 2 : index
    %c0_102 = arith.constant 0 : index
    %c0_103 = arith.constant 0 : index
    %91 = vector.load %arg12[%c2_101, %c0_102, %c0_103] : memref<3x96x64xf32, #tpu.memory_space<vmem>>, vector<1x96x64xf32>
    %92 = vector.shape_cast %91 : vector<1x96x64xf32> to vector<96x64xf32>
    %cst_104 = arith.constant dense<0.000000e+00> : vector<2x64xf32>
    %93 = tpu.matmul %90, %92, %cst_104 {dimension_numbers = #tpu.dot_dimension_numbers<[1], [0], [0], [1], [0, 0, 1, 1], [], []>} : vector<2x96xf32>, vector<96x64xf32>, vector<2x64xf32> -> vector<2x64xf32>
    %94 = arith.addf %87, %93 : vector<2x64xf32>
    %cst_105 = arith.constant 0.000000e+00 : f32
    %95 = vector.broadcast %cst_105 : f32 to vector<2x64xf32>
    %96 = arith.maximumf %94, %95 : vector<2x64xf32>
    %c0_106 = arith.constant 0 : index
    %c0_107 = arith.constant 0 : index
    %97 = vector.load %arg16[%c0_106, %c0_107] : memref<2x8xf32, #tpu.memory_space<vmem>>, vector<2x8xf32>
    %c0_108 = arith.constant 0 : index
    %c0_109 = arith.constant 0 : index
    %c0_110 = arith.constant 0 : index
    %98 = vector.load %arg14[%c0_108, %c0_109, %c0_110] : memref<1x2x2xf32, #tpu.memory_space<vmem>>, vector<1x2x2xf32>
    %99 = vector.shape_cast %98 : vector<1x2x2xf32> to vector<2x2xf32>
    %cst_111 = arith.constant dense<0.000000e+00> : vector<2x64xf32>
    %100 = tpu.matmul %99, %96, %cst_111 {dimension_numbers = #tpu.dot_dimension_numbers<[1], [0], [0], [1], [0, 0, 1, 1], [], []>} : vector<2x2xf32>, vector<2x64xf32>, vector<2x64xf32> -> vector<2x64xf32>
    %c0_112 = arith.constant 0 : index
    %c0_113 = arith.constant 0 : index
    %c0_114 = arith.constant 0 : index
    %101 = vector.load %arg15[%c0_112, %c0_113, %c0_114] : memref<1x64x8xf32, #tpu.memory_space<vmem>>, vector<1x64x8xf32>
    %102 = vector.shape_cast %101 : vector<1x64x8xf32> to vector<64x8xf32>
    %cst_115 = arith.constant dense<0.000000e+00> : vector<2x8xf32>
    %103 = tpu.matmul %100, %102, %cst_115 {dimension_numbers = #tpu.dot_dimension_numbers<[1], [0], [0], [1], [0, 0, 1, 1], [], []>} : vector<2x64xf32>, vector<64x8xf32>, vector<2x8xf32> -> vector<2x8xf32>
    %104 = arith.addf %97, %103 : vector<2x8xf32>
    %c0_116 = arith.constant 0 : index
    %c0_117 = arith.constant 0 : index
    %105 = vector.load %arg19[%c0_116, %c0_117] : memref<2x64xf32, #tpu.memory_space<vmem>>, vector<2x64xf32>
    %c0_118 = arith.constant 0 : index
    %c0_119 = arith.constant 0 : index
    %c0_120 = arith.constant 0 : index
    %106 = vector.load %arg17[%c0_118, %c0_119, %c0_120] : memref<1x2x2xf32, #tpu.memory_space<vmem>>, vector<1x2x2xf32>
    %107 = vector.shape_cast %106 : vector<1x2x2xf32> to vector<2x2xf32>
    %cst_121 = arith.constant dense<0.000000e+00> : vector<2x8xf32>
    %108 = tpu.matmul %107, %104, %cst_121 {dimension_numbers = #tpu.dot_dimension_numbers<[1], [0], [0], [1], [0, 0, 1, 1], [], []>} : vector<2x2xf32>, vector<2x8xf32>, vector<2x8xf32> -> vector<2x8xf32>
    %c0_122 = arith.constant 0 : index
    %c0_123 = arith.constant 0 : index
    %c0_124 = arith.constant 0 : index
    %109 = vector.load %arg18[%c0_122, %c0_123, %c0_124] : memref<1x8x64xf32, #tpu.memory_space<vmem>>, vector<1x8x64xf32>
    %110 = vector.shape_cast %109 : vector<1x8x64xf32> to vector<8x64xf32>
    %cst_125 = arith.constant dense<0.000000e+00> : vector<2x64xf32>
    %111 = tpu.matmul %108, %110, %cst_125 {dimension_numbers = #tpu.dot_dimension_numbers<[1], [0], [0], [1], [0, 0, 1, 1], [], []>} : vector<2x8xf32>, vector<8x64xf32>, vector<2x64xf32> -> vector<2x64xf32>
    %112 = arith.addf %105, %111 : vector<2x64xf32>
    %cst_126 = arith.constant 0.000000e+00 : f32
    %113 = vector.broadcast %cst_126 : f32 to vector<2x64xf32>
    %114 = arith.maximumf %112, %113 : vector<2x64xf32>
    %c0_127 = arith.constant 0 : index
    %c0_128 = arith.constant 0 : index
    %115 = vector.load %arg22[%c0_127, %c0_128] : memref<6x96xf32, #tpu.memory_space<vmem>>, vector<6x96xf32>
    %c0_129 = arith.constant 0 : index
    %c0_130 = arith.constant 0 : index
    %c0_131 = arith.constant 0 : index
    %116 = vector.load %arg20[%c0_129, %c0_130, %c0_131] : memref<3x6x2xf32, #tpu.memory_space<vmem>>, vector<1x6x2xf32>
    %117 = vector.shape_cast %116 : vector<1x6x2xf32> to vector<6x2xf32>
    %cst_132 = arith.constant dense<0.000000e+00> : vector<6x64xf32>
    %118 = tpu.matmul %117, %114, %cst_132 {dimension_numbers = #tpu.dot_dimension_numbers<[1], [0], [0], [1], [0, 0, 1, 1], [], []>} : vector<6x2xf32>, vector<2x64xf32>, vector<6x64xf32> -> vector<6x64xf32>
    %c0_133 = arith.constant 0 : index
    %c0_134 = arith.constant 0 : index
    %c0_135 = arith.constant 0 : index
    %119 = vector.load %arg21[%c0_133, %c0_134, %c0_135] : memref<3x64x96xf32, #tpu.memory_space<vmem>>, vector<1x64x96xf32>
    %120 = vector.shape_cast %119 : vector<1x64x96xf32> to vector<64x96xf32>
    %cst_136 = arith.constant dense<0.000000e+00> : vector<6x96xf32>
    %121 = tpu.matmul %118, %120, %cst_136 {dimension_numbers = #tpu.dot_dimension_numbers<[1], [0], [0], [1], [0, 0, 1, 1], [], []>} : vector<6x64xf32>, vector<64x96xf32>, vector<6x96xf32> -> vector<6x96xf32>
    %122 = arith.addf %115, %121 : vector<6x96xf32>
    %c1_137 = arith.constant 1 : index
    %c0_138 = arith.constant 0 : index
    %c0_139 = arith.constant 0 : index
    %123 = vector.load %arg20[%c1_137, %c0_138, %c0_139] : memref<3x6x2xf32, #tpu.memory_space<vmem>>, vector<1x6x2xf32>
    %124 = vector.shape_cast %123 : vector<1x6x2xf32> to vector<6x2xf32>
    %cst_140 = arith.constant dense<0.000000e+00> : vector<6x64xf32>
    %125 = tpu.matmul %124, %114, %cst_140 {dimension_numbers = #tpu.dot_dimension_numbers<[1], [0], [0], [1], [0, 0, 1, 1], [], []>} : vector<6x2xf32>, vector<2x64xf32>, vector<6x64xf32> -> vector<6x64xf32>
    %c1_141 = arith.constant 1 : index
    %c0_142 = arith.constant 0 : index
    %c0_143 = arith.constant 0 : index
    %126 = vector.load %arg21[%c1_141, %c0_142, %c0_143] : memref<3x64x96xf32, #tpu.memory_space<vmem>>, vector<1x64x96xf32>
    %127 = vector.shape_cast %126 : vector<1x64x96xf32> to vector<64x96xf32>
    %cst_144 = arith.constant dense<0.000000e+00> : vector<6x96xf32>
    %128 = tpu.matmul %125, %127, %cst_144 {dimension_numbers = #tpu.dot_dimension_numbers<[1], [0], [0], [1], [0, 0, 1, 1], [], []>} : vector<6x64xf32>, vector<64x96xf32>, vector<6x96xf32> -> vector<6x96xf32>
    %129 = arith.addf %122, %128 : vector<6x96xf32>
    %c2_145 = arith.constant 2 : index
    %c0_146 = arith.constant 0 : index
    %c0_147 = arith.constant 0 : index
    %130 = vector.load %arg20[%c2_145, %c0_146, %c0_147] : memref<3x6x2xf32, #tpu.memory_space<vmem>>, vector<1x6x2xf32>
    %131 = vector.shape_cast %130 : vector<1x6x2xf32> to vector<6x2xf32>
    %cst_148 = arith.constant dense<0.000000e+00> : vector<6x64xf32>
    %132 = tpu.matmul %131, %114, %cst_148 {dimension_numbers = #tpu.dot_dimension_numbers<[1], [0], [0], [1], [0, 0, 1, 1], [], []>} : vector<6x2xf32>, vector<2x64xf32>, vector<6x64xf32> -> vector<6x64xf32>
    %c2_149 = arith.constant 2 : index
    %c0_150 = arith.constant 0 : index
    %c0_151 = arith.constant 0 : index
    %133 = vector.load %arg21[%c2_149, %c0_150, %c0_151] : memref<3x64x96xf32, #tpu.memory_space<vmem>>, vector<1x64x96xf32>
    %134 = vector.shape_cast %133 : vector<1x64x96xf32> to vector<64x96xf32>
    %cst_152 = arith.constant dense<0.000000e+00> : vector<6x96xf32>
    %135 = tpu.matmul %132, %134, %cst_152 {dimension_numbers = #tpu.dot_dimension_numbers<[1], [0], [0], [1], [0, 0, 1, 1], [], []>} : vector<6x64xf32>, vector<64x96xf32>, vector<6x96xf32> -> vector<6x96xf32>
    %136 = arith.addf %129, %135 : vector<6x96xf32>
    %cst_153 = arith.constant 0.000000e+00 : f32
    %137 = vector.broadcast %cst_153 : f32 to vector<6x96xf32>
    %138 = arith.maximumf %136, %137 : vector<6x96xf32>
    %c0_154 = arith.constant 0 : index
    %c0_155 = arith.constant 0 : index
    %139 = vector.load %arg25[%c0_154, %c0_155] : memref<14x112xf32, #tpu.memory_space<vmem>>, vector<14x112xf32>
    %c0_156 = arith.constant 0 : index
    %c0_157 = arith.constant 0 : index
    %c0_158 = arith.constant 0 : index
    %140 = vector.load %arg23[%c0_156, %c0_157, %c0_158] : memref<3x14x6xf32, #tpu.memory_space<vmem>>, vector<1x14x6xf32>
    %141 = vector.shape_cast %140 : vector<1x14x6xf32> to vector<14x6xf32>
    %cst_159 = arith.constant dense<0.000000e+00> : vector<14x96xf32>
    %142 = tpu.matmul %141, %138, %cst_159 {dimension_numbers = #tpu.dot_dimension_numbers<[1], [0], [0], [1], [0, 0, 1, 1], [], []>} : vector<14x6xf32>, vector<6x96xf32>, vector<14x96xf32> -> vector<14x96xf32>
    %c0_160 = arith.constant 0 : index
    %c0_161 = arith.constant 0 : index
    %c0_162 = arith.constant 0 : index
    %143 = vector.load %arg24[%c0_160, %c0_161, %c0_162] : memref<3x96x112xf32, #tpu.memory_space<vmem>>, vector<1x96x112xf32>
    %144 = vector.shape_cast %143 : vector<1x96x112xf32> to vector<96x112xf32>
    %cst_163 = arith.constant dense<0.000000e+00> : vector<14x112xf32>
    %145 = tpu.matmul %142, %144, %cst_163 {dimension_numbers = #tpu.dot_dimension_numbers<[1], [0], [0], [1], [0, 0, 1, 1], [], []>} : vector<14x96xf32>, vector<96x112xf32>, vector<14x112xf32> -> vector<14x112xf32>
    %146 = arith.addf %139, %145 : vector<14x112xf32>
    %c1_164 = arith.constant 1 : index
    %c0_165 = arith.constant 0 : index
    %c0_166 = arith.constant 0 : index
    %147 = vector.load %arg23[%c1_164, %c0_165, %c0_166] : memref<3x14x6xf32, #tpu.memory_space<vmem>>, vector<1x14x6xf32>
    %148 = vector.shape_cast %147 : vector<1x14x6xf32> to vector<14x6xf32>
    %cst_167 = arith.constant dense<0.000000e+00> : vector<14x96xf32>
    %149 = tpu.matmul %148, %138, %cst_167 {dimension_numbers = #tpu.dot_dimension_numbers<[1], [0], [0], [1], [0, 0, 1, 1], [], []>} : vector<14x6xf32>, vector<6x96xf32>, vector<14x96xf32> -> vector<14x96xf32>
    %c1_168 = arith.constant 1 : index
    %c0_169 = arith.constant 0 : index
    %c0_170 = arith.constant 0 : index
    %150 = vector.load %arg24[%c1_168, %c0_169, %c0_170] : memref<3x96x112xf32, #tpu.memory_space<vmem>>, vector<1x96x112xf32>
    %151 = vector.shape_cast %150 : vector<1x96x112xf32> to vector<96x112xf32>
    %cst_171 = arith.constant dense<0.000000e+00> : vector<14x112xf32>
    %152 = tpu.matmul %149, %151, %cst_171 {dimension_numbers = #tpu.dot_dimension_numbers<[1], [0], [0], [1], [0, 0, 1, 1], [], []>} : vector<14x96xf32>, vector<96x112xf32>, vector<14x112xf32> -> vector<14x112xf32>
    %153 = arith.addf %146, %152 : vector<14x112xf32>
    %c2_172 = arith.constant 2 : index
    %c0_173 = arith.constant 0 : index
    %c0_174 = arith.constant 0 : index
    %154 = vector.load %arg23[%c2_172, %c0_173, %c0_174] : memref<3x14x6xf32, #tpu.memory_space<vmem>>, vector<1x14x6xf32>
    %155 = vector.shape_cast %154 : vector<1x14x6xf32> to vector<14x6xf32>
    %cst_175 = arith.constant dense<0.000000e+00> : vector<14x96xf32>
    %156 = tpu.matmul %155, %138, %cst_175 {dimension_numbers = #tpu.dot_dimension_numbers<[1], [0], [0], [1], [0, 0, 1, 1], [], []>} : vector<14x6xf32>, vector<6x96xf32>, vector<14x96xf32> -> vector<14x96xf32>
    %c2_176 = arith.constant 2 : index
    %c0_177 = arith.constant 0 : index
    %c0_178 = arith.constant 0 : index
    %157 = vector.load %arg24[%c2_176, %c0_177, %c0_178] : memref<3x96x112xf32, #tpu.memory_space<vmem>>, vector<1x96x112xf32>
    %158 = vector.shape_cast %157 : vector<1x96x112xf32> to vector<96x112xf32>
    %cst_179 = arith.constant dense<0.000000e+00> : vector<14x112xf32>
    %159 = tpu.matmul %156, %158, %cst_179 {dimension_numbers = #tpu.dot_dimension_numbers<[1], [0], [0], [1], [0, 0, 1, 1], [], []>} : vector<14x96xf32>, vector<96x112xf32>, vector<14x112xf32> -> vector<14x112xf32>
    %160 = arith.addf %153, %159 : vector<14x112xf32>
    %cst_180 = arith.constant 0.000000e+00 : f32
    %161 = vector.broadcast %cst_180 : f32 to vector<14x112xf32>
    %162 = arith.maximumf %160, %161 : vector<14x112xf32>
    %c0_181 = arith.constant 0 : index
    %c0_182 = arith.constant 0 : index
    %163 = vector.load %arg28[%c0_181, %c0_182] : memref<28x112xf32, #tpu.memory_space<vmem>>, vector<28x112xf32>
    %c0_183 = arith.constant 0 : index
    %c0_184 = arith.constant 0 : index
    %c0_185 = arith.constant 0 : index
    %164 = vector.load %arg26[%c0_183, %c0_184, %c0_185] : memref<3x28x14xf32, #tpu.memory_space<vmem>>, vector<1x28x14xf32>
    %165 = vector.shape_cast %164 : vector<1x28x14xf32> to vector<28x14xf32>
    %cst_186 = arith.constant dense<0.000000e+00> : vector<28x112xf32>
    %166 = tpu.matmul %165, %162, %cst_186 {dimension_numbers = #tpu.dot_dimension_numbers<[1], [0], [0], [1], [0, 0, 1, 1], [], []>} : vector<28x14xf32>, vector<14x112xf32>, vector<28x112xf32> -> vector<28x112xf32>
    %c0_187 = arith.constant 0 : index
    %c0_188 = arith.constant 0 : index
    %c0_189 = arith.constant 0 : index
    %167 = vector.load %arg27[%c0_187, %c0_188, %c0_189] : memref<3x112x112xf32, #tpu.memory_space<vmem>>, vector<1x112x112xf32>
    %168 = vector.shape_cast %167 : vector<1x112x112xf32> to vector<112x112xf32>
    %cst_190 = arith.constant dense<0.000000e+00> : vector<28x112xf32>
    %169 = tpu.matmul %166, %168, %cst_190 {dimension_numbers = #tpu.dot_dimension_numbers<[1], [0], [0], [1], [0, 0, 1, 1], [], []>} : vector<28x112xf32>, vector<112x112xf32>, vector<28x112xf32> -> vector<28x112xf32>
    %170 = arith.addf %163, %169 : vector<28x112xf32>
    %c1_191 = arith.constant 1 : index
    %c0_192 = arith.constant 0 : index
    %c0_193 = arith.constant 0 : index
    %171 = vector.load %arg26[%c1_191, %c0_192, %c0_193] : memref<3x28x14xf32, #tpu.memory_space<vmem>>, vector<1x28x14xf32>
    %172 = vector.shape_cast %171 : vector<1x28x14xf32> to vector<28x14xf32>
    %cst_194 = arith.constant dense<0.000000e+00> : vector<28x112xf32>
    %173 = tpu.matmul %172, %162, %cst_194 {dimension_numbers = #tpu.dot_dimension_numbers<[1], [0], [0], [1], [0, 0, 1, 1], [], []>} : vector<28x14xf32>, vector<14x112xf32>, vector<28x112xf32> -> vector<28x112xf32>
    %c1_195 = arith.constant 1 : index
    %c0_196 = arith.constant 0 : index
    %c0_197 = arith.constant 0 : index
    %174 = vector.load %arg27[%c1_195, %c0_196, %c0_197] : memref<3x112x112xf32, #tpu.memory_space<vmem>>, vector<1x112x112xf32>
    %175 = vector.shape_cast %174 : vector<1x112x112xf32> to vector<112x112xf32>
    %cst_198 = arith.constant dense<0.000000e+00> : vector<28x112xf32>
    %176 = tpu.matmul %173, %175, %cst_198 {dimension_numbers = #tpu.dot_dimension_numbers<[1], [0], [0], [1], [0, 0, 1, 1], [], []>} : vector<28x112xf32>, vector<112x112xf32>, vector<28x112xf32> -> vector<28x112xf32>
    %177 = arith.addf %170, %176 : vector<28x112xf32>
    %c2_199 = arith.constant 2 : index
    %c0_200 = arith.constant 0 : index
    %c0_201 = arith.constant 0 : index
    %178 = vector.load %arg26[%c2_199, %c0_200, %c0_201] : memref<3x28x14xf32, #tpu.memory_space<vmem>>, vector<1x28x14xf32>
    %179 = vector.shape_cast %178 : vector<1x28x14xf32> to vector<28x14xf32>
    %cst_202 = arith.constant dense<0.000000e+00> : vector<28x112xf32>
    %180 = tpu.matmul %179, %162, %cst_202 {dimension_numbers = #tpu.dot_dimension_numbers<[1], [0], [0], [1], [0, 0, 1, 1], [], []>} : vector<28x14xf32>, vector<14x112xf32>, vector<28x112xf32> -> vector<28x112xf32>
    %c2_203 = arith.constant 2 : index
    %c0_204 = arith.constant 0 : index
    %c0_205 = arith.constant 0 : index
    %181 = vector.load %arg27[%c2_203, %c0_204, %c0_205] : memref<3x112x112xf32, #tpu.memory_space<vmem>>, vector<1x112x112xf32>
    %182 = vector.shape_cast %181 : vector<1x112x112xf32> to vector<112x112xf32>
    %cst_206 = arith.constant dense<0.000000e+00> : vector<28x112xf32>
    %183 = tpu.matmul %180, %182, %cst_206 {dimension_numbers = #tpu.dot_dimension_numbers<[1], [0], [0], [1], [0, 0, 1, 1], [], []>} : vector<28x112xf32>, vector<112x112xf32>, vector<28x112xf32> -> vector<28x112xf32>
    %184 = arith.addf %177, %183 : vector<28x112xf32>
    %cst_207 = arith.constant 0.000000e+00 : f32
    %185 = vector.broadcast %cst_207 : f32 to vector<28x112xf32>
    %186 = arith.maximumf %184, %185 : vector<28x112xf32>
    %c0_208 = arith.constant 0 : index
    %c0_209 = arith.constant 0 : index
    %187 = vector.load %arg31[%c0_208, %c0_209] : memref<56x28xf32, #tpu.memory_space<vmem>>, vector<56x28xf32>
    %c0_210 = arith.constant 0 : index
    %c0_211 = arith.constant 0 : index
    %c0_212 = arith.constant 0 : index
    %188 = vector.load %arg29[%c0_210, %c0_211, %c0_212] : memref<3x56x28xf32, #tpu.memory_space<vmem>>, vector<1x56x28xf32>
    %189 = vector.shape_cast %188 : vector<1x56x28xf32> to vector<56x28xf32>
    %cst_213 = arith.constant dense<0.000000e+00> : vector<56x112xf32>
    %190 = tpu.matmul %189, %186, %cst_213 {dimension_numbers = #tpu.dot_dimension_numbers<[1], [0], [0], [1], [0, 0, 1, 1], [], []>} : vector<56x28xf32>, vector<28x112xf32>, vector<56x112xf32> -> vector<56x112xf32>
    %c0_214 = arith.constant 0 : index
    %c0_215 = arith.constant 0 : index
    %c0_216 = arith.constant 0 : index
    %191 = vector.load %arg30[%c0_214, %c0_215, %c0_216] : memref<3x112x28xf32, #tpu.memory_space<vmem>>, vector<1x112x28xf32>
    %192 = vector.shape_cast %191 : vector<1x112x28xf32> to vector<112x28xf32>
    %cst_217 = arith.constant dense<0.000000e+00> : vector<56x28xf32>
    %193 = tpu.matmul %190, %192, %cst_217 {dimension_numbers = #tpu.dot_dimension_numbers<[1], [0], [0], [1], [0, 0, 1, 1], [], []>} : vector<56x112xf32>, vector<112x28xf32>, vector<56x28xf32> -> vector<56x28xf32>
    %194 = arith.addf %187, %193 : vector<56x28xf32>
    %c1_218 = arith.constant 1 : index
    %c0_219 = arith.constant 0 : index
    %c0_220 = arith.constant 0 : index
    %195 = vector.load %arg29[%c1_218, %c0_219, %c0_220] : memref<3x56x28xf32, #tpu.memory_space<vmem>>, vector<1x56x28xf32>
    %196 = vector.shape_cast %195 : vector<1x56x28xf32> to vector<56x28xf32>
    %cst_221 = arith.constant dense<0.000000e+00> : vector<56x112xf32>
    %197 = tpu.matmul %196, %186, %cst_221 {dimension_numbers = #tpu.dot_dimension_numbers<[1], [0], [0], [1], [0, 0, 1, 1], [], []>} : vector<56x28xf32>, vector<28x112xf32>, vector<56x112xf32> -> vector<56x112xf32>
    %c1_222 = arith.constant 1 : index
    %c0_223 = arith.constant 0 : index
    %c0_224 = arith.constant 0 : index
    %198 = vector.load %arg30[%c1_222, %c0_223, %c0_224] : memref<3x112x28xf32, #tpu.memory_space<vmem>>, vector<1x112x28xf32>
    %199 = vector.shape_cast %198 : vector<1x112x28xf32> to vector<112x28xf32>
    %cst_225 = arith.constant dense<0.000000e+00> : vector<56x28xf32>
    %200 = tpu.matmul %197, %199, %cst_225 {dimension_numbers = #tpu.dot_dimension_numbers<[1], [0], [0], [1], [0, 0, 1, 1], [], []>} : vector<56x112xf32>, vector<112x28xf32>, vector<56x28xf32> -> vector<56x28xf32>
    %201 = arith.addf %194, %200 : vector<56x28xf32>
    %c2_226 = arith.constant 2 : index
    %c0_227 = arith.constant 0 : index
    %c0_228 = arith.constant 0 : index
    %202 = vector.load %arg29[%c2_226, %c0_227, %c0_228] : memref<3x56x28xf32, #tpu.memory_space<vmem>>, vector<1x56x28xf32>
    %203 = vector.shape_cast %202 : vector<1x56x28xf32> to vector<56x28xf32>
    %cst_229 = arith.constant dense<0.000000e+00> : vector<56x112xf32>
    %204 = tpu.matmul %203, %186, %cst_229 {dimension_numbers = #tpu.dot_dimension_numbers<[1], [0], [0], [1], [0, 0, 1, 1], [], []>} : vector<56x28xf32>, vector<28x112xf32>, vector<56x112xf32> -> vector<56x112xf32>
    %c2_230 = arith.constant 2 : index
    %c0_231 = arith.constant 0 : index
    %c0_232 = arith.constant 0 : index
    %205 = vector.load %arg30[%c2_230, %c0_231, %c0_232] : memref<3x112x28xf32, #tpu.memory_space<vmem>>, vector<1x112x28xf32>
    %206 = vector.shape_cast %205 : vector<1x112x28xf32> to vector<112x28xf32>
    %cst_233 = arith.constant dense<0.000000e+00> : vector<56x28xf32>
    %207 = tpu.matmul %204, %206, %cst_233 {dimension_numbers = #tpu.dot_dimension_numbers<[1], [0], [0], [1], [0, 0, 1, 1], [], []>} : vector<56x112xf32>, vector<112x28xf32>, vector<56x28xf32> -> vector<56x28xf32>
    %208 = arith.addf %201, %207 : vector<56x28xf32>
    %209 = arith.negf %208 : vector<56x28xf32>
    %210 = math.exp %209 : vector<56x28xf32>
    %cst_234 = arith.constant 1.000000e+00 : f32
    %211 = vector.broadcast %cst_234 : f32 to vector<56x28xf32>
    %212 = arith.addf %211, %210 : vector<56x28xf32>
    %213 = arith.divf %211, %212 : vector<56x28xf32>
    %c0_235 = arith.constant 0 : index
    %c0_236 = arith.constant 0 : index
    %214 = vector.load %arg32[%c0_235, %c0_236] : memref<56x28xf32, #tpu.memory_space<vmem>>, vector<56x28xf32>
    tpu.vector_store %arg32[%c0_235, %c0_236], %213 {strides = array<i32>} : memref<56x28xf32, #tpu.memory_space<vmem>>, vector<56x28xf32>,
    return
  }
  func.func @transform_0(%arg0: i32) -> (i32, i32) {
    %c0_i32 = arith.constant 0 : i32
    %c0_i32_0 = arith.constant 0 : i32
    return %arg0, %c0_i32 : i32, i32
  }
  func.func @transform_1(%arg0: i32) -> (i32, i32, i32) {
    %c0_i32 = arith.constant 0 : i32
    %c0_i32_0 = arith.constant 0 : i32
    %c0_i32_1 = arith.constant 0 : i32
    %c0_i32_2 = arith.constant 0 : i32
    return %c0_i32, %c0_i32_0, %c0_i32_1 : i32, i32, i32
  }
  func.func @transform_2(%arg0: i32) -> (i32, i32, i32) {
    %c0_i32 = arith.constant 0 : i32
    %c0_i32_0 = arith.constant 0 : i32
    %c0_i32_1 = arith.constant 0 : i32
    %c0_i32_2 = arith.constant 0 : i32
    return %c0_i32, %c0_i32_0, %c0_i32_1 : i32, i32, i32
  }
  func.func @transform_3(%arg0: i32) -> (i32, i32) {
    %c0_i32 = arith.constant 0 : i32
    %c0_i32_0 = arith.constant 0 : i32
    %c0_i32_1 = arith.constant 0 : i32
    return %c0_i32, %c0_i32_0 : i32, i32
  }
  func.func @transform_4(%arg0: i32) -> (i32, i32, i32) {
    %c0_i32 = arith.constant 0 : i32
    %c0_i32_0 = arith.constant 0 : i32
    %c0_i32_1 = arith.constant 0 : i32
    %c0_i32_2 = arith.constant 0 : i32
    return %c0_i32, %c0_i32_0, %c0_i32_1 : i32, i32, i32
  }
  func.func @transform_5(%arg0: i32) -> (i32, i32, i32) {
    %c0_i32 = arith.constant 0 : i32
    %c0_i32_0 = arith.constant 0 : i32
    %c0_i32_1 = arith.constant 0 : i32
    %c0_i32_2 = arith.constant 0 : i32
    return %c0_i32, %c0_i32_0, %c0_i32_1 : i32, i32, i32
  }
  func.func @transform_6(%arg0: i32) -> (i32, i32) {
    %c0_i32 = arith.constant 0 : i32
    %c0_i32_0 = arith.constant 0 : i32
    %c0_i32_1 = arith.constant 0 : i32
    return %c0_i32, %c0_i32_0 : i32, i32
  }
  func.func @transform_7(%arg0: i32) -> (i32, i32, i32) {
    %c0_i32 = arith.constant 0 : i32
    %c0_i32_0 = arith.constant 0 : i32
    %c0_i32_1 = arith.constant 0 : i32
    %c0_i32_2 = arith.constant 0 : i32
    return %c0_i32, %c0_i32_0, %c0_i32_1 : i32, i32, i32
  }
  func.func @transform_8(%arg0: i32) -> (i32, i32, i32) {
    %c0_i32 = arith.constant 0 : i32
    %c0_i32_0 = arith.constant 0 : i32
    %c0_i32_1 = arith.constant 0 : i32
    %c0_i32_2 = arith.constant 0 : i32
    return %c0_i32, %c0_i32_0, %c0_i32_1 : i32, i32, i32
  }
  func.func @transform_9(%arg0: i32) -> (i32, i32) {
    %c0_i32 = arith.constant 0 : i32
    %c0_i32_0 = arith.constant 0 : i32
    %c0_i32_1 = arith.constant 0 : i32
    return %c0_i32, %c0_i32_0 : i32, i32
  }
  func.func @transform_10(%arg0: i32) -> (i32, i32, i32) {
    %c0_i32 = arith.constant 0 : i32
    %c0_i32_0 = arith.constant 0 : i32
    %c0_i32_1 = arith.constant 0 : i32
    %c0_i32_2 = arith.constant 0 : i32
    return %c0_i32, %c0_i32_0, %c0_i32_1 : i32, i32, i32
  }
  func.func @transform_11(%arg0: i32) -> (i32, i32, i32) {
    %c0_i32 = arith.constant 0 : i32
    %c0_i32_0 = arith.constant 0 : i32
    %c0_i32_1 = arith.constant 0 : i32
    %c0_i32_2 = arith.constant 0 : i32
    return %c0_i32, %c0_i32_0, %c0_i32_1 : i32, i32, i32
  }
  func.func @transform_12(%arg0: i32) -> (i32, i32) {
    %c0_i32 = arith.constant 0 : i32
    %c0_i32_0 = arith.constant 0 : i32
    %c0_i32_1 = arith.constant 0 : i32
    return %c0_i32, %c0_i32_0 : i32, i32
  }
  func.func @transform_13(%arg0: i32) -> (i32, i32, i32) {
    %c0_i32 = arith.constant 0 : i32
    %c0_i32_0 = arith.constant 0 : i32
    %c0_i32_1 = arith.constant 0 : i32
    %c0_i32_2 = arith.constant 0 : i32
    return %c0_i32, %c0_i32_0, %c0_i32_1 : i32, i32, i32
  }
  func.func @transform_14(%arg0: i32) -> (i32, i32, i32) {
    %c0_i32 = arith.constant 0 : i32
    %c0_i32_0 = arith.constant 0 : i32
    %c0_i32_1 = arith.constant 0 : i32
    %c0_i32_2 = arith.constant 0 : i32
    return %c0_i32, %c0_i32_0, %c0_i32_1 : i32, i32, i32
  }
  func.func @transform_15(%arg0: i32) -> (i32, i32) {
    %c0_i32 = arith.constant 0 : i32
    %c0_i32_0 = arith.constant 0 : i32
    %c0_i32_1 = arith.constant 0 : i32
    return %c0_i32, %c0_i32_0 : i32, i32
  }
  func.func @transform_16(%arg0: i32) -> (i32, i32, i32) {
    %c0_i32 = arith.constant 0 : i32
    %c0_i32_0 = arith.constant 0 : i32
    %c0_i32_1 = arith.constant 0 : i32
    %c0_i32_2 = arith.constant 0 : i32
    return %c0_i32, %c0_i32_0, %c0_i32_1 : i32, i32, i32
  }
  func.func @transform_17(%arg0: i32) -> (i32, i32, i32) {
    %c0_i32 = arith.constant 0 : i32
    %c0_i32_0 = arith.constant 0 : i32
    %c0_i32_1 = arith.constant 0 : i32
    %c0_i32_2 = arith.constant 0 : i32
    return %c0_i32, %c0_i32_0, %c0_i32_1 : i32, i32, i32
  }
  func.func @transform_18(%arg0: i32) -> (i32, i32) {
    %c0_i32 = arith.constant 0 : i32
    %c0_i32_0 = arith.constant 0 : i32
    %c0_i32_1 = arith.constant 0 : i32
    return %c0_i32, %c0_i32_0 : i32, i32
  }
  func.func @transform_19(%arg0: i32) -> (i32, i32, i32) {
    %c0_i32 = arith.constant 0 : i32
    %c0_i32_0 = arith.constant 0 : i32
    %c0_i32_1 = arith.constant 0 : i32
    %c0_i32_2 = arith.constant 0 : i32
    return %c0_i32, %c0_i32_0, %c0_i32_1 : i32, i32, i32
  }
  func.func @transform_20(%arg0: i32) -> (i32, i32, i32) {
    %c0_i32 = arith.constant 0 : i32
    %c0_i32_0 = arith.constant 0 : i32
    %c0_i32_1 = arith.constant 0 : i32
    %c0_i32_2 = arith.constant 0 : i32
    return %c0_i32, %c0_i32_0, %c0_i32_1 : i32, i32, i32
  }
  func.func @transform_21(%arg0: i32) -> (i32, i32) {
    %c0_i32 = arith.constant 0 : i32
    %c0_i32_0 = arith.constant 0 : i32
    %c0_i32_1 = arith.constant 0 : i32
    return %c0_i32, %c0_i32_0 : i32, i32
  }
  func.func @transform_22(%arg0: i32) -> (i32, i32, i32) {
    %c0_i32 = arith.constant 0 : i32
    %c0_i32_0 = arith.constant 0 : i32
    %c0_i32_1 = arith.constant 0 : i32
    %c0_i32_2 = arith.constant 0 : i32
    return %c0_i32, %c0_i32_0, %c0_i32_1 : i32, i32, i32
  }
  func.func @transform_23(%arg0: i32) -> (i32, i32, i32) {
    %c0_i32 = arith.constant 0 : i32
    %c0_i32_0 = arith.constant 0 : i32
    %c0_i32_1 = arith.constant 0 : i32
    %c0_i32_2 = arith.constant 0 : i32
    return %c0_i32, %c0_i32_0, %c0_i32_1 : i32, i32, i32
  }
  func.func @transform_24(%arg0: i32) -> (i32, i32) {
    %c0_i32 = arith.constant 0 : i32
    %c0_i32_0 = arith.constant 0 : i32
    %c0_i32_1 = arith.constant 0 : i32
    return %c0_i32, %c0_i32_0 : i32, i32
  }
  func.func @transform_25(%arg0: i32) -> (i32, i32, i32) {
    %c0_i32 = arith.constant 0 : i32
    %c0_i32_0 = arith.constant 0 : i32
    %c0_i32_1 = arith.constant 0 : i32
    %c0_i32_2 = arith.constant 0 : i32
    return %c0_i32, %c0_i32_0, %c0_i32_1 : i32, i32, i32
  }
  func.func @transform_26(%arg0: i32) -> (i32, i32, i32) {
    %c0_i32 = arith.constant 0 : i32
    %c0_i32_0 = arith.constant 0 : i32
    %c0_i32_1 = arith.constant 0 : i32
    %c0_i32_2 = arith.constant 0 : i32
    return %c0_i32, %c0_i32_0, %c0_i32_1 : i32, i32, i32
  }
  func.func @transform_27(%arg0: i32) -> (i32, i32) {
    %c0_i32 = arith.constant 0 : i32
    %c0_i32_0 = arith.constant 0 : i32
    %c0_i32_1 = arith.constant 0 : i32
    return %c0_i32, %c0_i32_0 : i32, i32
  }
  func.func @transform_28(%arg0: i32) -> (i32, i32, i32) {
    %c0_i32 = arith.constant 0 : i32
    %c0_i32_0 = arith.constant 0 : i32
    %c0_i32_1 = arith.constant 0 : i32
    %c0_i32_2 = arith.constant 0 : i32
    return %c0_i32, %c0_i32_0, %c0_i32_1 : i32, i32, i32
  }
  func.func @transform_29(%arg0: i32) -> (i32, i32, i32) {
    %c0_i32 = arith.constant 0 : i32
    %c0_i32_0 = arith.constant 0 : i32
    %c0_i32_1 = arith.constant 0 : i32
    %c0_i32_2 = arith.constant 0 : i32
    return %c0_i32, %c0_i32_0, %c0_i32_1 : i32, i32, i32
  }
  func.func @transform_30(%arg0: i32) -> (i32, i32) {
    %c0_i32 = arith.constant 0 : i32
    %c0_i32_0 = arith.constant 0 : i32
    %c0_i32_1 = arith.constant 0 : i32
    return %c0_i32, %c0_i32_0 : i32, i32
  }
  func.func @transform_31(%arg0: i32) -> (i32, i32) {
    %c0_i32 = arith.constant 0 : i32
    %c0_i32_0 = arith.constant 0 : i32
    return %arg0, %c0_i32 : i32, i32
  }
}

</mosaic_0001>

<bundles_post_ra>
// kernel: autoencoder_forward.1
= control target key start
LH: loop header
LB: loop body
LE: loop exit
PB: predicated region body
PF: predicated region fallthrough
CT: control target
= control target key end

     0   :  { %s8368_s6 = smov 1   ;;  %s8369_s10 = smov 2   ;;  %s9507_s0 = inlined_call_operand.smem [shape: u32[32], index: -1, kind: input, shape index: {}] }
   0x1   :  { %s8428_s5 = sld [smem:[%s9507_s0]]   ;;  %s8370_s14 = smov 3  }
   0x2   :  { %s8433_s9 = sld [smem:[%s9507_s0 + %s8368_s6]]   ;;  %s8371_s18 = smov 4  }
   0x3   :  { %s8438_s13 = sld [smem:[%s9507_s0 + %s8369_s10]]   ;;  %s8372_s22 = smov 5  }
   0x4   :  { %s8443_s17 = sld [smem:[%s9507_s0 + %s8370_s14]]   ;;  %s8373_s26 = smov 6  }
   0x5   :  { %s8448_s21 = sld [smem:[%s9507_s0 + %s8371_s18]]   ;;  %s8374_s30 = smov 7  }
   0x6   :  { %s8453_s25 = sld [smem:[%s9507_s0 + %s8372_s22]]   ;;  %s8375_s4 = smov 8  }
   0x7   :  { %s8458_s29 = sld [smem:[%s9507_s0 + %s8373_s26]]   ;;  %s8376_s10 = smov 9  }
   0x8   :  { %s8463_s3 = sld [smem:[%s9507_s0 + %s8374_s30]]   ;;  %s8377_s15 = smov 10  }
   0x9   :  { %9522 = sst [smem:[#allocation31_spill]] %s8438_s13  ;;  %s8378_s20 = smov 11  }
   0xa   :  { %9523 = sst [smem:[#allocation32_spill]] %s8443_s17  ;;  %s8379_s26 = smov 12  }
   0xb   :  { %9524 = sst [smem:[#allocation33_spill]] %s8448_s21  ;;  %s8380_s1 = smov 13  }
   0xc   :  { %9525 = sst [smem:[#allocation34_spill]] %s8453_s25  ;;  %s8381_s7 = smov 14  }
   0xd   :  { %s8468_s8 = sld [smem:[%s9507_s0 + %s8375_s4]]   ;;  %s8383_s22 = smov 16  }
   0xe   :  { %s8473_s14 = sld [smem:[%s9507_s0 + %s8376_s10]]   ;;  %s8384_s28 = smov 17  }
   0xf   :  { %s8478_s19 = sld [smem:[%s9507_s0 + %s8377_s15]]   ;;  %s8382_s15 = smov 15  }
  0x10   :  { %s8483_s24 = sld [smem:[%s9507_s0 + %s8378_s20]]  }
  0x11   :  { %s8488_s30 = sld [smem:[%s9507_s0 + %s8379_s26]]  }
  0x12   :  { %s8493_s6 = sld [smem:[%s9507_s0 + %s8380_s1]]  }
  0x13   :  { %9526 = sst [smem:[#allocation35_spill]] %s8468_s8 }
  0x14   :  { %s8498_s12 = sld [smem:[%s9507_s0 + %s8381_s7]]   ;;  %s8385_s7 = smov 18  }
  0x15   :  { %s8503_s20 = sld [smem:[%s9507_s0 + %s8382_s15]]   ;;  %s8386_s15 = smov 19  }
  0x16   :  { %9527 = sst [smem:[#allocation36_spill]] %s8483_s24 }
  0x17   :  { %s8508_s27 = sld [smem:[%s9507_s0 + %s8383_s22]]   ;;  %s8387_s22 = smov 20  }
  0x18   :  { %s8513_s4 = sld [smem:[%s9507_s0 + %s8384_s28]]   ;;  %s8388_s28 = smov 21  }
  0x19   :  { %s8523_s24 = sld [smem:[%s9507_s0 + %s8386_s15]]   ;;  %s8390_s15 = smov 23  }
  0x1a   :  { %9528 = sst [smem:[#allocation37_spill]] %s8498_s12 }
  0x1b   :  { %s8518_s12 = sld [smem:[%s9507_s0 + %s8385_s7]]   ;;  %s8389_s7 = smov 22  }
  0x1c   :  { %s8528_s8 = sld [smem:[%s9507_s0 + %s8387_s22]]   ;;  %s8391_s22 = smov 24  }
  0x1d   :  { %s8533_s25 = sld [smem:[%s9507_s0 + %s8388_s28]]   ;;  %s8392_s28 = smov 25  }
  0x1e   :  { %s8538_s17 = sld [smem:[%s9507_s0 + %s8389_s7]]   ;;  %s8393_s7 = smov 26  }
  0x1f   :  { %9529 = sst [smem:[#allocation38_spill]] %s8523_s24 }
  0x20   :  { %s8543_s24 = sld [smem:[%s9507_s0 + %s8390_s15]]   ;;  %s8394_s15 = smov 27  }
  0x21   :  { %s8553_s21 = sld [smem:[%s9507_s0 + %s8392_s28]]   ;;  %s8396_s28 = smov 29  }
  0x22   :  { %9530 = sst [smem:[#allocation39_spill]] %s8528_s8 }
  0x23   :  { %s8548_s8 = sld [smem:[%s9507_s0 + %s8391_s22]]   ;;  %s8395_s22 = smov 28  }
  0x24   :  { %9531 = sst [smem:[#allocation40_spill]] %s8538_s17 }
  0x25   :  { %s8558_s17 = sld [smem:[%s9507_s0 + %s8393_s7]]   ;;  %s8397_s7 = smov 30  }
  0x26   :  { %9532 = sst [smem:[#allocation41_spill]] %s8543_s24 }
  0x27   :  { %9533 = sst [smem:[#allocation42_spill]] %s8553_s21 }
  0x28   :  { %s8563_s24 = sld [smem:[%s9507_s0 + %s8394_s15]]   ;;  %s8398_s15 = smov 31  }
  0x29   :  { %s8568_s13 = sld [smem:[%s9507_s0 + %s8395_s22]]  }
  0x2a   :  { %s8573_s21 = sld [smem:[%s9507_s0 + %s8396_s28]]  }
  0x2b   :  { %9534 = sst [smem:[#allocation43_spill]] %s8558_s17 }
  0x2c   :  { %s8578_s17 = sld [smem:[%s9507_s0 + %s8397_s7]]  }
  0x2e   :  { %9535 = sst [smem:[#allocation44_spill]] %s8563_s24 }
  0x2f   :  { %s8583_s24 = sld [smem:[%s9507_s0 + %s8398_s15]]  }
  0x30   :  { %68 = vsyncpa [#allocation3], 0 }
  0x31   :  { %69 = vsyncpa [#allocation6], 0 }
  0x32   :  { %70 = vsyncpa [#allocation9], 0 }
  0x33   :  { %71 = vsyncpa [#allocation12], 0 }
  0x34   :  { %72 = vsyncpa [#allocation15], 0 }
  0x35   :  { %73 = vsyncpa [#allocation18], 0 }
  0x36   :  { %74 = vsyncpa [#allocation21], 0 }
  0x37   :  { %75 = vsyncpa [#allocation4], 0  ;;  %s8399_s22 = smov [#allocation5]   ;;  %s8400_s26 = smov [#allocation8]  }
  0x38   :  { %s105_s23 = sshll.u32 %s8399_s22, 4  ;;  %s129_s28 = sshll.u32 %s8400_s26, 4  ;;  %s106_s23 = int_to_ptr.vmem [resolvable:$true] %s105_s23  ;;  %s8585_s28 = int_to_ptr.vmem [resolvable:$true] %s129_s28 }
  0x39   :  { %s8066_s0 = scalar_lea.hbm %s8463_s3, 384 }
  0x3a   :  { %p8067_p0 = scmp.ne.s32.totalorder %s8463_s3, %s8066_s0  ;;  %p8070_p1 = scmp.lt.u32.totalorder %s8066_s0, %s8463_s3 }
  0x3c   :  { %p8072_p2 = pnand %p8070_p1, %p8067_p0 }
  0x3e   :  { %8075 = shalt.err (!%p8072_p2)
}
  0x3f   :  { %s8076_s1 = scalar_lea.vmem %s106_s23, 384  ;;  %p8081_p4 = scmp.lt.s32.totalorder %s106_s23, %s106_s23 }
  0x40   :  { %p8077_p3 = scmp.ne.s32.totalorder %s106_s23, %s8076_s1  ;;  %p8082_p5 = scmp.lt.s32.totalorder %s8076_s1, %s8076_s1 }
  0x42   :  { %p8083_p6 = por %p8082_p5, %p8081_p4 }
  0x44   :  { %p8084_p7 = pnand %p8083_p6, %p8077_p3 }
  0x46   :  { %8087 = shalt.err (!%p8084_p7)
}
  0x47   :  { %s8401_s2 = smov 128   ;;  %s8402_s7 = smov 8  }
  0x48   :  { %111 = dma.hbm_to_vmem [thread:$0]  %s8463_s3, 384, %s106_s23, [#allocation6], %s8401_s2, %s8401_s2, %s8402_s7  }
  0x49   :  { %s8088_s10 = scalar_lea.hbm %s8478_s19, 96 }
  0x4a   :  { %p8089_p8 = scmp.ne.s32.totalorder %s8478_s19, %s8088_s10  ;;  %p8092_p9 = scmp.lt.u32.totalorder %s8088_s10, %s8478_s19 }
  0x4c   :  { %p8094_p10 = pnand %p8092_p9, %p8089_p8 }
  0x4e   :  { %8097 = shalt.err (!%p8094_p10)
}
  0x4f   :  { %s8098_s11 = scalar_lea.vmem %s8585_s28, 96  ;;  %p8103_p12 = scmp.lt.s32.totalorder %s8585_s28, %s8585_s28 }
  0x50   :  { %p8099_p11 = scmp.ne.s32.totalorder %s8585_s28, %s8098_s11  ;;  %p8104_p13 = scmp.lt.s32.totalorder %s8098_s11, %s8098_s11 }
  0x52   :  { %p8105_p0 = por %p8104_p13, %p8103_p12 }
  0x54   :  { %p8106_p1 = pnand %p8105_p0, %p8099_p11 }
  0x56   :  { %8109 = shalt.err (!%p8106_p1)
}
  0x57   :  { %s8403_s15 = smov 32   ;;  %s8404_s3 = smov 2  }
  0x58   :  { %135 = dma.hbm_to_vmem [thread:$0]  %s8478_s19, 96, %s8585_s28, [#allocation9], %s8403_s15, %s8403_s15, %s8404_s3  }
  0x59   :  { %s8405_s16 = smov [#allocation11]   ;;  %s8406_s22 = smov [#allocation14]  }
  0x5a   :  { %s154_s18 = sshll.u32 %s8405_s16, 4  ;;  %s176_s23 = sshll.u32 %s8406_s22, 4  ;;  %s155_s18 = int_to_ptr.vmem [resolvable:$true] %s154_s18  ;;  %s177_s23 = int_to_ptr.vmem [resolvable:$true] %s176_s23 }
  0x5b   :  { %s8110_s26 = scalar_lea.hbm %s8493_s6, 32 }
  0x5c   :  { %p8111_p2 = scmp.ne.s32.totalorder %s8493_s6, %s8110_s26  ;;  %p8114_p3 = scmp.lt.u32.totalorder %s8110_s26, %s8493_s6 }
  0x5e   :  { %p8116_p4 = pnand %p8114_p3, %p8111_p2 }
  0x60   :  { %8119 = shalt.err (!%p8116_p4)
}
  0x61   :  { %s8120_s0 = scalar_lea.vmem %s155_s18, 32  ;;  %p8125_p6 = scmp.lt.s32.totalorder %s155_s18, %s155_s18 }
  0x62   :  { %p8121_p5 = scmp.ne.s32.totalorder %s155_s18, %s8120_s0  ;;  %p8126_p7 = scmp.lt.s32.totalorder %s8120_s0, %s8120_s0 }
  0x64   :  { %p8127_p8 = por %p8126_p7, %p8125_p6 }
  0x66   :  { %p8128_p9 = pnand %p8127_p8, %p8121_p5 }
  0x68   :  { %8131 = shalt.err (!%p8128_p9)
}
  0x69   :  { %157 = dma.hbm_to_vmem [thread:$0]  %s8493_s6, 32, %s155_s18, [#allocation12]  }
  0x6a   :  { %s8132_s19 = scalar_lea.hbm %s8508_s27, 32 }
  0x6b   :  { %p8133_p10 = scmp.ne.s32.totalorder %s8508_s27, %s8132_s19  ;;  %p8136_p11 = scmp.lt.u32.totalorder %s8132_s19, %s8508_s27 }
  0x6d   :  { %p8138_p12 = pnand %p8136_p11, %p8133_p10 }
  0x6f   :  { %8141 = shalt.err (!%p8138_p12)
}
  0x70   :  { %s8142_s28 = scalar_lea.vmem %s177_s23, 32  ;;  %p8147_p0 = scmp.lt.s32.totalorder %s177_s23, %s177_s23 }
  0x71   :  { %p8143_p13 = scmp.ne.s32.totalorder %s177_s23, %s8142_s28  ;;  %p8148_p1 = scmp.lt.s32.totalorder %s8142_s28, %s8142_s28 }
  0x73   :  { %p8149_p2 = por %p8148_p1, %p8147_p0 }
  0x75   :  { %p8150_p3 = pnand %p8149_p2, %p8143_p13 }
  0x77   :  { %8153 = shalt.err (!%p8150_p3)
}
  0x78   :  { %179 = dma.hbm_to_vmem [thread:$0]  %s8508_s27, 32, %s177_s23, [#allocation15]  }
  0x79   :  { %s8407_s1 = smov [#allocation17]   ;;  %s8408_s6 = smov [#allocation2]  }
  0x7a   :  { %s196_s10 = sshll.u32 %s8407_s1, 4  ;;  %s93_s11 = sshll.u32 %s8408_s6, 4  ;;  %s197_s10 = int_to_ptr.vmem [resolvable:$true] %s196_s10  ;;  %s8611_s11 = int_to_ptr.vmem [resolvable:$true] %s93_s11 }
  0x7b   :  { %s8154_s15 = scalar_lea.hbm %s8518_s12, 32 }
  0x7c   :  { %p8155_p4 = scmp.ne.s32.totalorder %s8518_s12, %s8154_s15  ;;  %p8158_p5 = scmp.lt.u32.totalorder %s8154_s15, %s8518_s12 }
  0x7e   :  { %p8160_p6 = pnand %p8158_p5, %p8155_p4 }
  0x80   :  { %8163 = shalt.err (!%p8160_p6)
}
  0x81   :  { %s8164_s3 = scalar_lea.vmem %s197_s10, 32  ;;  %p8169_p8 = scmp.lt.s32.totalorder %s197_s10, %s197_s10 }
  0x82   :  { %p8165_p7 = scmp.ne.s32.totalorder %s197_s10, %s8164_s3  ;;  %p8170_p9 = scmp.lt.s32.totalorder %s8164_s3, %s8164_s3 }
  0x84   :  { %p8171_p10 = por %p8170_p9, %p8169_p8 }
  0x86   :  { %p8172_p11 = pnand %p8171_p10, %p8165_p7 }
  0x88   :  { %8175 = shalt.err (!%p8172_p11)
}
  0x89   :  { %199 = dma.hbm_to_vmem [thread:$0]  %s8518_s12, 32, %s197_s10, [#allocation18]  }
  0x8a   :  { %s8176_s27 = scalar_lea.hbm %s8458_s29, 256 }
  0x8b   :  { %p8177_p12 = scmp.ne.s32.totalorder %s8458_s29, %s8176_s27  ;;  %p8180_p13 = scmp.lt.u32.totalorder %s8176_s27, %s8458_s29 }
  0x8d   :  { %p8182_p0 = pnand %p8180_p13, %p8177_p12 }
  0x8f   :  { %8185 = shalt.err (!%p8182_p0)
}
  0x90   :  { %s8186_s16 = scalar_lea.vmem %s8611_s11, 256  ;;  %p8191_p2 = scmp.lt.s32.totalorder %s8611_s11, %s8611_s11 }
  0x91   :  { %p8187_p1 = scmp.ne.s32.totalorder %s8611_s11, %s8186_s16  ;;  %p8192_p3 = scmp.lt.s32.totalorder %s8186_s16, %s8186_s16 }
  0x93   :  { %p8193_p4 = por %p8192_p3, %p8191_p2 }
  0x95   :  { %p8194_p5 = pnand %p8193_p4, %p8187_p1 }
  0x97   :  { %8197 = shalt.err (!%p8194_p5)
}
  0x98   :  { %99 = dma.hbm_to_vmem [thread:$0]  %s8458_s29, 256, %s8611_s11, [#allocation3], %s8401_s2, %s8401_s2, %s8402_s7  }
  0x99   :  { %s8409_s12 = smov [#allocation7]   ;;  %s8410_s22 = smov [#allocation10]  }
  0x9a   :  { %s120_s18 = sshll.u32 %s8409_s12, 4  ;;  %s144_s23 = sshll.u32 %s8410_s22, 4  ;;  %s121_s18 = int_to_ptr.vmem [resolvable:$true] %s120_s18  ;;  %s145_s23 = int_to_ptr.vmem [resolvable:$true] %s144_s23 }
  0x9b   :  { %s8198_s26 = scalar_lea.hbm %s8473_s14, 128 }
  0x9c   :  { %p8199_p6 = scmp.ne.s32.totalorder %s8473_s14, %s8198_s26  ;;  %p8202_p7 = scmp.lt.u32.totalorder %s8198_s26, %s8473_s14 }
  0x9e   :  { %p8204_p8 = pnand %p8202_p7, %p8199_p6 }
  0xa0   :  { %8207 = shalt.err (!%p8204_p8)
}
  0xa1   :  { %s8208_s0 = scalar_lea.vmem %s121_s18, 128  ;;  %p8213_p10 = scmp.lt.s32.totalorder %s121_s18, %s121_s18 }
  0xa2   :  { %p8209_p9 = scmp.ne.s32.totalorder %s121_s18, %s8208_s0  ;;  %p8214_p11 = scmp.lt.s32.totalorder %s8208_s0, %s8208_s0 }
  0xa4   :  { %p8215_p12 = por %p8214_p11, %p8213_p10 }
  0xa6   :  { %p8216_p13 = pnand %p8215_p12, %p8209_p9 }
  0xa8   :  { %8219 = shalt.err (!%p8216_p13)
}
  0xa9   :  { %123 = dma.hbm_to_vmem [thread:$0]  %s8473_s14, 128, %s121_s18, [#allocation6]  }
  0xaa   :  { %s8220_s29 = scalar_lea.hbm %s8488_s30, 32 }
  0xab   :  { %p8221_p0 = scmp.ne.s32.totalorder %s8488_s30, %s8220_s29  ;;  %p8224_p1 = scmp.lt.u32.totalorder %s8220_s29, %s8488_s30 }
  0xad   :  { %p8226_p2 = pnand %p8224_p1, %p8221_p0 }
  0xaf   :  { %8229 = shalt.err (!%p8226_p2)
}
  0xb0   :  { %s8230_s19 = scalar_lea.vmem %s145_s23, 32  ;;  %p8235_p4 = scmp.lt.s32.totalorder %s145_s23, %s145_s23 }
  0xb1   :  { %p8231_p3 = scmp.ne.s32.totalorder %s145_s23, %s8230_s19  ;;  %p8236_p5 = scmp.lt.s32.totalorder %s8230_s19, %s8230_s19 }
  0xb3   :  { %p8237_p6 = por %p8236_p5, %p8235_p4 }
  0xb5   :  { %p8238_p7 = pnand %p8237_p6, %p8231_p3 }
  0xb7   :  { %8241 = shalt.err (!%p8238_p7)
}
  0xb8   :  { %147 = dma.hbm_to_vmem [thread:$0]  %s8488_s30, 32, %s145_s23, [#allocation9]  }
  0xb9   :  { %s8411_s28 = smov [#allocation13]   ;;  %s8412_s14 = smov [#allocation16]  }
  0xba   :  { %s166_s1 = sshll.u32 %s8411_s28, 4  ;;  %s186_s10 = sshll.u32 %s8412_s14, 4  ;;  %s167_s1 = int_to_ptr.vmem [resolvable:$true] %s166_s1  ;;  %s187_s10 = int_to_ptr.vmem [resolvable:$true] %s186_s10 }
  0xbb   :  { %s8242_s6 = scalar_lea.hbm %s8503_s20, 32 }
  0xbc   :  { %p8243_p8 = scmp.ne.s32.totalorder %s8503_s20, %s8242_s6  ;;  %p8246_p9 = scmp.lt.u32.totalorder %s8242_s6, %s8503_s20 }
  0xbe   :  { %p8248_p10 = pnand %p8246_p9, %p8243_p8 }
  0xc0   :  { %8251 = shalt.err (!%p8248_p10)
}
  0xc1   :  { %s8252_s11 = scalar_lea.vmem %s167_s1, 32  ;;  %p8257_p12 = scmp.lt.s32.totalorder %s167_s1, %s167_s1 }
  0xc2   :  { %p8253_p11 = scmp.ne.s32.totalorder %s167_s1, %s8252_s11  ;;  %p8258_p13 = scmp.lt.s32.totalorder %s8252_s11, %s8252_s11 }
  0xc4   :  { %p8259_p0 = por %p8258_p13, %p8257_p12 }
  0xc6   :  { %p8260_p1 = pnand %p8259_p0, %p8253_p11 }
  0xc8   :  { %8263 = shalt.err (!%p8260_p1)
}
  0xc9   :  { %169 = dma.hbm_to_vmem [thread:$0]  %s8503_s20, 32, %s167_s1, [#allocation12]  }
  0xca   :  { %s8264_s30 = scalar_lea.hbm %s8513_s4, 128 }
  0xcb   :  { %p8265_p2 = scmp.ne.s32.totalorder %s8513_s4, %s8264_s30  ;;  %p8268_p3 = scmp.lt.u32.totalorder %s8264_s30, %s8513_s4 }
  0xcd   :  { %p8270_p4 = pnand %p8268_p3, %p8265_p2 }
  0xcf   :  { %8273 = shalt.err (!%p8270_p4)
}
  0xd0   :  { %s8274_s15 = scalar_lea.vmem %s187_s10, 128  ;;  %p8279_p6 = scmp.lt.s32.totalorder %s187_s10, %s187_s10 }
  0xd1   :  { %p8275_p5 = scmp.ne.s32.totalorder %s187_s10, %s8274_s15  ;;  %p8280_p7 = scmp.lt.s32.totalorder %s8274_s15, %s8274_s15 }
  0xd3   :  { %p8281_p8 = por %p8280_p7, %p8279_p6 }
  0xd5   :  { %p8282_p9 = pnand %p8281_p8, %p8275_p5 }
  0xd7   :  { %8285 = shalt.err (!%p8282_p9)
}
  0xd8   :  { %189 = dma.hbm_to_vmem [thread:$0]  %s8513_s4, 128, %s187_s10, [#allocation15]  }
  0xd9   :  { %s8413_s3 = smov [#allocation19]   ;;  %s8414_s20 = smov [#allocation20]  }
  0xda   :  { %s210_s27 = sshll.u32 %s8413_s3, 4  ;;  %s223_s16 = sshll.u32 %s8414_s20, 4  ;;  %s211_s27 = int_to_ptr.vmem [resolvable:$true] %s210_s27  ;;  %s8645_s16 = int_to_ptr.vmem [resolvable:$true] %s223_s16 }
  0xdb   :  { %s8286_s12 = scalar_lea.hbm %s8533_s25, 128 }
  0xdc   :  { %p8287_p10 = scmp.ne.s32.totalorder %s8533_s25, %s8286_s12  ;;  %p8290_p11 = scmp.lt.u32.totalorder %s8286_s12, %s8533_s25 }
  0xde   :  { %p8292_p12 = pnand %p8290_p11, %p8287_p10 }
  0xe0   :  { %8295 = shalt.err (!%p8292_p12)
}
  0xe1   :  { %s8296_s18 = scalar_lea.vmem %s211_s27, 128  ;;  %p8301_p0 = scmp.lt.s32.totalorder %s211_s27, %s211_s27 }
  0xe2   :  { %p8297_p13 = scmp.ne.s32.totalorder %s211_s27, %s8296_s18  ;;  %p8302_p1 = scmp.lt.s32.totalorder %s8296_s18, %s8296_s18 }
  0xe4   :  { %p8303_p2 = por %p8302_p1, %p8301_p0 }
  0xe6   :  { %p8304_p3 = pnand %p8303_p2, %p8297_p13 }
  0xe8   :  { %8307 = shalt.err (!%p8304_p3)
}
  0xe9   :  { %213 = dma.hbm_to_vmem [thread:$0]  %s8533_s25, 128, %s211_s27, [#allocation18]  }
  0xea   :  { %s8308_s4 = scalar_lea.hbm %s8548_s8, 256 }
  0xeb   :  { %p8309_p4 = scmp.ne.s32.totalorder %s8548_s8, %s8308_s4  ;;  %p8312_p5 = scmp.lt.u32.totalorder %s8308_s4, %s8548_s8 }
  0xed   :  { %p8314_p6 = pnand %p8312_p5, %p8309_p4 }
  0xef   :  { %8317 = shalt.err (!%p8314_p6)
}
  0xf0   :  { %s8318_s22 = scalar_lea.vmem %s8645_s16, 256  ;;  %p8323_p8 = scmp.lt.s32.totalorder %s8645_s16, %s8645_s16 }
  0xf1   :  { %p8319_p7 = scmp.ne.s32.totalorder %s8645_s16, %s8318_s22  ;;  %p8324_p9 = scmp.lt.s32.totalorder %s8318_s22, %s8318_s22 }
  0xf3   :  { %p8325_p10 = por %p8324_p9, %p8323_p8 }
  0xf5   :  { %p8326_p11 = pnand %p8325_p10, %p8319_p7 }
  0xf7   :  { %8329 = shalt.err (!%p8326_p11)
}
  0xf8   :  { %229 = dma.hbm_to_vmem [thread:$0]  %s8548_s8, 256, %s8645_s16, [#allocation21], %s8401_s2, %s8401_s2, %s8402_s7  }
  0xf9   :  { %8352 = dma.done.wait [#allocation3], 256  }
  0xfa   :  { %8353 = vsyncadd [#allocation3], 4294967040 }
  0xfb   :  { %8354 = dma.done.wait [#allocation6], 512  }
  0xfc   :  { %8355 = vsyncadd [#allocation6], 4294966784 }
  0xfd   :  { %8356 = dma.done.wait [#allocation9], 128  }
  0xfe   :  { %8357 = vsyncadd [#allocation9], 4294967168 }
  0xff   :  { %8358 = dma.done.wait [#allocation12], 64  }
 0x100   :  { %8359 = vsyncadd [#allocation12], 4294967232 }
 0x101   :  { %8360 = dma.done.wait [#allocation15], 160  }
 0x102   :  { %8361 = vsyncadd [#allocation15], 4294967136 }
 0x103   :  { %8362 = dma.done.wait [#allocation18], 160  }
 0x104   :  { %8363 = vsyncadd [#allocation18], 4294967136 }
 0x105   :  { %8364 = dma.done.wait [#allocation21], 256  }
 0x106   :  { %8365 = vsyncadd [#allocation21], 4294967040  ;;  %s9536_s25 = sld [smem:[#allocation31_spill]]  ;;  %v278_v0 = vld [vmem:[%s8428_s5] sm:$0xff]  ;;  %v279_v1 = vld [vmem:[%s8428_s5 + $0x8] sm:$0xff]  ;;  %vm293_vm0 = vcmask 457728  }
 0x107   :  { %v280_v2 = vld [vmem:[%s8428_s5 + $0x10] sm:$0xff]  ;;  %v7285_v3 = vpack.c.bf16 %v279_v1, %v278_v0  ;;  %v281_v4 = vld [vmem:[%s8428_s5 + $0x18] sm:$0xff]  ;;  %v282_v6 = vld [vmem:[%s8428_s5 + $0x20] sm:$0xff]  ;;  %vm408_vm1 = vcmask 1043456   ;;  %vm8415_vm2 = vmmov 1   ;;  %vm395_vm4 = vcmask 228352  }
 0x108   :  { %v8667_v5 = vpack.c.bf16 %v281_v4, %v280_v2  ;;  %v283_v7 = vld [vmem:[%s8428_s5 + $0x28] sm:$0xff]  ;;  %v289_v8 = vld [vmem:[%s8433_s9] sm:$0xff]  ;;  %vm8679_vm3 = vmpackc.low %vm408_vm1, %vm8415_vm2  ;;  %s9541_s8 = sld [smem:[#allocation34_spill]]  ;;  %vm1029_vm5 = vcmask 916480   ;;  %s9542_s23 = sld [smem:[#allocation35_spill]]  ;;  %vm8417_vm6 = vmmov 0  }
 0x109   :  { %7286 = vmatprep.subr.bf16.mxu0 %v7285_v3  ;;  %6293 = vmatprep.mubr.msk.f32.mxu0 %vm293_vm0, %v289_v8  ;;  %v7293_v13 = vpack.c.bf16 %v283_v7, %v282_v6  ;;  %v284_v17 = vld [vmem:[%s8428_s5 + $0x30] sm:$0xff]  ;;  %v290_v18 = vld [vmem:[%s8433_s9 + $0x8] sm:$0xff]  ;;  %v292_v20 = vld [vmem:[%s8433_s9 + $0x18] sm:$0xf]  ;;  %s9539_s5 = sld [smem:[#allocation33_spill]]  ;;  %vm1485_vm7 = vcmask 1045504  }
 0x10a   :  { %7288 = vmatpush3.bf16.msra.mxu0 %v7285_v3  ;;  %v291_v19 = vld [vmem:[%s8433_s9 + $0x10] sm:$0xff]  ;;  %v5423_v21 = vld [vmem:[%s8433_s9 + $0x40] sm:$0xff]  ;;  %v5424_v22 = vld [vmem:[%s8433_s9 + $0x48] sm:$0xff]  ;;  %vm1481_vm9 = vcmask 113664   ;;  %s9545_s26 = sld [smem:[#allocation36_spill]]  ;;  %vm1978_vm10 = vcmask 48128  }
 0x10b   :  { %7290 = vmatprep.subr.bf16.mxu0 %v8667_v5  ;;  %v5425_v23 = vld [vmem:[%s8433_s9 + $0x50] sm:$0xff]  ;;  %v5426_v24 = vld [vmem:[%s8433_s9 + $0x58] sm:$0xf]  ;;  %v5406_v29 = vld [vmem:[%s8433_s9 + $0x20] sm:$0xff]  ;;  %vm2067_vm11 = vcmask 785408   ;;  %s9546_s0 = sld [smem:[#allocation37_spill]] }
 0x10c   :  { %v391_v9 = vld [vmem:[%s9536_s25] sm:$0xff]  ;;  %v392_v10 = vld [vmem:[%s9536_s25 + $0x8] sm:$0xff]  ;;  %v393_v11 = vld [vmem:[%s9536_s25 + $0x10] sm:$0xff]  ;;  %vm2473_vm12 = vcmask 1041408   ;;  %vm2469_vm13 = vcmask 15360   ;;  %vm2555_vm14 = vcmask 523264  }
 0x10d   :  { %v394_v12 = vld [vmem:[%s9536_s25 + $0x18] sm:$0xf]  ;;  %v7297_v14 = vpack.c.bf16 %v392_v10, %v391_v9  ;;  %v5414_v30 = vld [vmem:[%s9536_s25 + $0x20] sm:$0xff]  ;;  %v5415_v31 = vld [vmem:[%s9536_s25 + $0x28] sm:$0xff]  ;;  %s9547_s29 = sld [smem:[#allocation39_spill]]  ;;  %s9548_s19 = sld [smem:[#allocation38_spill]] }
 0x10e   :  { %v7301_v15 = vpack.c.bf16 %v394_v12, %v393_v11  ;;  %7292 = vmatpush3.bf16.msra.mxu0 %v8667_v5  ;;  %v5416_v32 = vld [vmem:[%s9536_s25 + $0x30] sm:$0xff]  ;;  %v5417_v33 = vld [vmem:[%s9536_s25 + $0x38] sm:$0xf]  ;;  %v7319_v34 = vpack.c.bf16 %v5415_v31, %v5414_v30  ;;  %v5407_v35 = vld [vmem:[%s8433_s9 + $0x28] sm:$0xff]  ;;  %vm2709_vm15 = vcmask 64512   ;;  %s9549_s28 = sld [smem:[#allocation40_spill]] }
 0x10f   :  { %7298 = vmatprep.subr.bf16.mxu1 %v7297_v14  ;;  %7294 = vmatprep.subr.bf16.mxu0 %v7293_v13  ;;  %v5408_v36 = vld [vmem:[%s8433_s9 + $0x30] sm:$0xff]  ;;  %v7323_v37 = vpack.c.bf16 %v5417_v33, %v5416_v32  ;;  %v5409_v38 = vld [vmem:[%s8433_s9 + $0x38] sm:$0xf]  ;;  %v5431_v39 = vld [vmem:[%s9536_s25 + $0x40] sm:$0xff]  ;;  %s9540_s9 = sld [smem:[#allocation32_spill]]  ;;  %s9550_s1 = sld [smem:[#allocation41_spill]] }
 0x110   :  { %7300 = vmatpush3.bf16.msra.mxu1 %v7297_v14  ;;  %v5432_v40 = vld [vmem:[%s9536_s25 + $0x48] sm:$0xff]  ;;  %v5433_v46 = vld [vmem:[%s9536_s25 + $0x50] sm:$0xff]  ;;  %v5434_v47 = vld [vmem:[%s9536_s25 + $0x58] sm:$0xf]  ;;  %s9551_s14 = sld [smem:[#allocation42_spill]]  ;;  %s9552_s10 = sld [smem:[#allocation43_spill]] }
 0x111   :  { %7303 = vmatprep.subr.msk.bf16.mxu1 %vm8679_vm3, %v7301_v15  ;;  %v7341_v41 = vpack.c.bf16 %v5432_v40, %v5431_v39  ;;  %v7345_v50 = vpack.c.bf16 %v5434_v47, %v5433_v46  ;;  %v929_v53 = vld [vmem:[%s9539_s5] sm:$0xff]  ;;  %v5445_v54 = vld [vmem:[%s9539_s5 + $0x10] sm:$0xff]  ;;  %v1016_v8 = vld [vmem:[%s9541_s8 + $0x8] sm:$0xff]  ;;  %s9553_s6 = sld [smem:[#allocation44_spill]] }
 0x112   :  { %7296 = vmatpush3.bf16.msra.mxu0 %v7293_v13  ;;  %v1015_v7 = vld [vmem:[%s9541_s8] sm:$0xff]  ;;  %v1017_v12 = vld [vmem:[%s9541_s8 + $0x10] sm:$0xff]  ;;  %v930_v14 = vld [vmem:[%s9539_s5 + $0x8] sm:$0x3f] }
 0x113   :  { %6291 = vmatprep.subr.mxu0 %v284_v17  ;;  %v7361_v11 = vpack.c.bf16 %v1016_v8, %v1015_v7  ;;  %v1026_v30 = vld [vmem:[%s9541_s8 + $0x58] sm:$0xff]  ;;  %v1027_v32 = vld [vmem:[%s9541_s8 + $0x60] sm:$0xff]  ;;  %v1028_v33 = vld [vmem:[%s9541_s8 + $0x68] sm:$0xff] }
 0x114   :  { %7306 = vmatpush3.bf16.msk.msra.mxu1 %vm8679_vm3, %v7301_v15  ;;  %v5446_v15 = vld [vmem:[%s9539_s5 + $0x18] sm:$0x3f]  ;;  %v5453_v39 = vld [vmem:[%s9541_s8 + $0x88] sm:$0xff]  ;;  %v5477_v7 = vld [vmem:[%s9541_s8 + $0x110] sm:$0xff] }
 0x115   :  { %7308 = vmatprep.subr.bf16.mxu1 %v7285_v3  ;;  %v286_v55 = vld [vmem:[%s9540_s9 + $0x8] sm:$0xff]  ;;  %v285_v56 = vld [vmem:[%s9540_s9] sm:$0xff]  ;;  %v288_v61 = vld [vmem:[%s9540_s9 + $0x18] sm:$0xf] }
 0x116   :  { %6292 = vmatpush3.msra.mxu0 %v284_v17  ;;  %v287_v63 = vld [vmem:[%s9540_s9 + $0x10] sm:$0xff]  ;;  %v5455_v46 = vld [vmem:[%s9541_s8 + $0x98] sm:$0xff]  ;;  %vm8827_vm8 = vmpackc.low %vm1485_vm7, %vm8415_vm2 }
 0x117   :  { %6294 = vmatmul.mubr.msk.f32.vlgmr.msra.gmra.mrb[0].mxu0 %vm293_vm0, %v290_v18  ;;  %7330 = vmatprep.subr.bf16.mxu0 %v7285_v3  ;;  %v5478_v8 = vld [vmem:[%s9541_s8 + $0x118] sm:$0xff]  ;;  %v4614_v16 = vld [vmem:[%s8573_s21 + $0x30] sm:$0xff] }
 0x118   :  { %6296 = vmatprep.mubr.msk.f32.mxu0 %vm293_vm0, %v291_v19  ;;  %7332 = vmatpush3.bf16.msra.mxu0 %v7285_v3  ;;  %v1019_v19 = vld [vmem:[%s9541_s8 + $0x20] sm:$0xff] }
 0x119   :  { %7334 = vmatprep.subr.bf16.mxu0 %v8667_v5 }
 0x11b   :  { %6297 = vmatmul.mubr.msk.f32.gmra.mrb[2].mxu0 %vm293_vm0, %v292_v20  ;;  %v1020_v20 = vld [vmem:[%s9541_s8 + $0x28] sm:$0xff] }
 0x11c   :  { %7336 = vmatpush3.bf16.msra.mxu0 %v8667_v5  ;;  %6361 = vmatprep.mubr.msk.f32.mxu0 %vm293_vm0, %v5423_v21  ;;  %v7369_v21 = vpack.c.bf16 %v1020_v20, %v1019_v19  ;;  %v8416_v20 = vmov 0.0|0.0  }
 0x11d   :  { %7338 = vmatprep.subr.bf16.mxu0 %v7293_v13 }
 0x120   :  { %7340 = vmatpush3.bf16.msra.mxu0 %v7293_v13 }
 0x121   :  { %6359 = vmatprep.subr.mxu0 %v284_v17 }
 0x124   :  { %6360 = vmatpush3.msra.mxu0 %v284_v17 }
 0x125   :  { %6362 = vmatmul.mubr.msk.f32.vlgmr.msra.gmra.mrb[4].mxu0 %vm293_vm0, %v5424_v22  ;;  %v1021_v22 = vld [vmem:[%s9541_s8 + $0x30] sm:$0xff] }
 0x126   :  { %6364 = vmatprep.mubr.msk.f32.mxu0 %vm293_vm0, %v5425_v23  ;;  %v1022_v23 = vld [vmem:[%s9541_s8 + $0x38] sm:$0xff] }
 0x129   :  { %6365 = vmatmul.mubr.msk.f32.gmra.mrb[6].mxu0 %vm293_vm0, %v5426_v24  ;;  %v5467_v24 = vld [vmem:[%s9539_s5 + $0x28] sm:$0x3f] }
 0x12a   :  { %6389 = vmatprep.mubr.msk.f32.mxu0 %vm395_vm4, %v929_v53  ;;  %v5458_v53 = vld [vmem:[%s9541_s8 + $0xb0] sm:$0xff] }
 0x1ea   :  { %v6295_v25 = vpop.f32.mrb[0].mxu0 }
 0x1eb   :  { %v372_v26 = vpop.f32.mrb[1].mxu0 }
 0x1ec   :  { %6307 = vmatprep.mubr.msk.f32.mxu1 %vm395_vm4, %v372_v26  ;;  %v1023_v26 = vld [vmem:[%s9541_s8 + $0x40] sm:$0xff] }
 0x1ed   :  { %6308 = vmatmul.mubr.msk.f32.vlgmr.msra.gmra.mrb[0].mxu1 %vm395_vm4, %v6295_v25  ;;  %v7373_v25 = vpack.c.bf16 %v1022_v23, %v1021_v22  ;;  %v928_v22 = vld [vmem:[#allocation2 + $0x8] sm:$0x3f]  ;;  %v927_v23 = vld [vmem:[#allocation2] sm:$0xff] }
 0x1ee   :  { %7310 = vmatpush3.bf16.msra.mxu1 %v7285_v3  ;;  %v6298_v27 = vpop.f32.mrb[2].mxu0 }
 0x1ef   :  { %7312 = vmatprep.subr.bf16.mxu1 %v8667_v5  ;;  %v382_v28 = vpop.f32.mrb[3].mxu0 }
 0x1f0   :  { %6310 = vmatprep.mubr.msk.f32.mxu1 %vm395_vm4, %v382_v28 }
 0x1f1   :  { %6311 = vmatmul.mubr.msk.f32.gmra.mrb[2].mxu1 %vm395_vm4, %v6298_v27  ;;  %v1024_v27 = vld [vmem:[%s9541_s8 + $0x48] sm:$0xff] }
 0x1f2   :  { %7314 = vmatpush3.bf16.msra.mxu1 %v8667_v5  ;;  %6327 = vmatprep.mubr.msk.f32.mxu1 %vm293_vm0, %v5406_v29  ;;  %v7377_v28 = vpack.c.bf16 %v1024_v27, %v1023_v26  ;;  %v1025_v29 = vld [vmem:[%s9541_s8 + $0x50] sm:$0xff] }
 0x1f3   :  { %7316 = vmatprep.subr.bf16.mxu1 %v7293_v13  ;;  %v7381_v31 = vpack.c.bf16 %v1026_v30, %v1025_v29 }
 0x1f6   :  { %7318 = vmatpush3.bf16.msra.mxu1 %v7293_v13  ;;  %v1018_v13 = vld [vmem:[%s9541_s8 + $0x18] sm:$0xff] }
 0x1f7   :  { %6325 = vmatprep.subr.mxu1 %v284_v17  ;;  %v7365_v18 = vpack.c.bf16 %v1018_v13, %v1017_v12  ;;  %v5481_v13 = vld [vmem:[%s9541_s8 + $0x130] sm:$0xff] }
 0x1f8   :  { %v6363_v42 = vpop.f32.mrb[4].mxu0 }
 0x1f9   :  { %v795_v43 = vpop.f32.mrb[5].mxu0 }
 0x1fa   :  { %6326 = vmatpush3.msra.mxu1 %v284_v17  ;;  %v5466_v17 = vld [vmem:[%s9539_s5 + $0x20] sm:$0xff] }
 0x1fb   :  { %6328 = vmatmul.mubr.msk.f32.vlgmr.msra.gmra.mrb[4].mxu1 %vm293_vm0, %v5407_v35  ;;  %7320 = vmatprep.subr.bf16.mxu1 %v7319_v34  ;;  %v5450_v35 = vld [vmem:[%s9541_s8 + $0x70] sm:$0xff] }
 0x1fc   :  { %6330 = vmatprep.mubr.msk.f32.mxu1 %vm293_vm0, %v5408_v36  ;;  %7322 = vmatpush3.bf16.msra.mxu1 %v7319_v34  ;;  %v6366_v44 = vpop.f32.mrb[6].mxu0  ;;  %v7385_v34 = vpack.c.bf16 %v1028_v33, %v1027_v32  ;;  %v5451_v36 = vld [vmem:[%s9541_s8 + $0x78] sm:$0xff]  ;;  %v1560_v32 = vld [vmem:[%s9542_s23 + $0x8] sm:$0xff] }
 0x1fd   :  { %7325 = vmatprep.subr.msk.bf16.mxu1 %vm8679_vm3, %v7323_v37  ;;  %v805_v45 = vpop.f32.mrb[7].mxu0 }
 0x1ff   :  { %6331 = vmatmul.mubr.msk.f32.gmra.mrb[6].mxu1 %vm293_vm0, %v5409_v38  ;;  %v5452_v38 = vld [vmem:[%s9541_s8 + $0x80] sm:$0xff] }
 0x200   :  { %7328 = vmatpush3.bf16.msk.msra.mxu1 %vm8679_vm3, %v7323_v37  ;;  %v7399_v37 = vpack.c.bf16 %v5451_v36, %v5450_v35  ;;  %v1561_v36 = vld [vmem:[%s9542_s23 + $0x10] sm:$0xff] }
 0x201   :  { %7342 = vmatprep.subr.bf16.mxu1 %v7341_v41 }
 0x2ce   :  { %v6329_v48 = vpop.f32.mrb[4].mxu1 }
 0x2cf   :  { %v584_v49 = vpop.f32.mrb[5].mxu1 }
 0x2d0   :  { %6341 = vmatprep.mubr.msk.f32.mxu1 %vm395_vm4, %v584_v49  ;;  %v5457_v49 = vld [vmem:[%s9541_s8 + $0xa8] sm:$0xff] }
 0x2d1   :  { %6342 = vmatmul.mubr.msk.f32.vlgmr.msra.gmra.mrb[0].mxu1 %vm395_vm4, %v6329_v48  ;;  %v5456_v48 = vld [vmem:[%s9541_s8 + $0xa0] sm:$0xff] }
 0x2d2   :  { %v6332_v51 = vpop.f32.mrb[6].mxu1  ;;  %7344 = vmatpush3.bf16.msra.mxu1 %v7341_v41 }
 0x2d3   :  { %v594_v52 = vpop.f32.mrb[7].mxu1  ;;  %7347 = vmatprep.subr.msk.bf16.mxu1 %vm8679_vm3, %v7345_v50 }
 0x2d4   :  { %6344 = vmatprep.mubr.msk.f32.mxu1 %vm395_vm4, %v594_v52 }
 0x2d5   :  { %6345 = vmatmul.mubr.msk.f32.gmra.mrb[2].mxu1 %vm395_vm4, %v6332_v51  ;;  %v7411_v51 = vpack.c.bf16 %v5457_v49, %v5456_v48  ;;  %v1569_v48 = vld [vmem:[%s9542_s23 + $0x50] sm:$0xff]  ;;  %v1570_v49 = vld [vmem:[%s9542_s23 + $0x58] sm:$0xff] }
 0x2d6   :  { %7350 = vmatpush3.bf16.msk.msra.mxu1 %vm8679_vm3, %v7345_v50  ;;  %6375 = vmatprep.mubr.msk.f32.mxu1 %vm395_vm4, %v795_v43  ;;  %v7403_v43 = vpack.c.bf16 %v5453_v39, %v5452_v38  ;;  %v1563_v39 = vld [vmem:[%s9542_s23 + $0x20] sm:$0xff] }
 0x2d9   :  { %6376 = vmatmul.mubr.msk.f32.vlgmr.msra.gmra.mrb[0].mxu1 %vm395_vm4, %v6363_v42 }
 0x2da   :  { %6378 = vmatprep.mubr.msk.f32.mxu1 %vm395_vm4, %v805_v45  ;;  %v5454_v45 = vld [vmem:[%s9541_s8 + $0x90] sm:$0xff] }
 0x2db   :  { %v7407_v47 = vpack.c.bf16 %v5455_v46, %v5454_v45  ;;  %v1567_v45 = vld [vmem:[%s9542_s23 + $0x40] sm:$0xff]  ;;  %v1568_v46 = vld [vmem:[%s9542_s23 + $0x48] sm:$0xff] }
 0x2dd   :  { %6379 = vmatmul.mubr.msk.f32.gmra.mrb[2].mxu1 %vm395_vm4, %v6366_v44 }
 0x2de   :  { %6431 = vmatprep.mubr.msk.f32.mxu1 %vm395_vm4, %v5445_v54  ;;  %v5459_v54 = vld [vmem:[%s9541_s8 + $0xb8] sm:$0xff] }
 0x3ac   :  { %v6377_v57 = vpop.f32.mrb[0].mxu1 }
 0x3ad   :  { %v7900_v58 = vadd.f32 %v6377_v57, %v286_v55  ;;  %v900_v59 = vpop.f32.mrb[1].mxu1  ;;  %v7415_v55 = vpack.c.bf16 %v5459_v54, %v5458_v53  ;;  %v5461_v57 = vld [vmem:[%s9541_s8 + $0xc8] sm:$0xff]  ;;  %v5492_v54 = vld [vmem:[%s9542_s23 + $0x70] sm:$0xff] }
 0x3ae   :  { %v7901_v60 = vadd.f32 %v900_v59, %v285_v56  ;;  %v5460_v56 = vld [vmem:[%s9541_s8 + $0xc0] sm:$0xff]  ;;  %v5462_v59 = vld [vmem:[%s9541_s8 + $0xd0] sm:$0xff] }
 0x3af   :  { %v924_v62 = vmax.f32 %v7900_v58, 0.0  ;;  %v7419_v58 = vpack.c.bf16 %v5461_v57, %v5460_v56 }
 0x3b0   :  { %v923_v0 = vmax.f32 %v7901_v60, 0.0  ;;  %v6380_v1 = vpop.f32.mrb[2].mxu1  ;;  %v5463_v60 = vld [vmem:[%s9541_s8 + $0xd8] sm:$0xff] }
 0x3b1   :  { %v7902_v2 = vadd.f32 %v6380_v1, %v288_v61  ;;  %v910_v3 = vpop.f32.mrb[3].mxu1  ;;  %v7423_v61 = vpack.c.bf16 %v5463_v60, %v5462_v59  ;;  %v5473_v1 = vld [vmem:[%s9541_s8 + $0xf0] sm:$0xff]  ;;  %v5494_v60 = vld [vmem:[%s9542_s23 + $0x80] sm:$0xff] }
 0x3b2   :  { %v7351_v4 = vpack.c.bf16 %v924_v62, %v923_v0  ;;  %v7903_v5 = vadd.f32 %v910_v3, %v287_v63  ;;  %v5471_v62 = vld [vmem:[%s9541_s8 + $0xe0] sm:$0xff]  ;;  %v5472_v63 = vld [vmem:[%s9541_s8 + $0xe8] sm:$0xff] }
 0x3b3   :  { %v926_v6 = vmax.f32 %v7902_v2, 0.0  ;;  %v7437_v0 = vpack.c.bf16 %v5472_v63, %v5471_v62  ;;  %v5474_v2 = vld [vmem:[%s9541_s8 + $0xf8] sm:$0xff]  ;;  %v5496_v63 = vld [vmem:[%s9542_s23 + $0x90] sm:$0xff] }
 0x3b4   :  { %v925_v9 = vmax.f32 %v7903_v5, 0.0  ;;  %7352 = vmatprep.subr.bf16.mxu0 %v7351_v4  ;;  %7390 = vmatprep.subr.bf16.mxu1 %v7351_v4  ;;  %v7441_v3 = vpack.c.bf16 %v5474_v2, %v5473_v1  ;;  %v5476_v5 = vld [vmem:[%s9541_s8 + $0x108] sm:$0xff]  ;;  %v5498_v2 = vld [vmem:[%s9542_s23 + $0xa0] sm:$0xff] }
 0x3b5   :  { %7354 = vmatpush3.bf16.msra.mxu0 %v7351_v4  ;;  %7392 = vmatpush3.bf16.msra.mxu1 %v7351_v4 }
 0x3b6   :  { %v7355_v10 = vpack.c.bf16 %v926_v6, %v925_v9  ;;  %v7449_v9 = vpack.c.bf16 %v5478_v8, %v5477_v7  ;;  %v5502_v8 = vld [vmem:[%s9542_s23 + $0xc0] sm:$0xff] }
 0x3b8   :  { %7357 = vmatprep.subr.msk.bf16.mxu0 %vm8679_vm3, %v7355_v10  ;;  %7395 = vmatprep.subr.msk.bf16.mxu1 %vm8679_vm3, %v7355_v10 }
 0x3b9   :  { %7360 = vmatpush3.bf16.msk.msra.mxu0 %vm8679_vm3, %v7355_v10  ;;  %7398 = vmatpush3.bf16.msk.msra.mxu1 %vm8679_vm3, %v7355_v10 }
 0x3ba   :  { %7428 = vmatprep.subr.bf16.mxu1 %v7351_v4  ;;  %7362 = vmatprep.subr.bf16.mxu0 %v7361_v11 }
 0x3bc   :  { %6390 = vmatmul.mubr.msk.f32.vlgmr.msra.gmra.mrb[8].mxu0 %vm395_vm4, %v930_v14  ;;  %6432 = vmatmul.mubr.msk.f32.vlgmr.msra.gmra.mrb[8].mxu1 %vm395_vm4, %v5446_v15  ;;  %v5482_v14 = vld [vmem:[%s9541_s8 + $0x138] sm:$0xff] }
 0x3bd   :  { %7430 = vmatpush3.bf16.msra.mxu1 %v7351_v4  ;;  %6473 = vmatprep.mubr.msk.f32.mxu1 %vm395_vm4, %v5466_v17  ;;  %v5475_v4 = vld [vmem:[%s9541_s8 + $0x100] sm:$0xff]  ;;  %v7457_v15 = vpack.c.bf16 %v5482_v14, %v5481_v13 }
 0x3be   :  { %7433 = vmatprep.subr.msk.bf16.mxu1 %vm8679_vm3, %v7355_v10  ;;  %7364 = vmatpush3.bf16.msra.mxu0 %v7361_v11  ;;  %v7445_v6 = vpack.c.bf16 %v5476_v5, %v5475_v4  ;;  %v5480_v11 = vld [vmem:[%s9541_s8 + $0x128] sm:$0xff]  ;;  %v5483_v17 = vld [vmem:[%s9541_s8 + $0x140] sm:$0xff]  ;;  %v5500_v5 = vld [vmem:[%s9542_s23 + $0xb0] sm:$0xff] }
 0x3bf   :  { %7366 = vmatprep.subr.bf16.mxu0 %v7365_v18  ;;  %v5509_v14 = vld [vmem:[%s9542_s23 + $0xe0] sm:$0xff] }
 0x3c1   :  { %7436 = vmatpush3.bf16.msk.msra.mxu1 %vm8679_vm3, %v7355_v10  ;;  %v5479_v10 = vld [vmem:[%s9541_s8 + $0x120] sm:$0xff] }
 0x3c2   :  { %7368 = vmatpush3.bf16.msra.mxu0 %v7365_v18  ;;  %v7453_v12 = vpack.c.bf16 %v5480_v11, %v5479_v10  ;;  %v5484_v18 = vld [vmem:[%s9541_s8 + $0x148] sm:$0xff]  ;;  %7465 = vmatprep.subr.bf16.mxu1 %v8416_v20  ;;  %v5504_v11 = vld [vmem:[%s9542_s23 + $0xd0] sm:$0xff] }
 0x3c3   :  { %7370 = vmatprep.subr.bf16.mxu0 %v7369_v21  ;;  %v7461_v19 = vpack.c.bf16 %v5484_v18, %v5483_v17 }
 0x3c4   :  { %6474 = vmatmul.mubr.msk.f32.vlgmr.msra.gmra.mrb[10].mxu1 %vm395_vm4, %v5467_v24 }
 0x3c6   :  { %7372 = vmatpush3.bf16.msra.mxu0 %v7369_v21  ;;  %v8418_v21 = vmov 0.0  }
 0x3c7   :  { %7374 = vmatprep.subr.bf16.mxu0 %v7373_v25  ;;  %6511 = vmatprep.mubr.msk.f32.mxu1 %vm8417_vm6, %v8418_v21 }
 0x3ca   :  { %7376 = vmatpush3.bf16.msra.mxu0 %v7373_v25 }
 0x3cb   :  { %7378 = vmatprep.subr.bf16.mxu0 %v7377_v28 }
 0x3ce   :  { %7380 = vmatpush3.bf16.msra.mxu0 %v7377_v28 }
 0x3cf   :  { %7382 = vmatprep.subr.bf16.mxu0 %v7381_v31 }
 0x3d2   :  { %7384 = vmatpush3.bf16.msra.mxu0 %v7381_v31  ;;  %v1559_v31 = vld [vmem:[%s9542_s23] sm:$0xff] }
 0x3d3   :  { %7386 = vmatprep.subr.bf16.mxu0 %v7385_v34  ;;  %v7470_v35 = vpack.c.bf16 %v1560_v32, %v1559_v31  ;;  %v5516_v31 = vld [vmem:[%s9542_s23 + $0x118] sm:$0xff] }
 0x3d6   :  { %7388 = vmatpush3.bf16.msra.mxu0 %v7385_v34  ;;  %v1480_v34 = vld [vmem:[#allocation5] sm:$0x3f] }
 0x3d7   :  { %7400 = vmatprep.subr.bf16.mxu0 %v7399_v37 }
 0x48f   :  { %v6391_v40 = vpop.f32.mrb[8].mxu0  ;;  %v6433_v41 = vpop.f32.mrb[8].mxu1 }
 0x490   :  { %v1006_v42 = vpop.f32.mrb[9].mxu0  ;;  %v1188_v44 = vpop.f32.mrb[9].mxu1 }
 0x491   :  { %6420 = vmatprep.mubr.msk.f32.mxu0 %vm1029_vm5, %v1006_v42  ;;  %v1565_v42 = vld [vmem:[%s9542_s23 + $0x30] sm:$0xff] }
 0x492   :  { %6421 = vmatmul.mubr.msk.f32.vlgmr.msra.gmra.mrb[10].mxu0 %vm1029_vm5, %v6391_v40  ;;  %v1564_v40 = vld [vmem:[%s9542_s23 + $0x28] sm:$0xff] }
 0x493   :  { %7402 = vmatpush3.bf16.msra.mxu0 %v7399_v37  ;;  %6462 = vmatprep.mubr.msk.f32.mxu0 %vm1029_vm5, %v1188_v44  ;;  %v1562_v37 = vld [vmem:[%s9542_s23 + $0x18] sm:$0xff] }
 0x494   :  { %7404 = vmatprep.subr.bf16.mxu0 %v7403_v43  ;;  %v7473_v38 = vpack.c.bf16 %v1562_v37, %v1561_v36  ;;  %v5519_v36 = vld [vmem:[%s9542_s23 + $0x130] sm:$0xff]  ;;  %v5520_v37 = vld [vmem:[%s9542_s23 + $0x138] sm:$0xff] }
 0x497   :  { %7406 = vmatpush3.bf16.msra.mxu0 %v7403_v43  ;;  %v6475_v50 = vpop.f32.mrb[10].mxu1  ;;  %v1566_v43 = vld [vmem:[%s9542_s23 + $0x38] sm:$0xff] }
 0x498   :  { %7408 = vmatprep.subr.bf16.mxu0 %v7407_v47  ;;  %v1370_v52 = vpop.f32.mrb[11].mxu1  ;;  %v7479_v44 = vpack.c.bf16 %v1566_v43, %v1565_v42 }
 0x49b   :  { %7410 = vmatpush3.bf16.msra.mxu0 %v7407_v47  ;;  %v7482_v47 = vpack.c.bf16 %v1568_v46, %v1567_v45  ;;  %v2056_v45 = vld [vmem:[%s9545_s26 + $0x8] sm:$0xff]  ;;  %v2057_v46 = vld [vmem:[%s9545_s26 + $0x10] sm:$0xff] }
 0x49c   :  { %7412 = vmatprep.subr.bf16.mxu0 %v7411_v51 }
 0x49f   :  { %7414 = vmatpush3.bf16.msra.mxu0 %v7411_v51  ;;  %v1571_v51 = vld [vmem:[%s9542_s23 + $0x60] sm:$0xff] }
 0x4a0   :  { %7416 = vmatprep.subr.bf16.mxu0 %v7415_v55 }
 0x4a3   :  { %7418 = vmatpush3.bf16.msra.mxu0 %v7415_v55  ;;  %v5493_v55 = vld [vmem:[%s9542_s23 + $0x78] sm:$0xff] }
 0x4a4   :  { %7420 = vmatprep.subr.bf16.mxu0 %v7419_v58  ;;  %v7495_v59 = vpack.c.bf16 %v5493_v55, %v5492_v54  ;;  %v2062_v54 = vld [vmem:[%s9545_s26 + $0x38] sm:$0xff] }
 0x4a7   :  { %7422 = vmatpush3.bf16.msra.mxu0 %v7419_v58  ;;  %v1648_v58 = vld [vmem:[#allocation5 + $0x8] sm:$0x3f] }
 0x4a8   :  { %7424 = vmatprep.subr.bf16.mxu0 %v7423_v61 }
 0x4ab   :  { %7426 = vmatpush3.bf16.msra.mxu0 %v7423_v61  ;;  %v5495_v61 = vld [vmem:[%s9542_s23 + $0x88] sm:$0xff] }
 0x4ac   :  { %7438 = vmatprep.subr.bf16.mxu0 %v7437_v0  ;;  %v7498_v62 = vpack.c.bf16 %v5495_v61, %v5494_v60  ;;  %v2066_v60 = vld [vmem:[%s9545_s26 + $0x58] sm:$0xff] }
 0x4ae   :  { %6463 = vmatmul.mubr.msk.f32.vlgmr.msra.gmra.mrb[10].mxu0 %vm1029_vm5, %v6433_v41  ;;  %v7476_v41 = vpack.c.bf16 %v1564_v40, %v1563_v39  ;;  %v5521_v39 = vld [vmem:[%s9542_s23 + $0x140] sm:$0xff]  ;;  %v5522_v40 = vld [vmem:[%s9542_s23 + $0x148] sm:$0xff] }
 0x4af   :  { %7440 = vmatpush3.bf16.msra.mxu0 %v7437_v0  ;;  %6504 = vmatprep.mubr.msk.f32.mxu0 %vm1029_vm5, %v1370_v52  ;;  %v1572_v52 = vld [vmem:[%s9542_s23 + $0x68] sm:$0xff]  ;;  %v5497_v0 = vld [vmem:[%s9542_s23 + $0x98] sm:$0xff] }
 0x4b0   :  { %7442 = vmatprep.subr.bf16.mxu0 %v7441_v3  ;;  %v7488_v53 = vpack.c.bf16 %v1572_v52, %v1571_v51  ;;  %v7501_v1 = vpack.c.bf16 %v5497_v0, %v5496_v63  ;;  %v2060_v51 = vld [vmem:[%s9545_s26 + $0x28] sm:$0xff] }
 0x4b3   :  { %7444 = vmatpush3.bf16.msra.mxu0 %v7441_v3  ;;  %v5499_v3 = vld [vmem:[%s9542_s23 + $0xa8] sm:$0xff] }
 0x4b4   :  { %7446 = vmatprep.subr.bf16.mxu0 %v7445_v6  ;;  %v7504_v4 = vpack.c.bf16 %v5499_v3, %v5498_v2  ;;  %v1977_v3 = vld [vmem:[#allocation8] sm:$0x3] }
 0x4b7   :  { %7448 = vmatpush3.bf16.msra.mxu0 %v7445_v6  ;;  %v5501_v6 = vld [vmem:[%s9542_s23 + $0xb8] sm:$0xff] }
 0x4b8   :  { %7450 = vmatprep.subr.bf16.mxu0 %v7449_v9  ;;  %v7507_v7 = vpack.c.bf16 %v5501_v6, %v5500_v5  ;;  %v5529_v5 = vld [vmem:[%s9545_s26 + $0x60] sm:$0xff]  ;;  %v5530_v6 = vld [vmem:[%s9545_s26 + $0x68] sm:$0xff] }
 0x4bb   :  { %7452 = vmatpush3.bf16.msra.mxu0 %v7449_v9  ;;  %v5503_v9 = vld [vmem:[%s9542_s23 + $0xc8] sm:$0xff] }
 0x4bc   :  { %7454 = vmatprep.subr.bf16.mxu0 %v7453_v12  ;;  %v7510_v10 = vpack.c.bf16 %v5503_v9, %v5502_v8  ;;  %v2143_v9 = vld [vmem:[#allocation8 + $0x2] sm:$0x3] }
 0x4bf   :  { %7456 = vmatpush3.bf16.msra.mxu0 %v7453_v12  ;;  %v5505_v12 = vld [vmem:[%s9542_s23 + $0xd8] sm:$0xff] }
 0x4c0   :  { %7458 = vmatprep.subr.bf16.mxu0 %v7457_v15  ;;  %v7513_v13 = vpack.c.bf16 %v5505_v12, %v5504_v11  ;;  %v5531_v11 = vld [vmem:[%s9545_s26 + $0x70] sm:$0xff]  ;;  %v5532_v12 = vld [vmem:[%s9545_s26 + $0x78] sm:$0xff] }
 0x4c3   :  { %7460 = vmatpush3.bf16.msra.mxu0 %v7457_v15  ;;  %v5510_v15 = vld [vmem:[%s9542_s23 + $0xe8] sm:$0xff] }
 0x4c4   :  { %7462 = vmatprep.subr.bf16.mxu0 %v7461_v19 }
 0x4c7   :  { %7464 = vmatpush3.bf16.msra.mxu0 %v7461_v19  ;;  %v1812_v19 = vld [vmem:[#allocation5 + $0x10] sm:$0x3f] }
 0x4c8   :  { %7540 = vmatprep.subr.bf16.mxu0 %v8416_v20 }
 0x4ca   :  { %6505 = vmatmul.mubr.msk.f32.vlgmr.msra.gmra.mrb[10].mxu0 %vm1029_vm5, %v6475_v50  ;;  %v7485_v50 = vpack.c.bf16 %v1570_v49, %v1569_v48  ;;  %v2058_v48 = vld [vmem:[%s9545_s26 + $0x18] sm:$0xff] }
 0x4cb   :  { %6650 = vmatprep.mubr.msk.f32.mxu0 %vm8417_vm6, %v8418_v21  ;;  %v7544_v49 = vpack.c.bf16 %v2058_v48, %v2057_v46  ;;  %v5552_v46 = vld [vmem:[%s9545_s26 + $0x100] sm:$0xff] }
 0x59d   :  { %v6506_v24 = vpop.f32.mrb[10].mxu0 }
 0x59e   :  { %v7904_v25 = vadd.f32 %v6506_v24, %v928_v22  ;;  %v1466_v26 = vpop.f32.mrb[11].mxu0  ;;  %v7520_v22 = vpack.c.bf16 %v5510_v15, %v5509_v14  ;;  %v5512_v24 = vld [vmem:[%s9542_s23 + $0xf8] sm:$0xff]  ;;  %v5533_v14 = vld [vmem:[%s9545_s26 + $0x80] sm:$0xff]  ;;  %v5534_v15 = vld [vmem:[%s9545_s26 + $0x88] sm:$0xff] }
 0x59f   :  { %v7905_v27 = vadd.f32 %v1466_v26, %v927_v23  ;;  %v5511_v23 = vld [vmem:[%s9542_s23 + $0xf0] sm:$0xff]  ;;  %v5513_v26 = vld [vmem:[%s9542_s23 + $0x100] sm:$0xff] }
 0x5a0   :  { %v1478_v28 = vmax.f32 %v7904_v25, 0.0  ;;  %v7523_v25 = vpack.c.bf16 %v5512_v24, %v5511_v23  ;;  %v5537_v23 = vld [vmem:[%s9545_s26 + $0xa0] sm:$0xff]  ;;  %v5538_v24 = vld [vmem:[%s9545_s26 + $0xa8] sm:$0xff] }
 0x5a1   :  { %v1477_v29 = vmax.f32 %v7905_v27, 0.0  ;;  %v5514_v27 = vld [vmem:[%s9542_s23 + $0x108] sm:$0xff] }
 0x5a3   :  { %v8833_v33 = vpack.c.bf16 %v1478_v28, %v1477_v29  ;;  %v7526_v28 = vpack.c.bf16 %v5514_v27, %v5513_v26  ;;  %v5515_v29 = vld [vmem:[%s9542_s23 + $0x110] sm:$0xff]  ;;  %v5540_v27 = vld [vmem:[%s9545_s26 + $0xb8] sm:$0xff] }
 0x5a4   :  { %v7529_v32 = vpack.c.bf16 %v5516_v31, %v5515_v29  ;;  %v5539_v26 = vld [vmem:[%s9545_s26 + $0xb0] sm:$0xff] }
 0x5a5   :  { %7468 = vmatpush3.bf16.msk.msra.mxu1 %vm8827_vm8, %v8833_v33 }
 0x5a6   :  { %7469 = vmatprep.subr.bf16.mxu1 %v8416_v20 }
 0x5a8   :  { %6512 = vmatmul.mubr.msk.f32.vlgmr.msra.gmra.mrb[12].mxu1 %vm1481_vm9, %v1480_v34  ;;  %v5518_v34 = vld [vmem:[%s9542_s23 + $0x128] sm:$0xff] }
 0x5a9   :  { %7471 = vmatpush3.bf16.msra.mxu1 %v7470_v35  ;;  %6542 = vmatprep.mubr.msk.f32.mxu1 %vm8417_vm6, %v8418_v21 }
 0x5aa   :  { %7472 = vmatprep.subr.bf16.mxu1 %v8416_v20 }
 0x5ad   :  { %7474 = vmatpush3.bf16.msra.mxu1 %v7473_v38  ;;  %v7535_v38 = vpack.c.bf16 %v5520_v37, %v5519_v36  ;;  %v5547_v36 = vld [vmem:[%s9545_s26 + $0xd8] sm:$0xff] }
 0x5ae   :  { %7475 = vmatprep.subr.bf16.mxu1 %v8416_v20 }
 0x5b1   :  { %7477 = vmatpush3.bf16.msra.mxu1 %v7476_v41  ;;  %v7538_v41 = vpack.c.bf16 %v5522_v40, %v5521_v39  ;;  %v5548_v40 = vld [vmem:[%s9545_s26 + $0xe0] sm:$0xff] }
 0x5b2   :  { %7478 = vmatprep.subr.bf16.mxu1 %v8416_v20 }
 0x5b5   :  { %7480 = vmatpush3.bf16.msra.mxu1 %v7479_v44  ;;  %v2055_v44 = vld [vmem:[%s9545_s26] sm:$0xff] }
 0x5b6   :  { %7481 = vmatprep.subr.bf16.mxu1 %v8416_v20 }
 0x5b9   :  { %7483 = vmatpush3.bf16.msra.mxu1 %v7482_v47  ;;  %v7541_v47 = vpack.c.bf16 %v2056_v45, %v2055_v44  ;;  %v5551_v44 = vld [vmem:[%s9545_s26 + $0xf8] sm:$0xff] }
 0x5ba   :  { %7484 = vmatprep.subr.bf16.mxu1 %v8416_v20 }
 0x5bb   :  { %7542 = vmatpush3.bf16.msra.mxu0 %v7541_v47  ;;  %v5553_v47 = vld [vmem:[%s9545_s26 + $0x108] sm:$0xff] }
 0x5bc   :  { %7543 = vmatprep.subr.bf16.mxu0 %v8416_v20  ;;  %v7589_v48 = vpack.c.bf16 %v5553_v47, %v5552_v46 }
 0x5bd   :  { %7486 = vmatpush3.bf16.msra.mxu1 %v7485_v50  ;;  %v2059_v50 = vld [vmem:[%s9545_s26 + $0x20] sm:$0xff] }
 0x5be   :  { %7487 = vmatprep.subr.bf16.mxu1 %v8416_v20  ;;  %v7547_v52 = vpack.c.bf16 %v2060_v51, %v2059_v50  ;;  %v5555_v50 = vld [vmem:[%s9545_s26 + $0x118] sm:$0xff] }
 0x5bf   :  { %7545 = vmatpush3.bf16.msra.mxu0 %v7544_v49  ;;  %v5554_v49 = vld [vmem:[%s9545_s26 + $0x110] sm:$0xff] }
 0x5c0   :  { %7546 = vmatprep.subr.bf16.mxu0 %v8416_v20  ;;  %v7592_v51 = vpack.c.bf16 %v5555_v50, %v5554_v49  ;;  %v5573_v50 = vld [vmem:[%s9547_s29 + $0x60] sm:$0xff] }
 0x5c1   :  { %7489 = vmatpush3.bf16.msra.mxu1 %v7488_v53  ;;  %v2061_v53 = vld [vmem:[%s9545_s26 + $0x30] sm:$0xff] }
 0x5c2   :  { %7490 = vmatprep.subr.bf16.mxu1 %v8416_v20  ;;  %v7550_v55 = vpack.c.bf16 %v2062_v54, %v2061_v53  ;;  %v2547_v54 = vld [vmem:[%s9546_s0] sm:$0xff] }
 0x5c3   :  { %7548 = vmatpush3.bf16.msra.mxu0 %v7547_v52  ;;  %v1976_v52 = vld [vmem:[#allocation10] sm:$0x3] }
 0x5c4   :  { %7549 = vmatprep.subr.bf16.mxu0 %v8416_v20 }
 0x5c7   :  { %7551 = vmatpush3.bf16.msra.mxu0 %v7550_v55  ;;  %v2548_v55 = vld [vmem:[%s9546_s0 + $0x8] sm:$0xff] }
 0x5c8   :  { %7552 = vmatprep.subr.bf16.mxu0 %v8416_v20 }
 0x67b   :  { %v1555_v56 = vpop.f32.mrb[12].mxu1 }
 0x67c   :  { %v6513_v57 = vpop.f32.mrb[13].mxu1  ;;  %6543 = vmatmul.mubr.msk.f32.vlgmr.msra.gmra.mrb[14].mxu1 %vm1029_vm5, %v1555_v56  ;;  %v2063_v56 = vld [vmem:[%s9545_s26 + $0x40] sm:$0xff] }
 0x67d   :  { %7493 = vmatpush3.bf16.msk.msra.mxu1 %vm8827_vm8, %v8833_v33  ;;  %6549 = vmatprep.mubr.msk.f32.mxu1 %vm8417_vm6, %v8418_v21  ;;  %v2064_v57 = vld [vmem:[%s9545_s26 + $0x48] sm:$0xff] }
 0x67e   :  { %7494 = vmatprep.subr.bf16.mxu1 %v8416_v20 }
 0x680   :  { %6550 = vmatmul.mubr.msk.f32.vlgmr.msra.gmra.mrb[16].mxu1 %vm1481_vm9, %v1648_v58  ;;  %v7553_v58 = vpack.c.bf16 %v2064_v57, %v2063_v56 }
 0x681   :  { %7496 = vmatpush3.bf16.msra.mxu1 %v7495_v59  ;;  %6580 = vmatprep.mubr.msk.f32.mxu1 %vm8417_vm6, %v8418_v21  ;;  %v2065_v59 = vld [vmem:[%s9545_s26 + $0x50] sm:$0xff] }
 0x682   :  { %7497 = vmatprep.subr.bf16.mxu1 %v8416_v20  ;;  %7554 = vmatpush3.bf16.msra.mxu0 %v7553_v58  ;;  %v7556_v61 = vpack.c.bf16 %v2066_v60, %v2065_v59  ;;  %v2468_v59 = vld [vmem:[#allocation11] sm:$0x3]  ;;  %v7595_v60 = vpack.c.bf16 %v2548_v55, %v2547_v54  ;;  %v5575_v55 = vld [vmem:[%s9547_s29 + $0x70] sm:$0xff] }
 0x683   :  { %7555 = vmatprep.subr.bf16.mxu0 %v8416_v20 }
 0x685   :  { %7499 = vmatpush3.bf16.msra.mxu1 %v7498_v62  ;;  %v1479_v62 = vld [vmem:[#allocation7] sm:$0x3f] }
 0x686   :  { %7500 = vmatprep.subr.bf16.mxu1 %v8416_v20  ;;  %7557 = vmatpush3.bf16.msra.mxu0 %v7556_v61  ;;  %v2549_v61 = vld [vmem:[%s9546_s0 + $0x10] sm:$0xff] }
 0x687   :  { %6653 = vmatprep.subr.mxu0 %v8418_v21 }
 0x689   :  { %7502 = vmatpush3.bf16.msra.mxu1 %v7501_v1 }
 0x68a   :  { %7503 = vmatprep.subr.bf16.mxu1 %v8416_v20 }
 0x68d   :  { %7505 = vmatpush3.bf16.msra.mxu1 %v7504_v4  ;;  %v2305_v4 = vld [vmem:[#allocation8 + $0x4] sm:$0x3] }
 0x68e   :  { %7506 = vmatprep.subr.bf16.mxu1 %v8416_v20 }
 0x691   :  { %7508 = vmatpush3.bf16.msra.mxu1 %v7507_v7 }
 0x692   :  { %7509 = vmatprep.subr.bf16.mxu1 %v8416_v20 }
 0x695   :  { %7511 = vmatpush3.bf16.msra.mxu1 %v7510_v10  ;;  %v7559_v10 = vpack.c.bf16 %v5530_v6, %v5529_v5 }
 0x696   :  { %7512 = vmatprep.subr.bf16.mxu1 %v8416_v20 }
 0x699   :  { %7514 = vmatpush3.bf16.msra.mxu1 %v7513_v13  ;;  %v7562_v13 = vpack.c.bf16 %v5532_v12, %v5531_v11  ;;  %v2631_v12 = vld [vmem:[#allocation14] sm:$0x3] }
 0x69a   :  { %7515 = vmatprep.subr.bf16.mxu1 %v8416_v20 }
 0x753   :  { %v1718_v17 = vpop.f32.mrb[16].mxu1 }
 0x754   :  { %v6551_v18 = vpop.f32.mrb[17].mxu1  ;;  %6581 = vmatmul.mubr.msk.f32.vlgmr.msra.gmra.mrb[14].mxu1 %vm1029_vm5, %v1718_v17  ;;  %v7565_v17 = vpack.c.bf16 %v5534_v15, %v5533_v14 }
 0x755   :  { %7518 = vmatpush3.bf16.msk.msra.mxu1 %vm8827_vm8, %v8833_v33  ;;  %6587 = vmatprep.mubr.msk.f32.mxu1 %vm8417_vm6, %v8418_v21  ;;  %v5517_v33 = vld [vmem:[%s9542_s23 + $0x120] sm:$0xff]  ;;  %v5535_v18 = vld [vmem:[%s9545_s26 + $0x90] sm:$0xff] }
 0x756   :  { %7519 = vmatprep.subr.bf16.mxu1 %v8416_v20  ;;  %v7532_v35 = vpack.c.bf16 %v5518_v34, %v5517_v33  ;;  %v5545_v33 = vld [vmem:[%s9545_s26 + $0xc8] sm:$0xff] }
 0x758   :  { %6588 = vmatmul.mubr.msk.f32.vlgmr.msra.gmra.mrb[18].mxu1 %vm1481_vm9, %v1812_v19  ;;  %v5536_v19 = vld [vmem:[%s9545_s26 + $0x98] sm:$0xff] }
 0x759   :  { %7521 = vmatpush3.bf16.msra.mxu1 %v7520_v22  ;;  %6618 = vmatprep.mubr.msk.f32.mxu1 %vm8417_vm6, %v8418_v21  ;;  %v7568_v22 = vpack.c.bf16 %v5536_v19, %v5535_v18 }
 0x75a   :  { %7522 = vmatprep.subr.bf16.mxu1 %v8416_v20 }
 0x75d   :  { %7524 = vmatpush3.bf16.msra.mxu1 %v7523_v25  ;;  %v7571_v25 = vpack.c.bf16 %v5538_v24, %v5537_v23  ;;  %v2863_v23 = vld [vmem:[%s9547_s29] sm:$0xff]  ;;  %v2864_v24 = vld [vmem:[%s9547_s29 + $0x8] sm:$0xff] }
 0x75e   :  { %7525 = vmatprep.subr.bf16.mxu1 %v8416_v20 }
 0x761   :  { %7527 = vmatpush3.bf16.msra.mxu1 %v7526_v28  ;;  %v7574_v28 = vpack.c.bf16 %v5540_v27, %v5539_v26  ;;  %v2786_v26 = vld [vmem:[%s9548_s19] sm:$0x3f]  ;;  %v5566_v27 = vld [vmem:[%s9548_s19 + $0x8] sm:$0x3f] }
 0x762   :  { %7528 = vmatprep.subr.bf16.mxu1 %v8416_v20 }
 0x765   :  { %7530 = vmatpush3.bf16.msra.mxu1 %v7529_v32  ;;  %v5544_v32 = vld [vmem:[%s9545_s26 + $0xc0] sm:$0xff] }
 0x766   :  { %7531 = vmatprep.subr.bf16.mxu1 %v8416_v20  ;;  %v7577_v34 = vpack.c.bf16 %v5545_v33, %v5544_v32  ;;  %v5578_v32 = vld [vmem:[%s9548_s19 + $0x10] sm:$0x3f] }
 0x769   :  { %7533 = vmatpush3.bf16.msra.mxu1 %v7532_v35  ;;  %v5546_v35 = vld [vmem:[%s9545_s26 + $0xd0] sm:$0xff] }
 0x76a   :  { %7534 = vmatprep.subr.bf16.mxu1 %v8416_v20  ;;  %v7580_v39 = vpack.c.bf16 %v5547_v36, %v5546_v35  ;;  %v2868_v35 = vld [vmem:[%s9547_s29 + $0x28] sm:$0xff] }
 0x76d   :  { %7536 = vmatpush3.bf16.msra.mxu1 %v7535_v38 }
 0x76e   :  { %7537 = vmatprep.subr.bf16.mxu1 %v8416_v20 }
 0x771   :  { %7539 = vmatpush3.bf16.msra.mxu1 %v7538_v41  ;;  %v5549_v41 = vld [vmem:[%s9545_s26 + $0xe8] sm:$0xff] }
 0x772   :  { %6621 = vmatprep.subr.mxu1 %v8418_v21 }
 0x82b   :  { %v1882_v42 = vpop.f32.mrb[18].mxu1 }
 0x82c   :  { %v6589_v43 = vpop.f32.mrb[19].mxu1  ;;  %6619 = vmatmul.mubr.msk.f32.vlgmr.msra.gmra.mrb[14].mxu1 %vm1029_vm5, %v1882_v42  ;;  %v7583_v42 = vpack.c.bf16 %v5549_v41, %v5548_v40  ;;  %v5569_v40 = vld [vmem:[%s9547_s29 + $0x40] sm:$0xff]  ;;  %v5570_v41 = vld [vmem:[%s9547_s29 + $0x48] sm:$0xff] }
 0x82d   :  { %6623 = vmatprep.mubr.msk.f32.mxu1 %vm8417_vm6, %v8418_v21  ;;  %v5550_v43 = vld [vmem:[%s9545_s26 + $0xf0] sm:$0xff] }
 0x82e   :  { %v7586_v45 = vpack.c.bf16 %v5551_v44, %v5550_v43  ;;  %v5571_v43 = vld [vmem:[%s9547_s29 + $0x50] sm:$0xff]  ;;  %v5572_v44 = vld [vmem:[%s9547_s29 + $0x58] sm:$0xff] }
 0x8ff   :  { %v1970_v63 = vpop.f32.mrb[14].mxu1 }
 0x900   :  { %v7906_v0 = vadd.f32 %v1970_v63, %v1479_v62  ;;  %v6620_v1 = vpop.f32.mrb[15].mxu1  ;;  %v2550_v62 = vld [vmem:[%s9546_s0 + $0x18] sm:$0xff] }
 0x901   :  { %v7598_v63 = vpack.c.bf16 %v2550_v62, %v2549_v61  ;;  %v2552_v1 = vld [vmem:[%s9546_s0 + $0x28] sm:$0xff]  ;;  %v5583_v61 = vld [vmem:[%s9547_s29 + $0x90] sm:$0xff]  ;;  %v5584_v62 = vld [vmem:[%s9547_s29 + $0x98] sm:$0xff] }
 0x902   :  { %v1975_v2 = vmax.f32 %v7906_v0, 0.0  ;;  %v2551_v0 = vld [vmem:[%s9546_s0 + $0x20] sm:$0xff] }
 0x904   :  { %6622 = vmatpush3.msk.msra.mxu1 %vm1485_vm7, %v1975_v2 }
 0x905   :  { %6624 = vmatmul.mubr.msk.f32.vlgmr.msra.gmra.mrb[20].mxu1 %vm1978_vm10, %v1977_v3  ;;  %6685 = vmatprep.subr.mxu1 %v8418_v21  ;;  %v2553_v3 = vld [vmem:[%s9546_s0 + $0x30] sm:$0xff] }
 0x906   :  { %6686 = vmatpush3.msk.msra.mxu1 %vm1485_vm7, %v1975_v2  ;;  %6687 = vmatprep.mubr.msk.f32.mxu1 %vm8417_vm6, %v8418_v21 }
 0x907   :  { %6717 = vmatprep.subr.mxu1 %v8418_v21 }
 0x909   :  { %6688 = vmatmul.mubr.msk.f32.vlgmr.msra.gmra.mrb[22].mxu1 %vm1978_vm10, %v2305_v4  ;;  %v2554_v4 = vld [vmem:[%s9546_s0 + $0x38] sm:$0xff] }
 0x90a   :  { %6719 = vmatprep.mubr.msk.f32.mxu1 %vm8417_vm6, %v8418_v21  ;;  %v7604_v5 = vpack.c.bf16 %v2554_v4, %v2553_v3  ;;  %v5587_v3 = vld [vmem:[%s9547_s29 + $0xb0] sm:$0xff]  ;;  %v5588_v4 = vld [vmem:[%s9547_s29 + $0xb8] sm:$0xff] }
 0x9d8   :  { %v2051_v7 = vpop.f32.mrb[20].mxu1 }
 0x9d9   :  { %v6625_v8 = vpop.f32.mrb[21].mxu1  ;;  %6651 = vmatmul.mubr.msk.f32.vlgmr.msra.gmra.mrb[12].mxu0 %vm2067_vm11, %v2051_v7 }
 0x9da   :  { %6654 = vmatpush3.msk.msra.mxu0 %vm1485_vm7, %v1975_v2  ;;  %6655 = vmatprep.mubr.msk.f32.mxu0 %vm8417_vm6, %v8418_v21  ;;  %v7601_v2 = vpack.c.bf16 %v2552_v1, %v2551_v0  ;;  %v2467_v8 = vld [vmem:[#allocation13] sm:$0x3]  ;;  %v5585_v0 = vld [vmem:[%s9547_s29 + $0xa0] sm:$0xff]  ;;  %v5586_v1 = vld [vmem:[%s9547_s29 + $0xa8] sm:$0xff] }
 0x9db   :  { %7558 = vmatprep.subr.bf16.mxu0 %v8416_v20 }
 0x9dc   :  { %v2375_v29 = vpop.f32.mrb[22].mxu1 }
 0x9dd   :  { %6656 = vmatmul.mubr.msk.f32.vlgmr.msra.gmra.mrb[14].mxu0 %vm1978_vm10, %v2143_v9  ;;  %v6689_v31 = vpop.f32.mrb[23].mxu1 }
 0x9de   :  { %7560 = vmatpush3.bf16.msra.mxu0 %v7559_v10  ;;  %6682 = vmatprep.mubr.msk.f32.mxu0 %vm8417_vm6, %v8418_v21  ;;  %v2866_v31 = vld [vmem:[%s9547_s29 + $0x18] sm:$0xff] }
 0x9df   :  { %7561 = vmatprep.subr.bf16.mxu0 %v8416_v20 }
 0x9e2   :  { %7563 = vmatpush3.bf16.msra.mxu0 %v7562_v13  ;;  %v2708_v13 = vld [vmem:[#allocation16] sm:$0xff] }
 0x9e3   :  { %7564 = vmatprep.subr.bf16.mxu0 %v8416_v20 }
 0x9e6   :  { %7566 = vmatpush3.bf16.msra.mxu0 %v7565_v17  ;;  %v2630_v17 = vld [vmem:[#allocation17] sm:$0x3] }
 0x9e7   :  { %7567 = vmatprep.subr.bf16.mxu0 %v8416_v20 }
 0x9ea   :  { %7569 = vmatpush3.bf16.msra.mxu0 %v7568_v22 }
 0x9eb   :  { %7570 = vmatprep.subr.bf16.mxu0 %v8416_v20 }
 0x9ee   :  { %7572 = vmatpush3.bf16.msra.mxu0 %v7571_v25 }
 0x9ef   :  { %7573 = vmatprep.subr.bf16.mxu0 %v8416_v20 }
 0x9f2   :  { %7575 = vmatpush3.bf16.msra.mxu0 %v7574_v28  ;;  %v7607_v28 = vpack.c.bf16 %v2864_v24, %v2863_v23  ;;  %v5614_v23 = vld [vmem:[%s9549_s28 + $0x20] sm:$0xff] }
 0x9f3   :  { %7576 = vmatprep.subr.bf16.mxu0 %v8416_v20 }
 0xab0   :  { %v2213_v37 = vpop.f32.mrb[14].mxu0 }
 0xab1   :  { %v6657_v38 = vpop.f32.mrb[15].mxu0  ;;  %6683 = vmatmul.mubr.msk.f32.vlgmr.msra.gmra.mrb[12].mxu0 %vm2067_vm11, %v2213_v37  ;;  %v2869_v37 = vld [vmem:[%s9547_s29 + $0x30] sm:$0xff] }
 0xab2   :  { %7578 = vmatpush3.bf16.msra.mxu0 %v7577_v34  ;;  %6714 = vmatprep.mubr.msk.f32.mxu0 %vm8417_vm6, %v8418_v21  ;;  %v2867_v34 = vld [vmem:[%s9547_s29 + $0x20] sm:$0xff]  ;;  %v2870_v38 = vld [vmem:[%s9547_s29 + $0x38] sm:$0xff] }
 0xab3   :  { %7579 = vmatprep.subr.bf16.mxu0 %v8416_v20  ;;  %v7613_v36 = vpack.c.bf16 %v2868_v35, %v2867_v34  ;;  %v3359_v34 = vld [vmem:[%s9550_s1 + $0x48] sm:$0xff] }
 0xab6   :  { %7581 = vmatpush3.bf16.msra.mxu0 %v7580_v39  ;;  %v7616_v39 = vpack.c.bf16 %v2870_v38, %v2869_v37  ;;  %v3361_v37 = vld [vmem:[%s9550_s1 + $0x58] sm:$0xff] }
 0xab7   :  { %7582 = vmatprep.subr.bf16.mxu0 %v8416_v20 }
 0xaba   :  { %7584 = vmatpush3.bf16.msra.mxu0 %v7583_v42  ;;  %v7619_v42 = vpack.c.bf16 %v5570_v41, %v5569_v40  ;;  %v5601_v40 = vld [vmem:[%s9550_s1 + $0x68] sm:$0xff] }
 0xabb   :  { %7585 = vmatprep.subr.bf16.mxu0 %v8416_v20 }
 0xabe   :  { %7587 = vmatpush3.bf16.msra.mxu0 %v7586_v45 }
 0xabf   :  { %7588 = vmatprep.subr.bf16.mxu0 %v8416_v20 }
 0xac2   :  { %7590 = vmatpush3.bf16.msra.mxu0 %v7589_v48  ;;  %v7622_v48 = vpack.c.bf16 %v5572_v44, %v5571_v43  ;;  %v5603_v43 = vld [vmem:[%s9550_s1 + $0x78] sm:$0xff] }
 0xac3   :  { %7591 = vmatprep.subr.bf16.mxu0 %v8416_v20 }
 0xac6   :  { %7593 = vmatpush3.bf16.msra.mxu0 %v7592_v51  ;;  %v5574_v51 = vld [vmem:[%s9547_s29 + $0x68] sm:$0xff] }
 0xac7   :  { %6775 = vmatprep.subr.mxu0 %v8418_v21 }
 0xac9   :  { %6715 = vmatmul.mubr.msk.f32.vlgmr.msra.gmra.mrb[12].mxu0 %vm2067_vm11, %v2375_v29  ;;  %v2865_v29 = vld [vmem:[%s9547_s29 + $0x10] sm:$0xff] }
 0xaca   :  { %6777 = vmatprep.mubr.msk.f32.mxu0 %vm8417_vm6, %v8418_v21  ;;  %v7610_v33 = vpack.c.bf16 %v2866_v31, %v2865_v29  ;;  %v3356_v29 = vld [vmem:[%s9550_s1 + $0x30] sm:$0xff]  ;;  %v3357_v31 = vld [vmem:[%s9550_s1 + $0x38] sm:$0xff] }
 0xb9c   :  { %v2461_v53 = vpop.f32.mrb[12].mxu0 }
 0xb9d   :  { %v7907_v56 = vadd.f32 %v2461_v53, %v1976_v52  ;;  %v6716_v57 = vpop.f32.mrb[13].mxu0  ;;  %v7625_v53 = vpack.c.bf16 %v5574_v51, %v5573_v50 }
 0xb9f   :  { %v2466_v58 = vmax.f32 %v7907_v56, 0.0  ;;  %v5576_v56 = vld [vmem:[%s9547_s29 + $0x78] sm:$0xff] }
 0xba0   :  { %v7628_v57 = vpack.c.bf16 %v5576_v56, %v5575_v55 }
 0xba1   :  { %6718 = vmatpush3.msk.msra.mxu1 %vm2473_vm12, %v2466_v58  ;;  %v5581_v58 = vld [vmem:[%s9547_s29 + $0x80] sm:$0xff] }
 0xba2   :  { %6720 = vmatmul.mubr.msk.f32.vlgmr.msra.gmra.mrb[24].mxu1 %vm2469_vm13, %v2468_v59  ;;  %7594 = vmatprep.subr.bf16.mxu1 %v8416_v20  ;;  %v5582_v59 = vld [vmem:[%s9547_s29 + $0x88] sm:$0xff] }
 0xba3   :  { %7596 = vmatpush3.bf16.msra.mxu1 %v7595_v60  ;;  %6738 = vmatprep.mubr.msk.f32.mxu1 %vm8417_vm6, %v8418_v21  ;;  %v7631_v60 = vpack.c.bf16 %v5582_v59, %v5581_v58  ;;  %v5609_v58 = vld [vmem:[%s9550_s1 + $0xa8] sm:$0xff] }
 0xba4   :  { %7597 = vmatprep.subr.bf16.mxu1 %v8416_v20 }
 0xba7   :  { %7599 = vmatpush3.bf16.msra.mxu1 %v7598_v63  ;;  %v7634_v63 = vpack.c.bf16 %v5584_v62, %v5583_v61  ;;  %v5611_v61 = vld [vmem:[%s9550_s1 + $0xb8] sm:$0xff] }
 0xba8   :  { %7600 = vmatprep.subr.bf16.mxu1 %v8416_v20 }
 0xbab   :  { %7602 = vmatpush3.bf16.msra.mxu1 %v7601_v2  ;;  %v7637_v2 = vpack.c.bf16 %v5586_v1, %v5585_v0  ;;  %v5620_v0 = vld [vmem:[%s9550_s1 + $0xc8] sm:$0xff] }
 0xbac   :  { %7603 = vmatprep.subr.bf16.mxu1 %v8416_v20 }
 0xbaf   :  { %7605 = vmatpush3.bf16.msra.mxu1 %v7604_v5  ;;  %v7640_v5 = vpack.c.bf16 %v5588_v4, %v5587_v3  ;;  %v5622_v3 = vld [vmem:[%s9550_s1 + $0xd8] sm:$0xff] }
 0xbb0   :  { %6741 = vmatprep.subr.mxu1 %v8418_v21 }
 0xc75   :  { %v2543_v6 = vpop.f32.mrb[24].mxu1 }
 0xc76   :  { %v6721_v7 = vpop.f32.mrb[25].mxu1  ;;  %6739 = vmatmul.mubr.msk.f32.vlgmr.msra.gmra.mrb[26].mxu1 %vm2555_vm14, %v2543_v6  ;;  %v3264_v6 = vld [vmem:[%s9549_s28] sm:$0xff] }
 0xc77   :  { %6743 = vmatprep.mubr.msk.f32.mxu1 %vm8417_vm6, %v8418_v21  ;;  %v5595_v7 = vld [vmem:[%s9549_s28 + $0x10] sm:$0xff] }
 0xd49   :  { %v2625_v9 = vpop.f32.mrb[26].mxu1 }
 0xd4a   :  { %v2629_v10 = vadd.f32 %v2625_v9, %v2467_v8  ;;  %v6740_v11 = vpop.f32.mrb[27].mxu1  ;;  %v2785_v8 = vld [vmem:[#allocation19] sm:$0x3f] }
 0xd4c   :  { %6742 = vmatpush3.msk.msra.mxu1 %vm2473_vm12, %v2629_v10 }
 0xd4d   :  { %6744 = vmatmul.mubr.msk.f32.vlgmr.msra.gmra.mrb[28].mxu1 %vm2469_vm13, %v2631_v12  ;;  %6746 = vmatprep.subr.mxu1 %v8418_v21  ;;  %v3350_v12 = vld [vmem:[%s9550_s1] sm:$0xff] }
 0xd4e   :  { %6748 = vmatprep.mubr.msk.f32.mxu1 %vm8417_vm6, %v8418_v21  ;;  %6747 = vmatpush3.msra.mxu1 %v2708_v13  ;;  %v3351_v13 = vld [vmem:[%s9550_s1 + $0x8] sm:$0xff] }
 0xd4f   :  { %6751 = vmatprep.subr.mxu1 %v8418_v21 }
 0xe20   :  { %v2704_v14 = vpop.f32.mrb[28].mxu1 }
 0xe21   :  { %v6745_v15 = vpop.f32.mrb[29].mxu1  ;;  %6749 = vmatmul.mubr.msk.f32.vlgmr.msra.gmra.mrb[30].mxu1 %vm2709_vm15, %v2704_v14 }
 0xe22   :  { %6753 = vmatprep.mubr.msk.f32.mxu1 %vm8417_vm6, %v8418_v21  ;;  %v3265_v15 = vld [vmem:[%s9549_s28 + $0x8] sm:$0x3f] }
 0xef4   :  { %v2779_v18 = vpop.f32.mrb[30].mxu1 }
 0xef5   :  { %v2783_v19 = vadd.f32 %v2779_v18, %v2630_v17  ;;  %v6750_v22 = vpop.f32.mrb[31].mxu1  ;;  %v7642_v17 = vpack.c.bf16 %v3351_v13, %v3350_v12  ;;  %v3352_v18 = vld [vmem:[%s9550_s1 + $0x10] sm:$0xff]  ;;  %v5628_v12 = vld [vmem:[%s9550_s1 + $0x108] sm:$0xff] }
 0xef6   :  { %v5596_v22 = vld [vmem:[%s9549_s28 + $0x18] sm:$0x3f] }
 0xef7   :  { %v2784_v25 = vmax.f32 %v2783_v19, 0.0  ;;  %v3353_v19 = vld [vmem:[%s9550_s1 + $0x18] sm:$0xff] }
 0xef8   :  { %v7646_v24 = vpack.c.bf16 %v3353_v19, %v3352_v18  ;;  %v3811_v18 = vld [vmem:[%s9551_s14] sm:$0xff]  ;;  %v3263_v19 = vld [vmem:[#allocation20 + $0x8] sm:$0x3f] }
 0xef9   :  { %6752 = vmatpush3.msk.msra.mxu1 %vm2473_vm12, %v2784_v25  ;;  %6776 = vmatpush3.msk.msra.mxu0 %vm2473_vm12, %v2784_v25 }
 0xefa   :  { %6754 = vmatmul.mubr.msk.f32.vlgmr.msra.gmra.mrb[32].mxu1 %vm2469_vm13, %v2786_v26  ;;  %6799 = vmatprep.subr.mxu0 %v8418_v21  ;;  %v3355_v26 = vld [vmem:[%s9550_s1 + $0x28] sm:$0xff] }
 0xefb   :  { %6778 = vmatmul.mubr.msk.f32.vlgmr.msra.gmra.mrb[16].mxu0 %vm2469_vm13, %v5566_v27  ;;  %7606 = vmatprep.subr.bf16.mxu1 %v8416_v20  ;;  %v5615_v27 = vld [vmem:[%s9549_s28 + $0x28] sm:$0x3f] }
 0xefc   :  { %6800 = vmatpush3.msk.msra.mxu0 %vm2473_vm12, %v2784_v25  ;;  %6801 = vmatprep.mubr.msk.f32.mxu0 %vm8417_vm6, %v8418_v21  ;;  %v3354_v25 = vld [vmem:[%s9550_s1 + $0x20] sm:$0xff] }
 0xefd   :  { %7608 = vmatpush3.bf16.msra.mxu1 %v7607_v28  ;;  %6772 = vmatprep.mubr.msk.f32.mxu1 %vm8417_vm6, %v8418_v21  ;;  %v7650_v28 = vpack.c.bf16 %v3355_v26, %v3354_v25 }
 0xefe   :  { %7609 = vmatprep.subr.bf16.mxu1 %v8416_v20 }
 0xeff   :  { %6802 = vmatmul.mubr.msk.f32.vlgmr.msra.gmra.mrb[18].mxu0 %vm2469_vm13, %v5578_v32  ;;  %v7654_v32 = vpack.c.bf16 %v3357_v31, %v3356_v29  ;;  %v3916_v29 = vld [vmem:[%s9552_s10 + $0x8] sm:$0xff] }
 0xf00   :  { %6825 = vmatprep.mubr.msk.f32.mxu0 %vm1978_vm10, %v3264_v6  ;;  %v5624_v6 = vld [vmem:[%s9550_s1 + $0xe8] sm:$0xff] }
 0xf01   :  { %7611 = vmatpush3.bf16.msra.mxu1 %v7610_v33  ;;  %v3358_v33 = vld [vmem:[%s9550_s1 + $0x40] sm:$0xff] }
 0xf02   :  { %7612 = vmatprep.subr.bf16.mxu1 %v8416_v20  ;;  %v7658_v35 = vpack.c.bf16 %v3359_v34, %v3358_v33  ;;  %v3917_v34 = vld [vmem:[%s9552_s10 + $0x10] sm:$0xff] }
 0xf05   :  { %7614 = vmatpush3.bf16.msra.mxu1 %v7613_v36  ;;  %v3360_v36 = vld [vmem:[%s9550_s1 + $0x50] sm:$0xff] }
 0xf06   :  { %7615 = vmatprep.subr.bf16.mxu1 %v8416_v20  ;;  %v7662_v38 = vpack.c.bf16 %v3361_v37, %v3360_v36  ;;  %v3812_v36 = vld [vmem:[%s9551_s14 + $0x8] sm:$0xff]  ;;  %v3813_v37 = vld [vmem:[%s9551_s14 + $0x10] sm:$0xff] }
 0xf09   :  { %7617 = vmatpush3.bf16.msra.mxu1 %v7616_v39  ;;  %v5600_v39 = vld [vmem:[%s9550_s1 + $0x60] sm:$0xff] }
 0xf0a   :  { %7618 = vmatprep.subr.bf16.mxu1 %v8416_v20  ;;  %v7666_v41 = vpack.c.bf16 %v5601_v40, %v5600_v39  ;;  %v3919_v39 = vld [vmem:[%s9552_s10 + $0x20] sm:$0xff]  ;;  %v3920_v40 = vld [vmem:[%s9552_s10 + $0x28] sm:$0xff] }
 0xfcd   :  { %v2859_v45 = vpop.f32.mrb[32].mxu1 }
 0xfce   :  { %v6755_v46 = vpop.f32.mrb[33].mxu1  ;;  %6773 = vmatmul.mubr.msk.f32.vlgmr.msra.gmra.mrb[34].mxu1 %vm2555_vm14, %v2859_v45  ;;  %v3016_v47 = vpop.f32.mrb[16].mxu0 }
 0xfcf   :  { %7620 = vmatpush3.bf16.msra.mxu1 %v7619_v42  ;;  %v6779_v49 = vpop.f32.mrb[17].mxu0  ;;  %6796 = vmatprep.mubr.msk.f32.mxu1 %vm8417_vm6, %v8418_v21  ;;  %v5602_v42 = vld [vmem:[%s9550_s1 + $0x70] sm:$0xff] }
 0xfd0   :  { %7621 = vmatprep.subr.bf16.mxu1 %v8416_v20  ;;  %v7670_v46 = vpack.c.bf16 %v5603_v43, %v5602_v42  ;;  %v5605_v49 = vld [vmem:[%s9550_s1 + $0x88] sm:$0xff]  ;;  %v7728_v42 = vpack.c.bf16 %v3920_v40, %v3919_v39  ;;  %v3921_v43 = vld [vmem:[%s9552_s10 + $0x30] sm:$0xff]  ;;  %v5682_v39 = vld [vmem:[%s9552_s10 + $0x100] sm:$0xff] }
 0xfd1   :  { %v5683_v40 = vld [vmem:[%s9552_s10 + $0x108] sm:$0xff] }
 0xfd2   :  { %v3174_v52 = vpop.f32.mrb[18].mxu0 }
 0xfd3   :  { %7623 = vmatpush3.bf16.msra.mxu1 %v7622_v48  ;;  %v6803_v54 = vpop.f32.mrb[19].mxu0  ;;  %v5604_v48 = vld [vmem:[%s9550_s1 + $0x80] sm:$0xff] }
 0xfd4   :  { %7624 = vmatprep.subr.bf16.mxu1 %v8416_v20  ;;  %v7674_v51 = vpack.c.bf16 %v5605_v49, %v5604_v48  ;;  %v5607_v54 = vld [vmem:[%s9550_s1 + $0x98] sm:$0xff]  ;;  %v3925_v49 = vld [vmem:[%s9552_s10 + $0x50] sm:$0xff] }
 0xfd7   :  { %7626 = vmatpush3.bf16.msra.mxu1 %v7625_v53  ;;  %v5606_v53 = vld [vmem:[%s9550_s1 + $0x90] sm:$0xff] }
 0xfd8   :  { %7627 = vmatprep.subr.bf16.mxu1 %v8416_v20  ;;  %v7678_v56 = vpack.c.bf16 %v5607_v54, %v5606_v53  ;;  %v3928_v53 = vld [vmem:[%s9552_s10 + $0x68] sm:$0xff] }
 0xfdb   :  { %7629 = vmatpush3.bf16.msra.mxu1 %v7628_v57  ;;  %v5608_v57 = vld [vmem:[%s9550_s1 + $0xa0] sm:$0xff] }
 0xfdc   :  { %7630 = vmatprep.subr.bf16.mxu1 %v8416_v20  ;;  %v7682_v59 = vpack.c.bf16 %v5609_v58, %v5608_v57  ;;  %v5671_v57 = vld [vmem:[%s9551_s14 + $0x50] sm:$0xff]  ;;  %v5672_v58 = vld [vmem:[%s9551_s14 + $0x58] sm:$0xf] }
 0xfde   :  { %6797 = vmatmul.mubr.msk.f32.vlgmr.msra.gmra.mrb[34].mxu1 %vm2555_vm14, %v3016_v47 }
 0xfdf   :  { %7632 = vmatpush3.bf16.msra.mxu1 %v7631_v60  ;;  %6820 = vmatprep.mubr.msk.f32.mxu1 %vm8417_vm6, %v8418_v21  ;;  %v5610_v60 = vld [vmem:[%s9550_s1 + $0xb0] sm:$0xff] }
 0xfe0   :  { %7633 = vmatprep.subr.bf16.mxu1 %v8416_v20  ;;  %v7686_v62 = vpack.c.bf16 %v5611_v61, %v5610_v60  ;;  %v5652_v60 = vld [vmem:[%s9552_s10 + $0x78] sm:$0xff] }
 0xfe3   :  { %7635 = vmatpush3.bf16.msra.mxu1 %v7634_v63  ;;  %v5619_v63 = vld [vmem:[%s9550_s1 + $0xc0] sm:$0xff] }
 0xfe4   :  { %7636 = vmatprep.subr.bf16.mxu1 %v8416_v20  ;;  %v7690_v1 = vpack.c.bf16 %v5620_v0, %v5619_v63 }
 0xfe7   :  { %7638 = vmatpush3.bf16.msra.mxu1 %v7637_v2  ;;  %v5621_v2 = vld [vmem:[%s9550_s1 + $0xd0] sm:$0xff] }
 0xfe8   :  { %7639 = vmatprep.subr.bf16.mxu1 %v8416_v20  ;;  %v7694_v4 = vpack.c.bf16 %v5622_v3, %v5621_v2  ;;  %v5642_v2 = vld [vmem:[%s9551_s14 + $0x20] sm:$0xff] }
 0xfe9   :  { %v5653_v3 = vld [vmem:[%s9552_s10 + $0x80] sm:$0xff] }
 0xfeb   :  { %7641 = vmatpush3.bf16.msra.mxu1 %v7640_v5  ;;  %v5623_v5 = vld [vmem:[%s9550_s1 + $0xe0] sm:$0xff] }
 0xfee   :  { %6821 = vmatmul.mubr.msk.f32.vlgmr.msra.gmra.mrb[34].mxu1 %vm2555_vm14, %v3174_v52 }
 0xfef   :  { %6857 = vmatprep.mubr.msk.f32.mxu1 %vm1978_vm10, %v5595_v7  ;;  %v7698_v7 = vpack.c.bf16 %v5624_v6, %v5623_v5  ;;  %v5643_v5 = vld [vmem:[%s9551_s14 + $0x28] sm:$0xff]  ;;  %v5644_v6 = vld [vmem:[%s9551_s14 + $0x30] sm:$0xff] }
0x10c1   :  { %v3256_v9 = vpop.f32.mrb[34].mxu1 }
0x10c2   :  { %v7908_v10 = vadd.f32 %v3256_v9, %v2785_v8  ;;  %v6822_v11 = vpop.f32.mrb[35].mxu1  ;;  %v5625_v8 = vld [vmem:[%s9550_s1 + $0xf0] sm:$0xff]  ;;  %v5626_v9 = vld [vmem:[%s9550_s1 + $0xf8] sm:$0xff] }
0x10c3   :  { %v5627_v11 = vld [vmem:[%s9550_s1 + $0x100] sm:$0xff] }
0x10c4   :  { %v3261_v14 = vmax.f32 %v7908_v10, 0.0  ;;  %v7702_v10 = vpack.c.bf16 %v5626_v9, %v5625_v8  ;;  %v7706_v13 = vpack.c.bf16 %v5628_v12, %v5627_v11  ;;  %v5656_v8 = vld [vmem:[%s9552_s10 + $0x98] sm:$0xff]  ;;  %v5657_v11 = vld [vmem:[%s9552_s10 + $0xa0] sm:$0xff]  ;;  %v5658_v12 = vld [vmem:[%s9552_s10 + $0xa8] sm:$0xff] }
0x10c5   :  { %v5645_v9 = vld [vmem:[%s9551_s14 + $0x38] sm:$0xf] }
0x10c6   :  { %6823 = vmatprep.subr.msk.mxu0 %vm1485_vm7, %v3261_v14  ;;  %6855 = vmatprep.subr.msk.mxu1 %vm1485_vm7, %v3261_v14 }
0x10c7   :  { %6824 = vmatpush3.msk.msra.mxu0 %vm1485_vm7, %v3261_v14  ;;  %6856 = vmatpush3.msk.msra.mxu1 %vm1485_vm7, %v3261_v14 }
0x10c8   :  { %6826 = vmatmul.mubr.msk.f32.vlgmr.msra.gmra.mrb[20].mxu0 %vm1978_vm10, %v3265_v15  ;;  %6887 = vmatprep.subr.msk.mxu1 %vm1485_vm7, %v3261_v14  ;;  %v5630_v15 = vld [vmem:[%s9550_s1 + $0x118] sm:$0xff] }
0x10c9   :  { %6858 = vmatmul.mubr.msk.f32.vlgmr.msra.gmra.mrb[36].mxu1 %vm1978_vm10, %v5596_v22  ;;  %7643 = vmatprep.subr.bf16.mxu0 %v7642_v17  ;;  %v3262_v22 = vld [vmem:[#allocation20] sm:$0xff] }
0x10ca   :  { %6888 = vmatpush3.msk.msra.mxu1 %vm1485_vm7, %v3261_v14  ;;  %6889 = vmatprep.mubr.msk.f32.mxu1 %vm1978_vm10, %v5614_v23  ;;  %v5629_v14 = vld [vmem:[%s9550_s1 + $0x110] sm:$0xff] }
0x10cb   :  { %7645 = vmatpush3.bf16.msra.mxu0 %v7642_v17  ;;  %v7710_v17 = vpack.c.bf16 %v5630_v15, %v5629_v14  ;;  %v5659_v14 = vld [vmem:[%s9552_s10 + $0xb0] sm:$0xff]  ;;  %v5660_v15 = vld [vmem:[%s9552_s10 + $0xb8] sm:$0xff] }
0x10cc   :  { %7647 = vmatprep.subr.bf16.mxu0 %v7646_v24 }
0x10cd   :  { %6890 = vmatmul.mubr.msk.f32.vlgmr.msra.gmra.mrb[38].mxu1 %vm1978_vm10, %v5615_v27 }
0x10ce   :  { %6923 = vmatprep.mubr.msk.f32.mxu1 %vm1481_vm9, %v3811_v18  ;;  %v5661_v18 = vld [vmem:[%s9552_s10 + $0xc0] sm:$0xff] }
0x10cf   :  { %7649 = vmatpush3.bf16.msra.mxu0 %v7646_v24 }
0x10d0   :  { %7651 = vmatprep.subr.bf16.mxu0 %v7650_v28 }
0x10d3   :  { %7653 = vmatpush3.bf16.msra.mxu0 %v7650_v28  ;;  %v3915_v28 = vld [vmem:[%s9552_s10] sm:$0xff] }
0x10d4   :  { %7655 = vmatprep.subr.bf16.mxu0 %v7654_v32  ;;  %v7720_v33 = vpack.c.bf16 %v3916_v29, %v3915_v28 }
0x10d7   :  { %7657 = vmatpush3.bf16.msra.mxu0 %v7654_v32 }
0x10d8   :  { %7659 = vmatprep.subr.bf16.mxu0 %v7658_v35 }
0x10db   :  { %7661 = vmatpush3.bf16.msra.mxu0 %v7658_v35  ;;  %v3918_v35 = vld [vmem:[%s9552_s10 + $0x18] sm:$0xff] }
0x10dc   :  { %7663 = vmatprep.subr.bf16.mxu0 %v7662_v38 }
0x10df   :  { %7665 = vmatpush3.bf16.msra.mxu0 %v7662_v38  ;;  %v7724_v38 = vpack.c.bf16 %v3918_v35, %v3917_v34  ;;  %v5680_v34 = vld [vmem:[%s9552_s10 + $0xf0] sm:$0xff]  ;;  %v5681_v35 = vld [vmem:[%s9552_s10 + $0xf8] sm:$0xff] }
0x10e0   :  { %7667 = vmatprep.subr.bf16.mxu0 %v7666_v41 }
0x119b   :  { %v6827_v44 = vpop.f32.mrb[20].mxu0 }
0x119c   :  { %v3341_v45 = vpop.f32.mrb[21].mxu0  ;;  %v6859_v47 = vpop.f32.mrb[36].mxu1 }
0x119d   :  { %6852 = vmatprep.mubr.msk.f32.mxu0 %vm2067_vm11, %v3341_v45  ;;  %v3520_v50 = vpop.f32.mrb[37].mxu1 }
0x119e   :  { %6853 = vmatmul.mubr.msk.f32.vlgmr.msra.gmra.mrb[22].mxu0 %vm2067_vm11, %v6827_v44  ;;  %v3922_v44 = vld [vmem:[%s9552_s10 + $0x38] sm:$0xff] }
0x119f   :  { %7669 = vmatpush3.bf16.msra.mxu0 %v7666_v41  ;;  %6884 = vmatprep.mubr.msk.f32.mxu0 %vm2067_vm11, %v3520_v50  ;;  %v3814_v41 = vld [vmem:[%s9551_s14 + $0x18] sm:$0xf]  ;;  %v7732_v45 = vpack.c.bf16 %v3922_v44, %v3921_v43  ;;  %v5684_v44 = vld [vmem:[%s9552_s10 + $0x110] sm:$0xff] }
0x11a0   :  { %7671 = vmatprep.subr.bf16.mxu0 %v7670_v46  ;;  %v6891_v52 = vpop.f32.mrb[38].mxu1  ;;  %v3926_v50 = vld [vmem:[%s9552_s10 + $0x58] sm:$0xff] }
0x11a1   :  { %v3700_v55 = vpop.f32.mrb[39].mxu1 }
0x11a3   :  { %7673 = vmatpush3.bf16.msra.mxu0 %v7670_v46  ;;  %v3923_v46 = vld [vmem:[%s9552_s10 + $0x40] sm:$0xff] }
0x11a4   :  { %7675 = vmatprep.subr.bf16.mxu0 %v7674_v51 }
0x11a7   :  { %7677 = vmatpush3.bf16.msra.mxu0 %v7674_v51  ;;  %v7740_v51 = vpack.c.bf16 %v3926_v50, %v3925_v49  ;;  %v5688_v50 = vld [vmem:[%s9552_s10 + $0x130] sm:$0xff] }
0x11a8   :  { %7679 = vmatprep.subr.bf16.mxu0 %v7678_v56 }
0x11ab   :  { %7681 = vmatpush3.bf16.msra.mxu0 %v7678_v56  ;;  %v5670_v56 = vld [vmem:[%s9551_s14 + $0x48] sm:$0xff] }
0x11ac   :  { %7683 = vmatprep.subr.bf16.mxu0 %v7682_v59 }
0x11af   :  { %7685 = vmatpush3.bf16.msra.mxu0 %v7682_v59  ;;  %v5651_v59 = vld [vmem:[%s9552_s10 + $0x70] sm:$0xff] }
0x11b0   :  { %7687 = vmatprep.subr.bf16.mxu0 %v7686_v62  ;;  %v7754_v63 = vpack.c.bf16 %v5652_v60, %v5651_v59 }
0x11b3   :  { %7689 = vmatpush3.bf16.msra.mxu0 %v7686_v62 }
0x11b4   :  { %7691 = vmatprep.subr.bf16.mxu0 %v7690_v1 }
0x11b6   :  { %6885 = vmatmul.mubr.msk.f32.vlgmr.msra.gmra.mrb[22].mxu0 %vm2067_vm11, %v6859_v47  ;;  %v3924_v47 = vld [vmem:[%s9552_s10 + $0x48] sm:$0xff] }
0x11b7   :  { %7693 = vmatpush3.bf16.msra.mxu0 %v7690_v1  ;;  %6916 = vmatprep.mubr.msk.f32.mxu0 %vm2067_vm11, %v3700_v55  ;;  %v7736_v48 = vpack.c.bf16 %v3924_v47, %v3923_v46  ;;  %v5669_v55 = vld [vmem:[%s9551_s14 + $0x40] sm:$0xff] }
0x11b8   :  { %7695 = vmatprep.subr.bf16.mxu0 %v7694_v4  ;;  %v5686_v47 = vld [vmem:[%s9552_s10 + $0x120] sm:$0xff] }
0x11bb   :  { %7697 = vmatpush3.bf16.msra.mxu0 %v7694_v4  ;;  %v5654_v4 = vld [vmem:[%s9552_s10 + $0x88] sm:$0xff] }
0x11bc   :  { %7699 = vmatprep.subr.bf16.mxu0 %v7698_v7  ;;  %v7758_v30 = vpack.c.bf16 %v5654_v4, %v5653_v3 }
0x11bf   :  { %7701 = vmatpush3.bf16.msra.mxu0 %v7698_v7  ;;  %v5655_v7 = vld [vmem:[%s9552_s10 + $0x90] sm:$0xff] }
0x11c0   :  { %7703 = vmatprep.subr.bf16.mxu0 %v7702_v10 }
0x11c3   :  { %7705 = vmatpush3.bf16.msra.mxu0 %v7702_v10  ;;  %v7762_v10 = vpack.c.bf16 %v5656_v8, %v5655_v7 }
0x11c4   :  { %7707 = vmatprep.subr.bf16.mxu0 %v7706_v13 }
0x11c7   :  { %7709 = vmatpush3.bf16.msra.mxu0 %v7706_v13  ;;  %v7766_v13 = vpack.c.bf16 %v5658_v12, %v5657_v11  ;;  %v4477_v11 = vld [vmem:[%s8568_s13] sm:$0xff]  ;;  %v5711_v12 = vld [vmem:[%s8568_s13 + $0x38] sm:$0xff] }
0x11c8   :  { %7711 = vmatprep.subr.bf16.mxu0 %v7710_v17 }
0x11cb   :  { %7713 = vmatpush3.bf16.msra.mxu0 %v7710_v17  ;;  %v7770_v17 = vpack.c.bf16 %v5660_v15, %v5659_v14  ;;  %v4610_v14 = vld [vmem:[%s8573_s21 + $0x10] sm:$0xff]  ;;  %v4611_v15 = vld [vmem:[%s8573_s21 + $0x18] sm:$0xff] }
0x11ce   :  { %6917 = vmatmul.mubr.msk.f32.vlgmr.msra.gmra.mrb[22].mxu0 %vm2067_vm11, %v6891_v52  ;;  %v3927_v52 = vld [vmem:[%s9552_s10 + $0x60] sm:$0xff] }
0x11cf   :  { %v7744_v54 = vpack.c.bf16 %v3928_v53, %v3927_v52  ;;  %7011 = vmatprep.mubr.msk.f32.mxu0 %vm1481_vm9, %v5669_v55  ;;  %v5690_v53 = vld [vmem:[%s9552_s10 + $0x140] sm:$0xff] }
0x12a1   :  { %v6918_v23 = vpop.f32.mrb[22].mxu0 }
0x12a2   :  { %v7909_v24 = vadd.f32 %v6918_v23, %v3263_v19  ;;  %v3794_v25 = vpop.f32.mrb[23].mxu0  ;;  %v5662_v19 = vld [vmem:[%s9552_s10 + $0xc8] sm:$0xff]  ;;  %v5663_v23 = vld [vmem:[%s9552_s10 + $0xd0] sm:$0xff] }
0x12a3   :  { %v7910_v26 = vadd.f32 %v3794_v25, %v3262_v22  ;;  %v7774_v22 = vpack.c.bf16 %v5662_v19, %v5661_v18  ;;  %v5712_v18 = vld [vmem:[%s8568_s13 + $0x40] sm:$0xff]  ;;  %v7827_v19 = vpack.c.bf16 %v4611_v15, %v4610_v14  ;;  %v5735_v14 = vld [vmem:[%s8573_s21 + $0xb8] sm:$0xff] }
0x12a4   :  { %v3806_v27 = vmax.f32 %v7909_v24, 0.0  ;;  %v5664_v24 = vld [vmem:[%s9552_s10 + $0xd8] sm:$0xff] }
0x12a5   :  { %v3805_v31 = vmax.f32 %v7910_v26, 0.0  ;;  %v7778_v25 = vpack.c.bf16 %v5664_v24, %v5663_v23  ;;  %v5678_v26 = vld [vmem:[%s9552_s10 + $0xe0] sm:$0xff]  ;;  %v4613_v23 = vld [vmem:[%s8573_s21 + $0x28] sm:$0xff]  ;;  %v4479_v24 = vld [vmem:[%s8568_s13 + $0x10] sm:$0xff] }
0x12a7   :  { %v7714_v32 = vpack.c.bf16 %v3806_v27, %v3805_v31  ;;  %v5679_v27 = vld [vmem:[%s9552_s10 + $0xe8] sm:$0xff] }
0x12a8   :  { %v7788_v28 = vpack.c.bf16 %v5679_v27, %v5678_v26  ;;  %v4615_v27 = vld [vmem:[%s8573_s21 + $0x38] sm:$0xff] }
0x12a9   :  { %7716 = vmatprep.subr.msk.bf16.mxu1 %vm8827_vm8, %v7714_v32  ;;  %7784 = vmatprep.subr.msk.bf16.mxu0 %vm8827_vm8, %v7714_v32 }
0x12aa   :  { %7719 = vmatpush3.bf16.msk.msra.mxu1 %vm8827_vm8, %v7714_v32  ;;  %7787 = vmatpush3.bf16.msk.msra.mxu0 %vm8827_vm8, %v7714_v32 }
0x12ab   :  { %7721 = vmatprep.subr.bf16.mxu1 %v7720_v33  ;;  %7816 = vmatprep.subr.bf16.mxu0 %v8416_v20 }
0x12ad   :  { %6924 = vmatmul.mubr.msk.f32.vlgmr.msra.gmra.mrb[40].mxu1 %vm1481_vm9, %v3812_v36  ;;  %7012 = vmatmul.mubr.msk.f32.vlgmr.msra.gmra.mrb[24].mxu0 %vm1481_vm9, %v5670_v56  ;;  %v3808_v56 = vld [vmem:[%s9553_s6 + $0x8] sm:$0xff] }
0x12ae   :  { %7723 = vmatpush3.bf16.msra.mxu1 %v7720_v33  ;;  %6926 = vmatprep.mubr.msk.f32.mxu1 %vm1481_vm9, %v3813_v37 }
0x12af   :  { %7725 = vmatprep.subr.bf16.mxu1 %v7724_v38  ;;  %7014 = vmatprep.mubr.msk.f32.mxu0 %vm1481_vm9, %v5671_v57  ;;  %v3807_v57 = vld [vmem:[%s9553_s6] sm:$0xff] }
0x12b1   :  { %6927 = vmatmul.mubr.msk.f32.gmra.mrb[42].mxu1 %vm1481_vm9, %v3814_v41  ;;  %7015 = vmatmul.mubr.msk.f32.gmra.mrb[26].mxu0 %vm1481_vm9, %v5672_v58 }
0x12b2   :  { %7727 = vmatpush3.bf16.msra.mxu1 %v7724_v38  ;;  %7059 = vmatprep.mubr.msk.f32.mxu0 %vm8417_vm6, %v8418_v21  ;;  %v7792_v38 = vpack.c.bf16 %v5681_v35, %v5680_v34  ;;  %v4481_v34 = vld [vmem:[%s8568_s13 + $0x20] sm:$0xff]  ;;  %v5715_v35 = vld [vmem:[%s8568_s13 + $0x58] sm:$0xff] }
0x12b3   :  { %7729 = vmatprep.subr.bf16.mxu1 %v7728_v42 }
0x12b6   :  { %7731 = vmatpush3.bf16.msra.mxu1 %v7728_v42  ;;  %v7796_v42 = vpack.c.bf16 %v5683_v40, %v5682_v39  ;;  %v4482_v39 = vld [vmem:[%s8568_s13 + $0x28] sm:$0xff]  ;;  %v5716_v40 = vld [vmem:[%s8568_s13 + $0x60] sm:$0xff] }
0x12b7   :  { %7733 = vmatprep.subr.bf16.mxu1 %v7732_v45 }
0x12ba   :  { %7735 = vmatpush3.bf16.msra.mxu1 %v7732_v45  ;;  %v5685_v45 = vld [vmem:[%s9552_s10 + $0x118] sm:$0xff] }
0x12bb   :  { %7737 = vmatprep.subr.bf16.mxu1 %v7736_v48  ;;  %v7800_v46 = vpack.c.bf16 %v5685_v45, %v5684_v44  ;;  %v4483_v44 = vld [vmem:[%s8568_s13 + $0x30] sm:$0xff]  ;;  %v5717_v45 = vld [vmem:[%s8568_s13 + $0x68] sm:$0xff] }
0x12be   :  { %7739 = vmatpush3.bf16.msra.mxu1 %v7736_v48  ;;  %v5687_v48 = vld [vmem:[%s9552_s10 + $0x128] sm:$0xff] }
0x12bf   :  { %7741 = vmatprep.subr.bf16.mxu1 %v7740_v51  ;;  %v7804_v49 = vpack.c.bf16 %v5687_v48, %v5686_v47  ;;  %v5747_v47 = vld [vmem:[%s8568_s13 + $0x70] sm:$0xff]  ;;  %v5748_v48 = vld [vmem:[%s8568_s13 + $0x78] sm:$0xff] }
0x12c2   :  { %7743 = vmatpush3.bf16.msra.mxu1 %v7740_v51  ;;  %v5689_v51 = vld [vmem:[%s9552_s10 + $0x138] sm:$0xff] }
0x12c3   :  { %7745 = vmatprep.subr.bf16.mxu1 %v7744_v54  ;;  %v7808_v52 = vpack.c.bf16 %v5689_v51, %v5688_v50  ;;  %v5750_v50 = vld [vmem:[%s8568_s13 + $0x88] sm:$0xff]  ;;  %v5751_v51 = vld [vmem:[%s8568_s13 + $0x90] sm:$0xff] }
0x12c6   :  { %7747 = vmatpush3.bf16.msra.mxu1 %v7744_v54  ;;  %v5691_v54 = vld [vmem:[%s9552_s10 + $0x148] sm:$0xff] }
0x12c7   :  { %7750 = vmatprep.subr.msk.bf16.mxu1 %vm8827_vm8, %v7714_v32  ;;  %v7812_v55 = vpack.c.bf16 %v5691_v54, %v5690_v53  ;;  %v5753_v53 = vld [vmem:[%s8568_s13 + $0xa0] sm:$0xff]  ;;  %v5726_v54 = vld [vmem:[%s8573_s21 + $0x70] sm:$0xff] }
0x1380   :  { %v6925_v61 = vpop.f32.mrb[40].mxu1  ;;  %v7013_v29 = vpop.f32.mrb[24].mxu0 }
0x1381   :  { %v3896_v62 = vpop.f32.mrb[41].mxu1  ;;  %v4331_v31 = vpop.f32.mrb[25].mxu0 }
0x1382   :  { %6957 = vmatprep.mubr.msk.f32.mxu1 %vm1029_vm5, %v3896_v62  ;;  %v3810_v62 = vld [vmem:[%s9553_s6 + $0x18] sm:$0xf] }
0x1383   :  { %6958 = vmatmul.mubr.msk.f32.vlgmr.msra.gmra.mrb[44].mxu1 %vm1029_vm5, %v6925_v61 }
0x1384   :  { %7753 = vmatpush3.bf16.msk.msra.mxu1 %vm8827_vm8, %v7714_v32  ;;  %v6928_v0 = vpop.f32.mrb[42].mxu1  ;;  %v7016_v32 = vpop.f32.mrb[26].mxu0 }
0x1385   :  { %v3906_v1 = vpop.f32.mrb[43].mxu1  ;;  %7755 = vmatprep.subr.bf16.mxu1 %v7754_v63  ;;  %v4341_v33 = vpop.f32.mrb[27].mxu0 }
0x1386   :  { %6960 = vmatprep.mubr.msk.f32.mxu1 %vm1029_vm5, %v3906_v1 }
0x1387   :  { %6961 = vmatmul.mubr.msk.f32.gmra.mrb[46].mxu1 %vm1029_vm5, %v6928_v0  ;;  %v3809_v0 = vld [vmem:[%s9553_s6 + $0x10] sm:$0xff] }
0x1388   :  { %6967 = vmatprep.mubr.msk.f32.mxu1 %vm1481_vm9, %v5642_v2 }
0x138b   :  { %6968 = vmatmul.mubr.msk.f32.vlgmr.msra.gmra.mrb[48].mxu1 %vm1481_vm9, %v5643_v5 }
0x138c   :  { %6970 = vmatprep.mubr.msk.f32.mxu1 %vm1481_vm9, %v5644_v6  ;;  %7757 = vmatpush3.bf16.msra.mxu1 %v7754_v63 }
0x138d   :  { %7759 = vmatprep.subr.bf16.mxu1 %v7758_v30 }
0x138f   :  { %6971 = vmatmul.mubr.msk.f32.gmra.mrb[50].mxu1 %vm1481_vm9, %v5645_v9  ;;  %v4608_v9 = vld [vmem:[%s8573_s21] sm:$0xff] }
0x1390   :  { %7761 = vmatpush3.bf16.msra.mxu1 %v7758_v30 }
0x1391   :  { %7763 = vmatprep.subr.bf16.mxu1 %v7762_v10 }
0x1394   :  { %7765 = vmatpush3.bf16.msra.mxu1 %v7762_v10  ;;  %v4609_v10 = vld [vmem:[%s8573_s21 + $0x8] sm:$0xff] }
0x1395   :  { %7767 = vmatprep.subr.bf16.mxu1 %v7766_v13 }
0x1398   :  { %7769 = vmatpush3.bf16.msra.mxu1 %v7766_v13  ;;  %v7824_v13 = vpack.c.bf16 %v4609_v10, %v4608_v9 }
0x1399   :  { %7771 = vmatprep.subr.bf16.mxu1 %v7770_v17 }
0x139c   :  { %7773 = vmatpush3.bf16.msra.mxu1 %v7770_v17  ;;  %v4478_v17 = vld [vmem:[%s8568_s13 + $0x8] sm:$0xff] }
0x139d   :  { %7775 = vmatprep.subr.bf16.mxu1 %v7774_v22 }
0x13a0   :  { %7777 = vmatpush3.bf16.msra.mxu1 %v7774_v22  ;;  %v4612_v22 = vld [vmem:[%s8573_s21 + $0x20] sm:$0xff] }
0x13a1   :  { %7779 = vmatprep.subr.bf16.mxu1 %v7778_v25  ;;  %v7830_v26 = vpack.c.bf16 %v4613_v23, %v4612_v22  ;;  %v5736_v23 = vld [vmem:[%s8573_s21 + $0xc0] sm:$0xff] }
0x13a4   :  { %7781 = vmatpush3.bf16.msra.mxu1 %v7778_v25  ;;  %v5713_v25 = vld [vmem:[%s8568_s13 + $0x48] sm:$0xff] }
0x13a5   :  { %7789 = vmatprep.subr.bf16.mxu1 %v7788_v28 }
0x145e   :  { %v6969_v36 = vpop.f32.mrb[48].mxu1 }
0x145f   :  { %v4113_v37 = vpop.f32.mrb[49].mxu1 }
0x1460   :  { %7001 = vmatprep.mubr.msk.f32.mxu1 %vm1029_vm5, %v4113_v37  ;;  %v4618_v37 = vld [vmem:[%s8573_s21 + $0x50] sm:$0xff] }
0x1461   :  { %7002 = vmatmul.mubr.msk.f32.vlgmr.msra.gmra.mrb[44].mxu1 %vm1029_vm5, %v6969_v36 }
0x1462   :  { %7791 = vmatpush3.bf16.msra.mxu1 %v7788_v28  ;;  %v6972_v41 = vpop.f32.mrb[50].mxu1  ;;  %v4480_v28 = vld [vmem:[%s8568_s13 + $0x18] sm:$0xff] }
0x1463   :  { %7793 = vmatprep.subr.bf16.mxu1 %v7792_v38  ;;  %v4123_v43 = vpop.f32.mrb[51].mxu1 }
0x1464   :  { %7004 = vmatprep.mubr.msk.f32.mxu1 %vm1029_vm5, %v4123_v43  ;;  %v4621_v43 = vld [vmem:[%s8573_s21 + $0x68] sm:$0xff] }
0x1465   :  { %7005 = vmatmul.mubr.msk.f32.gmra.mrb[46].mxu1 %vm1029_vm5, %v6972_v41 }
0x1466   :  { %7795 = vmatpush3.bf16.msra.mxu1 %v7792_v38  ;;  %7045 = vmatprep.mubr.msk.f32.mxu1 %vm1029_vm5, %v4331_v31  ;;  %v7833_v31 = vpack.c.bf16 %v4615_v27, %v4614_v16  ;;  %v4619_v38 = vld [vmem:[%s8573_s21 + $0x58] sm:$0xff] }
0x1467   :  { %7797 = vmatprep.subr.bf16.mxu1 %v7796_v42  ;;  %v7839_v41 = vpack.c.bf16 %v4619_v38, %v4618_v37  ;;  %v5762_v37 = vld [vmem:[%s8573_s21 + $0xe0] sm:$0xff]  ;;  %v5763_v38 = vld [vmem:[%s8573_s21 + $0xe8] sm:$0xff] }
0x146a   :  { %7799 = vmatpush3.bf16.msra.mxu1 %v7796_v42  ;;  %v4620_v42 = vld [vmem:[%s8573_s21 + $0x60] sm:$0xff] }
0x146b   :  { %7801 = vmatprep.subr.bf16.mxu1 %v7800_v46 }
0x146e   :  { %7803 = vmatpush3.bf16.msra.mxu1 %v7800_v46  ;;  %v7842_v46 = vpack.c.bf16 %v4621_v43, %v4620_v42  ;;  %v7880_v43 = vpack.c.bf16 %v5763_v38, %v5762_v37  ;;  %v4475_v38 = vld [vmem:[%s8578_s17 + $0x28] sm:$0xff] }
0x146f   :  { %7805 = vmatprep.subr.bf16.mxu1 %v7804_v49 }
0x1472   :  { %7807 = vmatpush3.bf16.msra.mxu1 %v7804_v49  ;;  %v5749_v49 = vld [vmem:[%s8568_s13 + $0x80] sm:$0xff] }
0x1473   :  { %7809 = vmatprep.subr.bf16.mxu1 %v7808_v52 }
0x1476   :  { %7811 = vmatpush3.bf16.msra.mxu1 %v7808_v52  ;;  %v5752_v52 = vld [vmem:[%s8568_s13 + $0x98] sm:$0xff] }
0x1477   :  { %7813 = vmatprep.subr.bf16.mxu1 %v7812_v55 }
0x147a   :  { %7815 = vmatpush3.bf16.msra.mxu1 %v7812_v55  ;;  %v5727_v55 = vld [vmem:[%s8573_s21 + $0x78] sm:$0xff] }
0x147b   :  { %7844 = vmatprep.subr.bf16.mxu1 %v8416_v20 }
0x147d   :  { %7046 = vmatmul.mubr.msk.f32.vlgmr.msra.gmra.mrb[44].mxu1 %vm1029_vm5, %v7013_v29  ;;  %v5714_v29 = vld [vmem:[%s8568_s13 + $0x50] sm:$0xff]  ;;  %s8419_s13 = smov [#allocation22]  }
0x147e   :  { %7048 = vmatprep.mubr.msk.f32.mxu1 %vm1029_vm5, %v4341_v33  ;;  %v4617_v33 = vld [vmem:[%s8573_s21 + $0x48] sm:$0xff] }
0x1481   :  { %7049 = vmatmul.mubr.msk.f32.gmra.mrb[46].mxu1 %vm1029_vm5, %v7016_v32  ;;  %v4616_v32 = vld [vmem:[%s8573_s21 + $0x40] sm:$0xff] }
0x1482   :  { %7137 = vmatprep.mubr.msk.f32.mxu1 %vm8417_vm6, %v8418_v21  ;;  %v7836_v36 = vpack.c.bf16 %v4617_v33, %v4616_v32 }
0x1550   :  { %v7047_v58 = vpop.f32.mrb[44].mxu1 }
0x1551   :  { %v7911_v59 = vadd.f32 %v7047_v58, %v3808_v56  ;;  %v4443_v60 = vpop.f32.mrb[45].mxu1  ;;  %v7852_v56 = vpack.c.bf16 %v5727_v55, %v5726_v54  ;;  %v5729_v58 = vld [vmem:[%s8573_s21 + $0x88] sm:$0xff]  ;;  %v5768_v54 = vld [vmem:[%s8573_s21 + $0x110] sm:$0xff]  ;;  %v5769_v55 = vld [vmem:[%s8573_s21 + $0x118] sm:$0xff] }
0x1552   :  { %v7912_v61 = vadd.f32 %v4443_v60, %v3807_v57  ;;  %v5728_v57 = vld [vmem:[%s8573_s21 + $0x80] sm:$0xff] }
0x1553   :  { %v4467_v63 = vmax.f32 %v7911_v59, 0.0 }
0x1554   :  { %v4466_v1 = vmax.f32 %v7912_v61, 0.0  ;;  %v7050_v2 = vpop.f32.mrb[46].mxu1 }
0x1555   :  { %v7913_v3 = vadd.f32 %v7050_v2, %v3810_v62  ;;  %v4453_v4 = vpop.f32.mrb[47].mxu1 }
0x1556   :  { %v7817_v5 = vpack.c.bf16 %v4467_v63, %v4466_v1  ;;  %v7914_v6 = vadd.f32 %v4453_v4, %v3809_v0  ;;  %v7855_v63 = vpack.c.bf16 %v5729_v58, %v5728_v57  ;;  %v5730_v0 = vld [vmem:[%s8573_s21 + $0x90] sm:$0xff]  ;;  %v5731_v1 = vld [vmem:[%s8573_s21 + $0x98] sm:$0xff]  ;;  %v7889_v58 = vpack.c.bf16 %v5769_v55, %v5768_v54 }
0x1557   :  { %v4469_v30 = vmax.f32 %v7913_v3, 0.0 }
0x1558   :  { %v4468_v7 = vmax.f32 %v7914_v6, 0.0  ;;  %7818 = vmatpush3.bf16.msra.mxu0 %v7817_v5  ;;  %7846 = vmatpush3.bf16.msra.mxu1 %v7817_v5  ;;  %v7858_v6 = vpack.c.bf16 %v5731_v1, %v5730_v0  ;;  %v5772_v0 = vld [vmem:[%s8573_s21 + $0x130] sm:$0xff]  ;;  %v5773_v1 = vld [vmem:[%s8573_s21 + $0x138] sm:$0xff] }
0x1559   :  { %7819 = vmatprep.subr.bf16.mxu0 %v8416_v20  ;;  %7847 = vmatprep.subr.bf16.mxu1 %v8416_v20 }
0x155a   :  { %v7820_v8 = vpack.c.bf16 %v4469_v30, %v4468_v7  ;;  %v5732_v30 = vld [vmem:[%s8573_s21 + $0xa0] sm:$0xff]  ;;  %v5733_v7 = vld [vmem:[%s8573_s21 + $0xa8] sm:$0xff] }
0x155c   :  { %7822 = vmatpush3.bf16.msk.msra.mxu0 %vm8679_vm3, %v7820_v8  ;;  %7850 = vmatpush3.bf16.msk.msra.mxu1 %vm8679_vm3, %v7820_v8 }
0x155d   :  { %7872 = vmatprep.subr.bf16.mxu1 %v8416_v20  ;;  %7823 = vmatprep.subr.bf16.mxu0 %v8416_v20 }
0x155f   :  { %7060 = vmatmul.mubr.msk.f32.vlgmr.msra.gmra.mrb[28].mxu0 %vm395_vm4, %v4477_v11  ;;  %7138 = vmatmul.mubr.msk.f32.vlgmr.msra.gmra.mrb[52].mxu1 %vm395_vm4, %v5711_v12  ;;  %v7861_v12 = vpack.c.bf16 %v5733_v7, %v5732_v30 }
0x1560   :  { %7874 = vmatpush3.bf16.msra.mxu1 %v7817_v5  ;;  %7062 = vmatprep.mubr.msk.f32.mxu0 %vm8417_vm6, %v8418_v21 }
0x1561   :  { %7875 = vmatprep.subr.bf16.mxu1 %v8416_v20  ;;  %7140 = vmatprep.mubr.msk.f32.mxu1 %vm8417_vm6, %v8418_v21 }
0x1562   :  { %7825 = vmatpush3.bf16.msra.mxu0 %v7824_v13  ;;  %v5734_v13 = vld [vmem:[%s8573_s21 + $0xb0] sm:$0xff] }
0x1563   :  { %7063 = vmatmul.mubr.msk.f32.gmra.mrb[30].mxu0 %vm395_vm4, %v4478_v17  ;;  %7141 = vmatmul.mubr.msk.f32.gmra.mrb[54].mxu1 %vm395_vm4, %v5712_v18  ;;  %v7864_v22 = vpack.c.bf16 %v5735_v14, %v5734_v13  ;;  %v4471_v14 = vld [vmem:[%s8578_s17 + $0x8] sm:$0xff] }
0x1564   :  { %7878 = vmatpush3.bf16.msk.msra.mxu1 %vm8679_vm3, %v7820_v8  ;;  %7065 = vmatprep.mubr.msk.f32.mxu0 %vm8417_vm6, %v8418_v21 }
0x1565   :  { %7143 = vmatprep.mubr.msk.f32.mxu1 %vm8417_vm6, %v8418_v21  ;;  %7826 = vmatprep.subr.bf16.mxu0 %v8416_v20 }
0x1566   :  { %7828 = vmatpush3.bf16.msra.mxu0 %v7827_v19 }
0x1567   :  { %7066 = vmatmul.mubr.msk.f32.gmra.mrb[32].mxu0 %vm395_vm4, %v4479_v24  ;;  %7144 = vmatmul.mubr.msk.f32.gmra.mrb[56].mxu1 %vm395_vm4, %v5713_v25  ;;  %v5737_v24 = vld [vmem:[%s8573_s21 + $0xc8] sm:$0xff] }
0x1568   :  { %7068 = vmatprep.mubr.msk.f32.mxu0 %vm8417_vm6, %v8418_v21  ;;  %7146 = vmatprep.mubr.msk.f32.mxu1 %vm8417_vm6, %v8418_v21 }
0x1569   :  { %7829 = vmatprep.subr.bf16.mxu0 %v8416_v20 }
0x156a   :  { %7831 = vmatpush3.bf16.msra.mxu0 %v7830_v26 }
0x156b   :  { %7069 = vmatmul.mubr.msk.f32.gmra.mrb[34].mxu0 %vm395_vm4, %v4480_v28  ;;  %7147 = vmatmul.mubr.msk.f32.gmra.mrb[58].mxu1 %vm395_vm4, %v5714_v29  ;;  %v7867_v28 = vpack.c.bf16 %v5737_v24, %v5736_v23  ;;  %v5738_v29 = vld [vmem:[%s8573_s21 + $0xd0] sm:$0xff] }
0x156c   :  { %7071 = vmatprep.mubr.msk.f32.mxu0 %vm8417_vm6, %v8418_v21  ;;  %7149 = vmatprep.mubr.msk.f32.mxu1 %vm8417_vm6, %v8418_v21 }
0x156d   :  { %7832 = vmatprep.subr.bf16.mxu0 %v8416_v20 }
0x156e   :  { %7834 = vmatpush3.bf16.msra.mxu0 %v7833_v31  ;;  %v5739_v31 = vld [vmem:[%s8573_s21 + $0xd8] sm:$0xff] }
0x156f   :  { %7072 = vmatmul.mubr.msk.f32.gmra.mrb[36].mxu0 %vm395_vm4, %v4481_v34  ;;  %7150 = vmatmul.mubr.msk.f32.gmra.mrb[60].mxu1 %vm395_vm4, %v5715_v35 }
0x1570   :  { %7074 = vmatprep.mubr.msk.f32.mxu0 %vm8417_vm6, %v8418_v21  ;;  %7152 = vmatprep.mubr.msk.f32.mxu1 %vm8417_vm6, %v8418_v21 }
0x1571   :  { %7835 = vmatprep.subr.bf16.mxu0 %v8416_v20 }
0x1572   :  { %7837 = vmatpush3.bf16.msra.mxu0 %v7836_v36  ;;  %v7870_v36 = vpack.c.bf16 %v5739_v31, %v5738_v29  ;;  %v4474_v31 = vld [vmem:[%s8578_s17 + $0x20] sm:$0xff] }
0x1573   :  { %7075 = vmatmul.mubr.msk.f32.gmra.mrb[38].mxu0 %vm395_vm4, %v4482_v39  ;;  %7153 = vmatmul.mubr.msk.f32.gmra.mrb[62].mxu1 %vm395_vm4, %v5716_v40 }
0x1574   :  { %7077 = vmatprep.mubr.msk.f32.mxu0 %vm8417_vm6, %v8418_v21  ;;  %7155 = vmatprep.mubr.msk.f32.mxu1 %vm8417_vm6, %v8418_v21 }
0x1575   :  { %7838 = vmatprep.subr.bf16.mxu0 %v8416_v20 }
0x1576   :  { %7840 = vmatpush3.bf16.msra.mxu0 %v7839_v41 }
0x1577   :  { %7078 = vmatmul.mubr.msk.f32.gmra.mrb[40].mxu0 %vm395_vm4, %v4483_v44  ;;  %7156 = vmatmul.mubr.msk.f32.gmra.mrb[64].mxu1 %vm395_vm4, %v5717_v45  ;;  %v5764_v44 = vld [vmem:[%s8573_s21 + $0xf0] sm:$0xff]  ;;  %v5765_v45 = vld [vmem:[%s8573_s21 + $0xf8] sm:$0xff] }
0x1578   :  { %7215 = vmatprep.mubr.msk.f32.mxu1 %vm8417_vm6, %v8418_v21  ;;  %7841 = vmatprep.subr.bf16.mxu0 %v8416_v20 }
0x1579   :  { %7108 = vmatprep.mubr.msk.f32.mxu0 %vm8417_vm6, %v8418_v21 }
0x157a   :  { %7843 = vmatpush3.bf16.msra.mxu0 %v7842_v46 }
0x157b   :  { %7216 = vmatmul.mubr.msk.f32.vlgmr.msra.gmra.mrb[66].mxu1 %vm395_vm4, %v5747_v47  ;;  %7851 = vmatprep.subr.bf16.mxu0 %v8416_v20 }
0x157c   :  { %7218 = vmatprep.mubr.msk.f32.mxu1 %vm8417_vm6, %v8418_v21 }
0x157f   :  { %7219 = vmatmul.mubr.msk.f32.gmra.mrb[68].mxu1 %vm395_vm4, %v5748_v48  ;;  %v7883_v48 = vpack.c.bf16 %v5765_v45, %v5764_v44  ;;  %v4476_v45 = vld [vmem:[%s8578_s17 + $0x30] sm:$0xff] }
0x1580   :  { %7221 = vmatprep.mubr.msk.f32.mxu1 %vm8417_vm6, %v8418_v21 }
0x1583   :  { %7222 = vmatmul.mubr.msk.f32.gmra.mrb[70].mxu1 %vm395_vm4, %v5749_v49  ;;  %v5766_v49 = vld [vmem:[%s8573_s21 + $0x100] sm:$0xff] }
0x1584   :  { %7224 = vmatprep.mubr.msk.f32.mxu1 %vm8417_vm6, %v8418_v21 }
0x1587   :  { %7225 = vmatmul.mubr.msk.f32.gmra.mrb[72].mxu1 %vm395_vm4, %v5750_v50  ;;  %v5767_v50 = vld [vmem:[%s8573_s21 + $0x108] sm:$0xff] }
0x1588   :  { %7227 = vmatprep.mubr.msk.f32.mxu1 %vm8417_vm6, %v8418_v21 }
0x158b   :  { %7228 = vmatmul.mubr.msk.f32.gmra.mrb[74].mxu1 %vm395_vm4, %v5751_v51 }
0x158c   :  { %7230 = vmatprep.mubr.msk.f32.mxu1 %vm8417_vm6, %v8418_v21 }
0x158f   :  { %7231 = vmatmul.mubr.msk.f32.gmra.mrb[76].mxu1 %vm395_vm4, %v5752_v52 }
0x1590   :  { %7233 = vmatprep.mubr.msk.f32.mxu1 %vm8417_vm6, %v8418_v21 }
0x1593   :  { %7234 = vmatmul.mubr.msk.f32.gmra.mrb[78].mxu1 %vm395_vm4, %v5753_v53  ;;  %v7886_v53 = vpack.c.bf16 %v5767_v50, %v5766_v49 }
0x1632   :  { %v4574_v59 = vpop.f32.mrb[28].mxu0  ;;  %v9367_v60 = vpop.f32.mrb[52].mxu1 }
0x1633   :  { %7109 = vmatmul.mubr.msk.f32.vlgmr.msra.gmra.mrb[42].mxu0 %vm1029_vm5, %v4574_v59  ;;  %v7061_v61 = vpop.f32.mrb[29].mxu0  ;;  %v7139_v62 = vpop.f32.mrb[53].mxu1  ;;  %v5770_v59 = vld [vmem:[%s8573_s21 + $0x120] sm:$0xff] }
0x1634   :  { %7853 = vmatpush3.bf16.msra.mxu0 %v7852_v56  ;;  %7111 = vmatprep.mubr.msk.f32.mxu0 %vm8417_vm6, %v8418_v21 }
0x1635   :  { %7854 = vmatprep.subr.bf16.mxu0 %v8416_v20 }
0x1636   :  { %v4579_v2 = vpop.f32.mrb[30].mxu0  ;;  %v9375_v3 = vpop.f32.mrb[54].mxu1 }
0x1637   :  { %7112 = vmatmul.mubr.msk.f32.gmra.mrb[44].mxu0 %vm1029_vm5, %v4579_v2  ;;  %v7064_v4 = vpop.f32.mrb[31].mxu0  ;;  %v7142_v5 = vpop.f32.mrb[55].mxu1 }
0x1638   :  { %7856 = vmatpush3.bf16.msra.mxu0 %v7855_v63  ;;  %7114 = vmatprep.mubr.msk.f32.mxu0 %vm8417_vm6, %v8418_v21  ;;  %v7895_v4 = vpack.c.bf16 %v5773_v1, %v5772_v0  ;;  %v5774_v5 = vld [vmem:[%s8573_s21 + $0x140] sm:$0xff] }
0x1639   :  { %7857 = vmatprep.subr.bf16.mxu0 %v8416_v20 }
0x163a   :  { %v4584_v8 = vpop.f32.mrb[32].mxu0  ;;  %v9383_v9 = vpop.f32.mrb[56].mxu1 }
0x163b   :  { %7115 = vmatmul.mubr.msk.f32.gmra.mrb[46].mxu0 %vm1029_vm5, %v4584_v8  ;;  %v7067_v10 = vpop.f32.mrb[33].mxu0  ;;  %v7145_v11 = vpop.f32.mrb[57].mxu1 }
0x163c   :  { %7859 = vmatpush3.bf16.msra.mxu0 %v7858_v6  ;;  %7117 = vmatprep.mubr.msk.f32.mxu0 %vm8417_vm6, %v8418_v21  ;;  %v5775_v6 = vld [vmem:[%s8573_s21 + $0x148] sm:$0xff] }
0x163d   :  { %7860 = vmatprep.subr.bf16.mxu0 %v8416_v20  ;;  %v7898_v8 = vpack.c.bf16 %v5775_v6, %v5774_v5 }
0x163e   :  { %v4589_v15 = vpop.f32.mrb[34].mxu0  ;;  %v9391_v17 = vpop.f32.mrb[58].mxu1 }
0x163f   :  { %7118 = vmatmul.mubr.msk.f32.gmra.mrb[48].mxu0 %vm1029_vm5, %v4589_v15  ;;  %v7070_v18 = vpop.f32.mrb[35].mxu0  ;;  %v7148_v19 = vpop.f32.mrb[59].mxu1 }
0x1640   :  { %7862 = vmatpush3.bf16.msra.mxu0 %v7861_v12  ;;  %7120 = vmatprep.mubr.msk.f32.mxu0 %vm8417_vm6, %v8418_v21 }
0x1641   :  { %7863 = vmatprep.subr.bf16.mxu0 %v8416_v20 }
0x1642   :  { %v4594_v25 = vpop.f32.mrb[36].mxu0  ;;  %v9399_v26 = vpop.f32.mrb[60].mxu1 }
0x1643   :  { %7121 = vmatmul.mubr.msk.f32.gmra.mrb[50].mxu0 %vm1029_vm5, %v4594_v25  ;;  %v7073_v16 = vpop.f32.mrb[37].mxu0  ;;  %v7151_v27 = vpop.f32.mrb[61].mxu1 }
0x1644   :  { %7865 = vmatpush3.bf16.msra.mxu0 %v7864_v22  ;;  %7123 = vmatprep.mubr.msk.f32.mxu0 %vm8417_vm6, %v8418_v21  ;;  %v4472_v22 = vld [vmem:[%s8578_s17 + $0x10] sm:$0xff] }
0x1645   :  { %7866 = vmatprep.subr.bf16.mxu0 %v8416_v20 }
0x1646   :  { %v4599_v32 = vpop.f32.mrb[38].mxu0  ;;  %v9407_v33 = vpop.f32.mrb[62].mxu1 }
0x1647   :  { %7124 = vmatmul.mubr.msk.f32.gmra.mrb[52].mxu0 %vm1029_vm5, %v4599_v32  ;;  %v7076_v34 = vpop.f32.mrb[39].mxu0  ;;  %v7154_v35 = vpop.f32.mrb[63].mxu1 }
0x1648   :  { %7868 = vmatpush3.bf16.msra.mxu0 %v7867_v28  ;;  %7126 = vmatprep.mubr.msk.f32.mxu0 %vm8417_vm6, %v8418_v21 }
0x1649   :  { %7869 = vmatprep.subr.bf16.mxu0 %v8416_v20 }
0x164a   :  { %v4604_v39 = vpop.f32.mrb[40].mxu0  ;;  %v9415_v40 = vpop.f32.mrb[64].mxu1 }
0x164b   :  { %7127 = vmatmul.mubr.msk.f32.gmra.mrb[54].mxu0 %vm1029_vm5, %v4604_v39  ;;  %v7079_v41 = vpop.f32.mrb[41].mxu0  ;;  %v7157_v42 = vpop.f32.mrb[65].mxu1 }
0x164c   :  { %7871 = vmatpush3.bf16.msra.mxu0 %v7870_v36  ;;  %7186 = vmatprep.mubr.msk.f32.mxu0 %vm8417_vm6, %v8418_v21 }
0x164d   :  { %7879 = vmatprep.subr.bf16.mxu0 %v8416_v20 }
0x164e   :  { %v5117_v46 = vpop.f32.mrb[66].mxu1 }
0x164f   :  { %7187 = vmatmul.mubr.msk.f32.vlgmr.msra.gmra.mrb[42].mxu0 %vm1029_vm5, %v9367_v60  ;;  %v7217_v47 = vpop.f32.mrb[67].mxu1  ;;  %v5771_v60 = vld [vmem:[%s8573_s21 + $0x128] sm:$0xff] }
0x1650   :  { %7881 = vmatpush3.bf16.msra.mxu0 %v7880_v43  ;;  %7189 = vmatprep.mubr.msk.f32.mxu0 %vm8417_vm6, %v8418_v21  ;;  %v7892_v63 = vpack.c.bf16 %v5771_v60, %v5770_v59 }
0x1651   :  { %7882 = vmatprep.subr.bf16.mxu0 %v8416_v20 }
0x1652   :  { %v5122_v51 = vpop.f32.mrb[68].mxu1 }
0x1653   :  { %7190 = vmatmul.mubr.msk.f32.gmra.mrb[44].mxu0 %vm1029_vm5, %v9375_v3  ;;  %v7220_v52 = vpop.f32.mrb[69].mxu1 }
0x1654   :  { %7884 = vmatpush3.bf16.msra.mxu0 %v7883_v48  ;;  %7192 = vmatprep.mubr.msk.f32.mxu0 %vm8417_vm6, %v8418_v21 }
0x1655   :  { %7885 = vmatprep.subr.bf16.mxu0 %v8416_v20 }
0x1656   :  { %v5127_v56 = vpop.f32.mrb[70].mxu1 }
0x1657   :  { %7193 = vmatmul.mubr.msk.f32.gmra.mrb[46].mxu0 %vm1029_vm5, %v9383_v9  ;;  %v7223_v57 = vpop.f32.mrb[71].mxu1 }
0x1658   :  { %7887 = vmatpush3.bf16.msra.mxu0 %v7886_v53  ;;  %7195 = vmatprep.mubr.msk.f32.mxu0 %vm8417_vm6, %v8418_v21 }
0x1659   :  { %7888 = vmatprep.subr.bf16.mxu0 %v8416_v20 }
0x165a   :  { %v5132_v61 = vpop.f32.mrb[72].mxu1 }
0x165b   :  { %7196 = vmatmul.mubr.msk.f32.gmra.mrb[48].mxu0 %vm1029_vm5, %v9391_v17  ;;  %v7226_v62 = vpop.f32.mrb[73].mxu1 }
0x165c   :  { %7890 = vmatpush3.bf16.msra.mxu0 %v7889_v58  ;;  %7198 = vmatprep.mubr.msk.f32.mxu0 %vm8417_vm6, %v8418_v21 }
0x165d   :  { %7891 = vmatprep.subr.bf16.mxu0 %v8416_v20 }
0x165e   :  { %v5137_v2 = vpop.f32.mrb[74].mxu1 }
0x165f   :  { %7199 = vmatmul.mubr.msk.f32.gmra.mrb[50].mxu0 %vm1029_vm5, %v9399_v26  ;;  %v7229_v3 = vpop.f32.mrb[75].mxu1  ;;  %v4473_v26 = vld [vmem:[%s8578_s17 + $0x18] sm:$0xff] }
0x1660   :  { %7893 = vmatpush3.bf16.msra.mxu0 %v7892_v63  ;;  %7201 = vmatprep.mubr.msk.f32.mxu0 %vm8417_vm6, %v8418_v21 }
0x1661   :  { %7894 = vmatprep.subr.bf16.mxu0 %v8416_v20 }
0x1662   :  { %v5142_v30 = vpop.f32.mrb[76].mxu1 }
0x1663   :  { %7202 = vmatmul.mubr.msk.f32.gmra.mrb[52].mxu0 %vm1029_vm5, %v9407_v33  ;;  %v7232_v7 = vpop.f32.mrb[77].mxu1 }
0x1664   :  { %7896 = vmatpush3.bf16.msra.mxu0 %v7895_v4  ;;  %7204 = vmatprep.mubr.msk.f32.mxu0 %vm8417_vm6, %v8418_v21 }
0x1665   :  { %7897 = vmatprep.subr.bf16.mxu0 %v8416_v20  ;;  %v4470_v20 = vld [vmem:[%s8578_s17] sm:$0xff]  ;;  %s5348_s17 = sshll.u32 %s8419_s13, 4  ;;  %s5349_s17 = int_to_ptr.vmem [resolvable:$true] %s5348_s17 }
0x1666   :  { %v5147_v9 = vpop.f32.mrb[78].mxu1  ;;  %s8330_s21 = scalar_lea.vmem %s5349_s17, 896  ;;  %p8335_p13 = scmp.lt.s32.totalorder %s5349_s17, %s5349_s17 }
0x1667   :  { %7205 = vmatmul.mubr.msk.f32.gmra.mrb[54].mxu0 %vm1029_vm5, %v9415_v40  ;;  %v7235_v10 = vpop.f32.mrb[79].mxu1  ;;  %p8331_p12 = scmp.ne.s32.totalorder %s5349_s17, %s8330_s21  ;;  %p8336_p0 = scmp.lt.s32.totalorder %s8330_s21, %s8330_s21 }
0x1668   :  { %7899 = vmatpush3.bf16.msra.mxu0 %v7898_v8  ;;  %7264 = vmatprep.mubr.msk.f32.mxu0 %vm8417_vm6, %v8418_v21 }
0x1669   :  { %p8337_p1 = por %p8336_p0, %p8335_p13 }
0x166b   :  { %7265 = vmatmul.mubr.msk.f32.vlgmr.msra.gmra.mrb[42].mxu0 %vm1029_vm5, %v5117_v46  ;;  %p8338_p2 = pnand %p8337_p1, %p8331_p12 }
0x166c   :  { %7267 = vmatprep.mubr.msk.f32.mxu0 %vm8417_vm6, %v8418_v21 }
0x166f   :  { %7268 = vmatmul.mubr.msk.f32.gmra.mrb[44].mxu0 %vm1029_vm5, %v5122_v51 }
0x1670   :  { %7270 = vmatprep.mubr.msk.f32.mxu0 %vm8417_vm6, %v8418_v21 }
0x1673   :  { %7271 = vmatmul.mubr.msk.f32.gmra.mrb[46].mxu0 %vm1029_vm5, %v5127_v56 }
0x1674   :  { %7273 = vmatprep.mubr.msk.f32.mxu0 %vm8417_vm6, %v8418_v21 }
0x1677   :  { %7274 = vmatmul.mubr.msk.f32.gmra.mrb[48].mxu0 %vm1029_vm5, %v5132_v61 }
0x1678   :  { %7276 = vmatprep.mubr.msk.f32.mxu0 %vm8417_vm6, %v8418_v21 }
0x167b   :  { %7277 = vmatmul.mubr.msk.f32.gmra.mrb[50].mxu0 %vm1029_vm5, %v5137_v2 }
0x167c   :  { %7279 = vmatprep.mubr.msk.f32.mxu0 %vm8417_vm6, %v8418_v21 }
0x167f   :  { %7280 = vmatmul.mubr.msk.f32.gmra.mrb[52].mxu0 %vm1029_vm5, %v5142_v30 }
0x1680   :  { %7282 = vmatprep.mubr.msk.f32.mxu0 %vm8417_vm6, %v8418_v21 }
0x1683   :  { %7283 = vmatmul.mubr.msk.f32.gmra.mrb[54].mxu0 %vm1029_vm5, %v5147_v9 }
0x173e   :  { %v5253_v11 = vpop.f32.mrb[42].mxu0 }
0x173f   :  { %v7915_v12 = vadd.f32 %v5253_v11, %v4470_v20  ;;  %v7266_v13 = vpop.f32.mrb[43].mxu0 }
0x1741   :  { %v5783_v15 = vmul.f32 -1.442695, %v7915_v12 }
0x1742   :  { %v5258_v17 = vpop.f32.mrb[44].mxu0 }
0x1743   :  { %8038 = vpow2.f32 %v5783_v15  ;;  %v7916_v18 = vadd.f32 %v5258_v17, %v4471_v14  ;;  %v7269_v19 = vpop.f32.mrb[45].mxu0 }
0x1745   :  { %v5784_v23 = vmul.f32 -1.442695, %v7916_v18 }
0x1746   :  { %v5263_v24 = vpop.f32.mrb[46].mxu0 }
0x1747   :  { %8040 = vpow2.f32 %v5784_v23  ;;  %v7917_v25 = vadd.f32 %v5263_v24, %v4472_v22  ;;  %v7272_v21 = vpop.f32.mrb[47].mxu0 }
0x1749   :  { %v5785_v16 = vmul.f32 -1.442695, %v7917_v25 }
0x174a   :  { %v5268_v27 = vpop.f32.mrb[48].mxu0 }
0x174b   :  { %8042 = vpow2.f32 %v5785_v16  ;;  %v7918_v28 = vadd.f32 %v5268_v27, %v4473_v26  ;;  %v7275_v29 = vpop.f32.mrb[49].mxu0 }
0x174d   :  { %v8039_v32 = vpop.eup %8038  ;;  %v5786_v33 = vmul.f32 -1.442695, %v7918_v28 }
0x174e   :  { %v5315_v34 = vadd.f32 1.0, %v8039_v32  ;;  %v5273_v35 = vpop.f32.mrb[50].mxu0 }
0x174f   :  { %8044 = vpow2.f32 %v5786_v33  ;;  %v7919_v36 = vadd.f32 %v5273_v35, %v4474_v31  ;;  %v7278_v37 = vpop.f32.mrb[51].mxu0 }
0x1750   :  { %8046 = vrcp.f32 %v5315_v34 }
0x1751   :  { %v8041_v39 = vpop.eup %8040  ;;  %v5787_v40 = vmul.f32 -1.442695, %v7919_v36 }
0x1752   :  { %v5316_v41 = vadd.f32 1.0, %v8041_v39  ;;  %v5278_v42 = vpop.f32.mrb[52].mxu0 }
0x1753   :  { %8048 = vpow2.f32 %v5787_v40  ;;  %v7920_v43 = vadd.f32 %v5278_v42, %v4475_v38  ;;  %v7281_v44 = vpop.f32.mrb[53].mxu0 }
0x1754   :  { %8050 = vrcp.f32 %v5316_v41 }
0x1755   :  { %v8043_v46 = vpop.eup %8042  ;;  %v5788_v47 = vmul.f32 -1.442695, %v7920_v43 }
0x1756   :  { %v5317_v48 = vadd.f32 1.0, %v8043_v46  ;;  %v5283_v49 = vpop.f32.mrb[54].mxu0 }
0x1757   :  { %8052 = vpow2.f32 %v5788_v47  ;;  %v7921_v50 = vadd.f32 %v5283_v49, %v4476_v45  ;;  %v7284_v51 = vpop.f32.mrb[55].mxu0 }
0x1758   :  { %8054 = vrcp.f32 %v5317_v48 }
0x1759   :  { %v8045_v52 = vpop.eup %8044  ;;  %v5789_v53 = vmul.f32 -1.442695, %v7921_v50 }
0x175a   :  { %v8047_v54 = vpop.eup %8046  ;;  %v5318_v55 = vadd.f32 1.0, %v8045_v52 }
0x175b   :  { %5336 = vst.msk [vmem:[#allocation22] sm:$0xff] %vm395_vm4, %v8047_v54  ;;  %8056 = vpow2.f32 %v5789_v53 }
0x175c   :  { %8058 = vrcp.f32 %v5318_v55 }
0x175d   :  { %v8049_v56 = vpop.eup %8048 }
0x175e   :  { %v8051_v57 = vpop.eup %8050  ;;  %v5319_v58 = vadd.f32 1.0, %v8049_v56 }
0x175f   :  { %5337 = vst.msk [vmem:[#allocation22 + $0x8] sm:$0xff] %vm395_vm4, %v8051_v57 }
0x1760   :  { %8060 = vrcp.f32 %v5319_v58 }
0x1761   :  { %v8053_v59 = vpop.eup %8052 }
0x1762   :  { %v8055_v60 = vpop.eup %8054  ;;  %v5320_v61 = vadd.f32 1.0, %v8053_v59 }
0x1763   :  { %5338 = vst.msk [vmem:[#allocation22 + $0x10] sm:$0xff] %vm395_vm4, %v8055_v60 }
0x1764   :  { %8062 = vrcp.f32 %v5320_v61 }
0x1765   :  { %v8057_v62 = vpop.eup %8056 }
0x1766   :  { %v8059_v63 = vpop.eup %8058  ;;  %v5321_v0 = vadd.f32 1.0, %v8057_v62 }
0x1767   :  { %5339 = vst.msk [vmem:[#allocation22 + $0x18] sm:$0xff] %vm395_vm4, %v8059_v63 }
0x1768   :  { %8064 = vrcp.f32 %v5321_v0 }
0x176a   :  { %v8061_v1 = vpop.eup %8060 }
0x176b   :  { %5340 = vst.msk [vmem:[#allocation22 + $0x20] sm:$0xff] %vm395_vm4, %v8061_v1 }
0x176e   :  { %v8063_v2 = vpop.eup %8062 }
0x176f   :  { %5341 = vst.msk [vmem:[#allocation22 + $0x28] sm:$0xff] %vm395_vm4, %v8063_v2 }
0x1772   :  { %v8065_v3 = vpop.eup %8064 }
0x1773   :  { %5342 = vst.msk [vmem:[#allocation22 + $0x30] sm:$0xff] %vm395_vm4, %v8065_v3 }
0x1774   :  { %8341 = shalt.err (!%p8338_p2)
}
0x1775   :  { %s8342_s11 = scalar_lea.hbm %s8583_s24, 896 }
0x1776   :  { %p8343_p3 = scmp.ne.s32.totalorder %s8583_s24, %s8342_s11  ;;  %p8346_p4 = scmp.lt.u32.totalorder %s8342_s11, %s8583_s24 }
0x1778   :  { %p8348_p5 = pnand %p8346_p4, %p8343_p3 }
0x177a   :  { %8351 = shalt.err (!%p8348_p5)
}
0x177b   :  { %5354 = dma.vmem_to_hbm [thread:$0]  %s5349_s17, 896, %s8583_s24, [#allocation4], %s8401_s2, %s8401_s2, %s8402_s7  }
0x177c   :  { %8366 = dma.done.wait [#allocation4], 896  }
0x177d   :  { %8367 = vsyncadd [#allocation4], 4294966400 }
0x177e   :  { %5358 = vsyncpa [#allocation3], 1 }
0x177f   :  { %5359 = vsyncpa [#allocation6], 1 }
0x1780   :  { %5360 = vsyncpa [#allocation9], 1 }
0x1781   :  { %5361 = vsyncpa [#allocation12], 1 }
0x1782   :  { %5362 = vsyncpa [#allocation15], 1 }
0x1783   :  { %5363 = vsyncpa [#allocation18], 1 }
0x1784   :  { %5364 = vsyncpa [#allocation21], 1 }
0x1785   :  { %5365 = vsyncpa [#allocation4], 1 }

</bundles_post_ra>
